<compile_context>
chip_gen: v6e
topology: v6e:2x2x1
jax: 0.10.0
libtpu: 0.0.40
codegen_flags: <defaults>
</compile_context>

<pallas_src>
import jax
import jax.numpy as jnp
from jax.experimental import pallas as pl
from jax.experimental.pallas import tpu as pltpu


# --------------------------- Pallas kernel ---------------------------------

def char_rnn_kernel(xg_ref, lens_ref,
                    whh1_ref, wih2_ref, whh2_ref, b2_ref,
                    wl1_ref, bl1_ref, wl2_ref, bl2_ref,
                    o_ref,
                    h1, c1, h2, c2, h2buf):
    Tc, B, G = xg_ref.shape          # G = 4H (pre-projected layer-1 gates)
    H = h1.shape[1]
    Vp = wl2_ref.shape[1]
    chunk = pl.program_id(0)

    @pl.when(chunk == 0)
    def _():
        h1[...] = jnp.zeros_like(h1)
        c1[...] = jnp.zeros_like(c1)
        h2[...] = jnp.zeros_like(h2)
        c2[...] = jnp.zeros_like(c2)

    # Hoist loop-invariant loads / broadcasts (JAX does not CSE broadcasts).
    lens = lens_ref[...]                                  # (B, 1) int32
    whh1 = whh1_ref[...]                                  # (H, 4H) bf16
    wih2 = wih2_ref[...]                                  # (H, 4H) bf16
    whh2 = whh2_ref[...]                                  # (H, 4H) bf16
    b2 = jnp.broadcast_to(b2_ref[...], (B, G))            # (B, 4H) f32

    t0 = chunk * Tc

    def gates(g, c):
        # PyTorch gate order i, f, g, o
        i = jax.nn.sigmoid(g[:, 0 * H:1 * H])
        f = jax.nn.sigmoid(g[:, 1 * H:2 * H])
        gg = jnp.tanh(g[:, 2 * H:3 * H])
        o = jax.nn.sigmoid(g[:, 3 * H:4 * H])
        cn = f * c + i * gg
        hn = o * jnp.tanh(cn)
        return hn, cn

    def step(i, carry):
        h1v, c1v, h2v, c2v = carry
        # validity mask: 1.0 while t < len(b), else 0.0 (packed-seq semantics)
        m = (lens > (t0 + i)).astype(jnp.float32)         # (B, 1)

        # ---- LSTM layer 1: input projection already folded in; one K=H dot
        g1 = xg_ref[i] + jnp.dot(h1v.astype(jnp.bfloat16), whh1,
                                 preferred_element_type=jnp.float32)
        h1n, c1n = gates(g1, c1v)
        c1v = c1v + m * (c1n - c1v)                       # state frozen on pad
        h1v = h1v + m * (h1n - h1v)

        # ---- LSTM layer 2: two separate K=H dots, no concat on critical path
        g2 = (jnp.dot(h1v.astype(jnp.bfloat16), wih2,
                      preferred_element_type=jnp.float32)
              + jnp.dot(h2v.astype(jnp.bfloat16), whh2,
                        preferred_element_type=jnp.float32)
              + b2)
        h2n, c2n = gates(g2, c2v)
        c2v = c2v + m * (c2n - c2v)
        h2v = h2v + m * (h2n - h2v)

        # pad_packed_sequence zero-pads features past each length
        h2buf[i] = m * h2n                                # (B, H) f32 plane
        return (h1v, c1v, h2v, c2v)

    h1v, c1v, h2v, c2v = jax.lax.fori_loop(
        0, Tc, step, (h1[...], c1[...], h2[...], c2[...]),
        unroll=min(8, Tc))

    # carry recurrent state to the next time chunk
    h1[...] = h1v
    c1[...] = c1v
    h2[...] = h2v
    c2[...] = c2v

    # ---- batched head (no recurrence): two (Tc*B, H) matmuls, one slab store
    hflat = h2buf[...].reshape(Tc * B, H).astype(jnp.bfloat16)
    z = jnp.maximum(
        jnp.dot(hflat, wl1_ref[...], preferred_element_type=jnp.float32)
        + bl1_ref[...], 0.0)
    y = jnp.dot(z.astype(jnp.bfloat16), wl2_ref[...],
                preferred_element_type=jnp.float32) + bl2_ref[...]
    o_ref[...] = y.reshape(Tc, B, Vp)                     # lane-dense writeback


# --------------------------- wrapper ----------------------------------------

def char_rnn_forward(packed, batch_x, batch_x_lens, *, max_len=None, t_chunk=64):
    """batch_x: (B, T) int32 token ids; batch_x_lens: (B,) int32 lengths.
    max_len: optional static Python int (avoid host sync); if None, full T."""
    B, T = batch_x.shape
    H = packed["w_hh1"].shape[0]
    G = 4 * H
    Vp = packed["w_l2"].shape[1]
    V = packed["vocab_size"]

    Tc = min(int(t_chunk), T)
    T_pad = ((T + Tc - 1) // Tc) * Tc

    # glue: embedding + layer-1 input projection + b1 folded into one gather,
    # produced directly in time-major layout (no (B,T,E) transpose).
    xg = packed["gate_table1"][batch_x.T]                 # (T, B, 4H) f32
    if T_pad > T:
        xg = jnp.pad(xg, ((0, T_pad - T), (0, 0), (0, 0)))
    lens = batch_x_lens.astype(jnp.int32).reshape(B, 1)

    const = lambda shape: pl.BlockSpec(shape, lambda t: (0, 0))

    out_tm = pl.pallas_call(
        char_rnn_kernel,
        out_shape=jax.ShapeDtypeStruct((T_pad, B, Vp), jnp.float32),
        grid_spec=pltpu.PrefetchScalarGridSpec(
            num_scalar_prefetch=0,
            grid=(T_pad // Tc,),
            in_specs=[
                pl.BlockSpec((Tc, B, G), lambda t: (t, 0, 0)),  # gate chunk
                const((B, 1)),                                  # lengths
                const((H, G)),                                  # W_hh1
                const((H, G)), const((H, G)), const((1, G)),    # layer 2
                const((H, H)), const((1, H)),                   # head linear 1
                const((H, Vp)), const((1, Vp)),                 # head linear 2
            ],
            out_specs=pl.BlockSpec((Tc, B, Vp), lambda t: (t, 0, 0)),
            scratch_shapes=[pltpu.VMEM((B, H), jnp.float32)] * 4   # h1,c1,h2,c2
                         + [pltpu.VMEM((Tc, B, H), jnp.float32)],  # chunk h2 out
        ),
        compiler_params=pltpu.CompilerParams(
            # time-chunk axis carries recurrent state -> sequential
            dimension_semantics=("arbitrary",)),
    )(xg, lens,
      packed["w_hh1"], packed["w_ih2"], packed["w_hh2"], packed["b2"],
      packed["w_l1"], packed["b_l1"], packed["w_l2"], packed["b_l2"])

    logits = jnp.transpose(out_tm[:T], (1, 0, 2))[:, :, :V]       # (B, T, V)
    if max_len is not None:
        logits = logits[:, :max_len, :]
    return logits


# --------------------------- params -----------------------------------------

def init_params(key, vocab_size, embed_dim, hidden_dim):
    ks = jax.random.split(key, 11)

    def rnd(k, shape, scale=0.1):
        return (jax.random.normal(k, shape) * scale).astype(jnp.float32)

    emb = rnd(ks[0], (vocab_size, embed_dim)).at[0].set(0.0)  # padding_idx = 0
    return {
        "embedding": emb,
        # stored pre-transposed so the kernel computes x @ W
        "w_ih1": rnd(ks[1], (embed_dim, 4 * hidden_dim)),
        "w_hh1": rnd(ks[2], (hidden_dim, 4 * hidden_dim)),
        "b1": rnd(ks[3], (1, 4 * hidden_dim)),   # b_ih + b_hh folded
        "w_ih2": rnd(ks[4], (hidden_dim, 4 * hidden_dim)),
        "w_hh2": rnd(ks[5], (hidden_dim, 4 * hidden_dim)),
        "b2": rnd(ks[6], (1, 4 * hidden_dim)),
        "w_l1": rnd(ks[7], (hidden_dim, hidden_dim)),
        "b_l1": rnd(ks[8], (1, hidden_dim)),
        "w_l2": rnd(ks[9], (hidden_dim, vocab_size)),
        "b_l2": rnd(ks[10], (1, vocab_size)),
    }


def pack_params(p):
    """Fold Embedding @ W_ih1 + b1 into a per-token gate table, pad vocab to a
    lane-dense width, cast matmul weights to bf16."""
    V = p["w_l2"].shape[1]
    H = p["w_hh1"].shape[0]
    Vp = ((V + 127) // 128) * 128
    w_l2p = jnp.zeros((H, Vp), jnp.float32).at[:, :V].set(p["w_l2"])
    b_l2p = jnp.zeros((1, Vp), jnp.float32).at[:, :V].set(p["b_l2"])
    gate_table1 = jnp.dot(p["embedding"], p["w_ih1"]) + p["b1"]   # (V, 4H) f32
    return {
        "vocab_size": V,
        "gate_table1": gate_table1,
        "w_hh1": p["w_hh1"].astype(jnp.bfloat16),
        "w_ih2": p["w_ih2"].astype(jnp.bfloat16),
        "w_hh2": p["w_hh2"].astype(jnp.bfloat16),
        "b2": p["b2"],
        "w_l1": p["w_l1"].astype(jnp.bfloat16),
        "b_l1": p["b_l1"],
        "w_l2": w_l2p.astype(jnp.bfloat16),
        "b_l2": b_l2p,
    }


# --------------------- pure-JAX reference (correctness) ---------------------

def char_rnn_reference(packed, batch_x, batch_x_lens, *, max_len=None):
    B, T = batch_x.shape
    H = packed["w_hh1"].shape[0]
    V = packed["vocab_size"]

    xg = packed["gate_table1"][batch_x.T]                          # (T, B, 4H)
    mask = (jnp.arange(T)[:, None] < batch_x_lens[None, :]
            ).astype(jnp.float32)[:, :, None]                      # (T, B, 1)

    def gates(g, c):
        i = jax.nn.sigmoid(g[:, :H])
        f = jax.nn.sigmoid(g[:, H:2 * H])
        gg = jnp.tanh(g[:, 2 * H:3 * H])
        o = jax.nn.sigmoid(g[:, 3 * H:])
        cn = f * c + i * gg
        return o * jnp.tanh(cn), cn

    def stp(carry, inp):
        h1, c1, h2, c2 = carry
        xg_t, m = inp
        g1 = xg_t + jnp.dot(h1.astype(jnp.bfloat16), packed["w_hh1"],
                            preferred_element_type=jnp.float32)
        h1n, c1n = gates(g1, c1)
        c1 = c1 + m * (c1n - c1)
        h1 = h1 + m * (h1n - h1)
        g2 = (jnp.dot(h1.astype(jnp.bfloat16), packed["w_ih2"],
                      preferred_element_type=jnp.float32)
              + jnp.dot(h2.astype(jnp.bfloat16), packed["w_hh2"],
                        preferred_element_type=jnp.float32)
              + packed["b2"])
        h2n, c2n = gates(g2, c2)
        c2 = c2 + m * (c2n - c2)
        h2 = h2 + m * (h2n - h2)
        return (h1, c1, h2, c2), m * h2n

    init = tuple(jnp.zeros((B, H), jnp.float32) for _ in range(4))
    _, out2 = jax.lax.scan(stp, init, (xg, mask))                  # (T, B, H)

    z = jnp.maximum(
        jnp.matmul(out2.astype(jnp.bfloat16), packed["w_l1"],
                   preferred_element_type=jnp.float32) + packed["b_l1"], 0.0)
    y = jnp.matmul(z.astype(jnp.bfloat16), packed["w_l2"],
                   preferred_element_type=jnp.float32) + packed["b_l2"]
    logits = jnp.transpose(y, (1, 0, 2))[:, :, :V]
    if max_len is not None:
        logits = logits[:, :max_len, :]
    return logits


# --------------------------- demo / self-check -------------------------------

if __name__ == "__main__":
    # small shapes consistent with the module (<pad>=0, <eos>=1 in the vocab)
    vocab_size, embed_dim, hidden_dim = 8, 128, 128
    B, T = 8, 16

    key = jax.random.PRNGKey(0)
    kp, kx = jax.random.split(key)
    raw = init_params(kp, vocab_size, embed_dim, hidden_dim)
    packed = pack_params(raw)

    # lengths are known on the host (data loader) -> static max_len, no sync
    lens_list = [16, 11, 16, 7, 13, 16, 3, 9]
    max_len = max(lens_list)
    batch_x_lens = jnp.array(lens_list, dtype=jnp.int32)

    batch_x = jax.random.randint(kx, (B, T), 2, vocab_size, dtype=jnp.int32)
    batch_x = jnp.where(jnp.arange(T)[None, :] < batch_x_lens[:, None],
                        batch_x, 0)

    # t_chunk=8 exercises multi-chunk recurrent-state carry across grid steps
    logits = char_rnn_forward(packed, batch_x, batch_x_lens,
                              max_len=max_len, t_chunk=8)
    logits = jax.block_until_ready(logits)

    ref = char_rnn_reference(packed, batch_x, batch_x_lens, max_len=max_len)
    assert logits.shape == (B, max_len, vocab_size)
    err = float(jnp.max(jnp.abs(logits - ref)))
    assert err < 1e-2, f"max abs err {err}"

    print("KERNEL_OK")
</pallas_src>

<mosaic_0001>
module attributes {stable_mosaic.version = 11 : i64} {
  func.func @char_rnn_kernel(%arg0: i32, %arg1: memref<8x8x512xf32, #tpu.memory_space<vmem>>, %arg2: memref<8x1xi32, #tpu.memory_space<vmem>>, %arg3: memref<128x512xbf16, #tpu.memory_space<vmem>>, %arg4: memref<128x512xbf16, #tpu.memory_space<vmem>>, %arg5: memref<128x512xbf16, #tpu.memory_space<vmem>>, %arg6: memref<1x512xf32, #tpu.memory_space<vmem>>, %arg7: memref<128x128xbf16, #tpu.memory_space<vmem>>, %arg8: memref<1x128xf32, #tpu.memory_space<vmem>>, %arg9: memref<128x128xbf16, #tpu.memory_space<vmem>>, %arg10: memref<1x128xf32, #tpu.memory_space<vmem>>, %arg11: memref<8x8x128xf32, #tpu.memory_space<vmem>>, %arg12: memref<8x128xf32, #tpu.memory_space<vmem>>, %arg13: memref<8x128xf32, #tpu.memory_space<vmem>>, %arg14: memref<8x128xf32, #tpu.memory_space<vmem>>, %arg15: memref<8x128xf32, #tpu.memory_space<vmem>>, %arg16: memref<8x8x128xf32, #tpu.memory_space<vmem>>) attributes {dimension_semantics = [#tpu.dimension_semantics<arbitrary>], iteration_bounds = array<i64: 2>, scalar_prefetch = 0 : i64, scratch_operands = 5 : i64, tpu.core_type = #tpu.core_type<tc>, window_params = [{transform_indices = @transform_0, window_bounds = array<i64: 8, 8, 512>}, {pipeline_mode = #tpu.pipeline_mode<synchronous>, transform_indices = @transform_1, window_bounds = array<i64: 8, 1>}, {pipeline_mode = #tpu.pipeline_mode<synchronous>, transform_indices = @transform_2, window_bounds = array<i64: 128, 512>}, {pipeline_mode = #tpu.pipeline_mode<synchronous>, transform_indices = @transform_3, window_bounds = array<i64: 128, 512>}, {pipeline_mode = #tpu.pipeline_mode<synchronous>, transform_indices = @transform_4, window_bounds = array<i64: 128, 512>}, {pipeline_mode = #tpu.pipeline_mode<synchronous>, transform_indices = @transform_5, window_bounds = array<i64: 1, 512>}, {pipeline_mode = #tpu.pipeline_mode<synchronous>, transform_indices = @transform_6, window_bounds = array<i64: 128, 128>}, {pipeline_mode = #tpu.pipeline_mode<synchronous>, transform_indices = @transform_7, window_bounds = array<i64: 1, 128>}, {pipeline_mode = #tpu.pipeline_mode<synchronous>, transform_indices = @transform_8, window_bounds = array<i64: 128, 128>}, {pipeline_mode = #tpu.pipeline_mode<synchronous>, transform_indices = @transform_9, window_bounds = array<i64: 1, 128>}, {transform_indices = @transform_10, window_bounds = array<i64: 8, 8, 128>}]} {
    %c0_i32 = arith.constant 0 : i32
    %0 = arith.cmpi eq, %arg0, %c0_i32 : i32
    %1 = arith.extui %0 : i1 to i32
    %c0_i32_0 = arith.constant 0 : i32
    %2 = arith.cmpi ne, %1, %c0_i32_0 : i32
    scf.if %2 {
      %cst_148 = arith.constant 0.000000e+00 : f32
      %749 = vector.broadcast %cst_148 : f32 to vector<8x128xf32>
      %c0_149 = arith.constant 0 : index
      %c0_150 = arith.constant 0 : index
      %750 = vector.load %arg12[%c0_149, %c0_150] : memref<8x128xf32, #tpu.memory_space<vmem>>, vector<8x128xf32>
      tpu.vector_store %arg12[%c0_149, %c0_150], %749 {strides = array<i32>} : memref<8x128xf32, #tpu.memory_space<vmem>>, vector<8x128xf32>,
      %cst_151 = arith.constant 0.000000e+00 : f32
      %751 = vector.broadcast %cst_151 : f32 to vector<8x128xf32>
      %c0_152 = arith.constant 0 : index
      %c0_153 = arith.constant 0 : index
      %752 = vector.load %arg13[%c0_152, %c0_153] : memref<8x128xf32, #tpu.memory_space<vmem>>, vector<8x128xf32>
      tpu.vector_store %arg13[%c0_152, %c0_153], %751 {strides = array<i32>} : memref<8x128xf32, #tpu.memory_space<vmem>>, vector<8x128xf32>,
      %cst_154 = arith.constant 0.000000e+00 : f32
      %753 = vector.broadcast %cst_154 : f32 to vector<8x128xf32>
      %c0_155 = arith.constant 0 : index
      %c0_156 = arith.constant 0 : index
      %754 = vector.load %arg14[%c0_155, %c0_156] : memref<8x128xf32, #tpu.memory_space<vmem>>, vector<8x128xf32>
      tpu.vector_store %arg14[%c0_155, %c0_156], %753 {strides = array<i32>} : memref<8x128xf32, #tpu.memory_space<vmem>>, vector<8x128xf32>,
      %cst_157 = arith.constant 0.000000e+00 : f32
      %755 = vector.broadcast %cst_157 : f32 to vector<8x128xf32>
      %c0_158 = arith.constant 0 : index
      %c0_159 = arith.constant 0 : index
      %756 = vector.load %arg15[%c0_158, %c0_159] : memref<8x128xf32, #tpu.memory_space<vmem>>, vector<8x128xf32>
      tpu.vector_store %arg15[%c0_158, %c0_159], %755 {strides = array<i32>} : memref<8x128xf32, #tpu.memory_space<vmem>>, vector<8x128xf32>,
    } else {
    }
    %c0 = arith.constant 0 : index
    %c0_1 = arith.constant 0 : index
    %3 = vector.load %arg2[%c0, %c0_1] : memref<8x1xi32, #tpu.memory_space<vmem>>, vector<8x1xi32>
    %c0_2 = arith.constant 0 : index
    %c0_3 = arith.constant 0 : index
    %4 = vector.load %arg3[%c0_2, %c0_3] : memref<128x512xbf16, #tpu.memory_space<vmem>>, vector<128x512xbf16>
    %c0_4 = arith.constant 0 : index
    %c0_5 = arith.constant 0 : index
    %5 = vector.load %arg4[%c0_4, %c0_5] : memref<128x512xbf16, #tpu.memory_space<vmem>>, vector<128x512xbf16>
    %c0_6 = arith.constant 0 : index
    %c0_7 = arith.constant 0 : index
    %6 = vector.load %arg5[%c0_6, %c0_7] : memref<128x512xbf16, #tpu.memory_space<vmem>>, vector<128x512xbf16>
    %c0_8 = arith.constant 0 : index
    %c0_9 = arith.constant 0 : index
    %7 = vector.load %arg6[%c0_8, %c0_9] : memref<1x512xf32, #tpu.memory_space<vmem>>, vector<1x512xf32>
    %8 = vector.shape_cast %7 : vector<1x512xf32> to vector<1x512xf32>
    %9 = vector.broadcast %8 : vector<1x512xf32> to vector<8x512xf32>
    %c8_i32 = arith.constant 8 : i32
    %10 = arith.muli %arg0, %c8_i32 : i32
    %c0_10 = arith.constant 0 : index
    %c0_11 = arith.constant 0 : index
    %11 = vector.load %arg12[%c0_10, %c0_11] : memref<8x128xf32, #tpu.memory_space<vmem>>, vector<8x128xf32>
    %c0_12 = arith.constant 0 : index
    %c0_13 = arith.constant 0 : index
    %12 = vector.load %arg13[%c0_12, %c0_13] : memref<8x128xf32, #tpu.memory_space<vmem>>, vector<8x128xf32>
    %c0_14 = arith.constant 0 : index
    %c0_15 = arith.constant 0 : index
    %13 = vector.load %arg14[%c0_14, %c0_15] : memref<8x128xf32, #tpu.memory_space<vmem>>, vector<8x128xf32>
    %c0_16 = arith.constant 0 : index
    %c0_17 = arith.constant 0 : index
    %14 = vector.load %arg15[%c0_16, %c0_17] : memref<8x128xf32, #tpu.memory_space<vmem>>, vector<8x128xf32>
    %c0_i32_18 = arith.constant 0 : i32
    %15 = arith.addi %10, %c0_i32_18 : i32
    %16 = vector.broadcast %15 : i32 to vector<8x1xi32>
    %17 = arith.cmpi sgt, %3, %16 : vector<8x1xi32>
    %18 = arith.extui %17 : vector<8x1xi1> to vector<8x1xi32>
    %19 = arith.sitofp %18 : vector<8x1xi32> to vector<8x1xf32>
    %20 = arith.index_cast %c0_i32_18 : i32 to index
    %c0_19 = arith.constant 0 : index
    %c0_20 = arith.constant 0 : index
    %21 = vector.load %arg1[%20, %c0_19, %c0_20] : memref<8x8x512xf32, #tpu.memory_space<vmem>>, vector<1x8x512xf32>
    %22 = vector.shape_cast %21 : vector<1x8x512xf32> to vector<8x512xf32>
    %23 = arith.truncf %11 : vector<8x128xf32> to vector<8x128xbf16>
    %cst = arith.constant dense<0.000000e+00> : vector<8x512xf32>
    %24 = tpu.matmul %23, %4, %cst {dimension_numbers = #tpu.dot_dimension_numbers<[1], [0], [0], [1], [0, 0, 1, 1], [], []>} : vector<8x128xbf16>, vector<128x512xbf16>, vector<8x512xf32> -> vector<8x512xf32>
    %25 = arith.addf %22, %24 : vector<8x512xf32>
    %26 = vector.extract_strided_slice %25 {offsets = [0, 0], sizes = [8, 128], strides = [1, 1]} : vector<8x512xf32> to vector<8x128xf32>
    %27 = arith.negf %26 : vector<8x128xf32>
    %28 = math.exp %27 : vector<8x128xf32>
    %cst_21 = arith.constant 1.000000e+00 : f32
    %29 = vector.broadcast %cst_21 : f32 to vector<8x128xf32>
    %30 = arith.addf %29, %28 : vector<8x128xf32>
    %31 = arith.divf %29, %30 : vector<8x128xf32>
    %32 = vector.extract_strided_slice %25 {offsets = [0, 128], sizes = [8, 128], strides = [1, 1]} : vector<8x512xf32> to vector<8x128xf32>
    %33 = arith.negf %32 : vector<8x128xf32>
    %34 = math.exp %33 : vector<8x128xf32>
    %cst_22 = arith.constant 1.000000e+00 : f32
    %35 = vector.broadcast %cst_22 : f32 to vector<8x128xf32>
    %36 = arith.addf %35, %34 : vector<8x128xf32>
    %37 = arith.divf %35, %36 : vector<8x128xf32>
    %38 = vector.extract_strided_slice %25 {offsets = [0, 256], sizes = [8, 128], strides = [1, 1]} : vector<8x512xf32> to vector<8x128xf32>
    %39 = math.tanh %38 : vector<8x128xf32>
    %40 = vector.extract_strided_slice %25 {offsets = [0, 384], sizes = [8, 128], strides = [1, 1]} : vector<8x512xf32> to vector<8x128xf32>
    %41 = arith.negf %40 : vector<8x128xf32>
    %42 = math.exp %41 : vector<8x128xf32>
    %cst_23 = arith.constant 1.000000e+00 : f32
    %43 = vector.broadcast %cst_23 : f32 to vector<8x128xf32>
    %44 = arith.addf %43, %42 : vector<8x128xf32>
    %45 = arith.divf %43, %44 : vector<8x128xf32>
    %46 = arith.mulf %37, %12 : vector<8x128xf32>
    %47 = arith.mulf %31, %39 : vector<8x128xf32>
    %48 = arith.addf %46, %47 : vector<8x128xf32>
    %49 = math.tanh %48 : vector<8x128xf32>
    %50 = arith.mulf %45, %49 : vector<8x128xf32>
    %51 = arith.subf %48, %12 : vector<8x128xf32>
    %52 = vector.broadcast %19 : vector<8x1xf32> to vector<8x128xf32>
    %53 = arith.mulf %52, %51 : vector<8x128xf32>
    %54 = arith.addf %12, %53 : vector<8x128xf32>
    %55 = arith.subf %50, %11 : vector<8x128xf32>
    %56 = vector.broadcast %19 : vector<8x1xf32> to vector<8x128xf32>
    %57 = arith.mulf %56, %55 : vector<8x128xf32>
    %58 = arith.addf %11, %57 : vector<8x128xf32>
    %59 = arith.truncf %58 : vector<8x128xf32> to vector<8x128xbf16>
    %cst_24 = arith.constant dense<0.000000e+00> : vector<8x512xf32>
    %60 = tpu.matmul %59, %5, %cst_24 {dimension_numbers = #tpu.dot_dimension_numbers<[1], [0], [0], [1], [0, 0, 1, 1], [], []>} : vector<8x128xbf16>, vector<128x512xbf16>, vector<8x512xf32> -> vector<8x512xf32>
    %61 = arith.truncf %13 : vector<8x128xf32> to vector<8x128xbf16>
    %cst_25 = arith.constant dense<0.000000e+00> : vector<8x512xf32>
    %62 = tpu.matmul %61, %6, %cst_25 {dimension_numbers = #tpu.dot_dimension_numbers<[1], [0], [0], [1], [0, 0, 1, 1], [], []>} : vector<8x128xbf16>, vector<128x512xbf16>, vector<8x512xf32> -> vector<8x512xf32>
    %63 = arith.addf %60, %62 : vector<8x512xf32>
    %64 = arith.addf %63, %9 : vector<8x512xf32>
    %65 = vector.extract_strided_slice %64 {offsets = [0, 0], sizes = [8, 128], strides = [1, 1]} : vector<8x512xf32> to vector<8x128xf32>
    %66 = arith.negf %65 : vector<8x128xf32>
    %67 = math.exp %66 : vector<8x128xf32>
    %cst_26 = arith.constant 1.000000e+00 : f32
    %68 = vector.broadcast %cst_26 : f32 to vector<8x128xf32>
    %69 = arith.addf %68, %67 : vector<8x128xf32>
    %70 = arith.divf %68, %69 : vector<8x128xf32>
    %71 = vector.extract_strided_slice %64 {offsets = [0, 128], sizes = [8, 128], strides = [1, 1]} : vector<8x512xf32> to vector<8x128xf32>
    %72 = arith.negf %71 : vector<8x128xf32>
    %73 = math.exp %72 : vector<8x128xf32>
    %cst_27 = arith.constant 1.000000e+00 : f32
    %74 = vector.broadcast %cst_27 : f32 to vector<8x128xf32>
    %75 = arith.addf %74, %73 : vector<8x128xf32>
    %76 = arith.divf %74, %75 : vector<8x128xf32>
    %77 = vector.extract_strided_slice %64 {offsets = [0, 256], sizes = [8, 128], strides = [1, 1]} : vector<8x512xf32> to vector<8x128xf32>
    %78 = math.tanh %77 : vector<8x128xf32>
    %79 = vector.extract_strided_slice %64 {offsets = [0, 384], sizes = [8, 128], strides = [1, 1]} : vector<8x512xf32> to vector<8x128xf32>
    %80 = arith.negf %79 : vector<8x128xf32>
    %81 = math.exp %80 : vector<8x128xf32>
    %cst_28 = arith.constant 1.000000e+00 : f32
    %82 = vector.broadcast %cst_28 : f32 to vector<8x128xf32>
    %83 = arith.addf %82, %81 : vector<8x128xf32>
    %84 = arith.divf %82, %83 : vector<8x128xf32>
    %85 = arith.mulf %76, %14 : vector<8x128xf32>
    %86 = arith.mulf %70, %78 : vector<8x128xf32>
    %87 = arith.addf %85, %86 : vector<8x128xf32>
    %88 = math.tanh %87 : vector<8x128xf32>
    %89 = arith.mulf %84, %88 : vector<8x128xf32>
    %90 = arith.subf %87, %14 : vector<8x128xf32>
    %91 = vector.broadcast %19 : vector<8x1xf32> to vector<8x128xf32>
    %92 = arith.mulf %91, %90 : vector<8x128xf32>
    %93 = arith.addf %14, %92 : vector<8x128xf32>
    %94 = arith.subf %89, %13 : vector<8x128xf32>
    %95 = vector.broadcast %19 : vector<8x1xf32> to vector<8x128xf32>
    %96 = arith.mulf %95, %94 : vector<8x128xf32>
    %97 = arith.addf %13, %96 : vector<8x128xf32>
    %98 = vector.broadcast %19 : vector<8x1xf32> to vector<8x128xf32>
    %99 = arith.mulf %98, %89 : vector<8x128xf32>
    %100 = arith.index_cast %c0_i32_18 : i32 to index
    %c0_29 = arith.constant 0 : index
    %c0_30 = arith.constant 0 : index
    %101 = vector.load %arg16[%100, %c0_29, %c0_30] : memref<8x8x128xf32, #tpu.memory_space<vmem>>, vector<1x8x128xf32>
    %102 = vector.shape_cast %101 : vector<1x8x128xf32> to vector<8x128xf32>
    %103 = vector.shape_cast %99 : vector<8x128xf32> to vector<1x8x128xf32>
    tpu.vector_store %arg16[%100, %c0_29, %c0_30], %103 {strides = array<i32>} : memref<8x8x128xf32, #tpu.memory_space<vmem>>, vector<1x8x128xf32>,
    %c1_i32 = arith.constant 1 : i32
    %104 = arith.addi %10, %c1_i32 : i32
    %105 = vector.broadcast %104 : i32 to vector<8x1xi32>
    %106 = arith.cmpi sgt, %3, %105 : vector<8x1xi32>
    %107 = arith.extui %106 : vector<8x1xi1> to vector<8x1xi32>
    %108 = arith.sitofp %107 : vector<8x1xi32> to vector<8x1xf32>
    %109 = arith.index_cast %c1_i32 : i32 to index
    %c0_31 = arith.constant 0 : index
    %c0_32 = arith.constant 0 : index
    %110 = vector.load %arg1[%109, %c0_31, %c0_32] : memref<8x8x512xf32, #tpu.memory_space<vmem>>, vector<1x8x512xf32>
    %111 = vector.shape_cast %110 : vector<1x8x512xf32> to vector<8x512xf32>
    %112 = arith.truncf %58 : vector<8x128xf32> to vector<8x128xbf16>
    %cst_33 = arith.constant dense<0.000000e+00> : vector<8x512xf32>
    %113 = tpu.matmul %112, %4, %cst_33 {dimension_numbers = #tpu.dot_dimension_numbers<[1], [0], [0], [1], [0, 0, 1, 1], [], []>} : vector<8x128xbf16>, vector<128x512xbf16>, vector<8x512xf32> -> vector<8x512xf32>
    %114 = arith.addf %111, %113 : vector<8x512xf32>
    %115 = vector.extract_strided_slice %114 {offsets = [0, 0], sizes = [8, 128], strides = [1, 1]} : vector<8x512xf32> to vector<8x128xf32>
    %116 = arith.negf %115 : vector<8x128xf32>
    %117 = math.exp %116 : vector<8x128xf32>
    %cst_34 = arith.constant 1.000000e+00 : f32
    %118 = vector.broadcast %cst_34 : f32 to vector<8x128xf32>
    %119 = arith.addf %118, %117 : vector<8x128xf32>
    %120 = arith.divf %118, %119 : vector<8x128xf32>
    %121 = vector.extract_strided_slice %114 {offsets = [0, 128], sizes = [8, 128], strides = [1, 1]} : vector<8x512xf32> to vector<8x128xf32>
    %122 = arith.negf %121 : vector<8x128xf32>
    %123 = math.exp %122 : vector<8x128xf32>
    %cst_35 = arith.constant 1.000000e+00 : f32
    %124 = vector.broadcast %cst_35 : f32 to vector<8x128xf32>
    %125 = arith.addf %124, %123 : vector<8x128xf32>
    %126 = arith.divf %124, %125 : vector<8x128xf32>
    %127 = vector.extract_strided_slice %114 {offsets = [0, 256], sizes = [8, 128], strides = [1, 1]} : vector<8x512xf32> to vector<8x128xf32>
    %128 = math.tanh %127 : vector<8x128xf32>
    %129 = vector.extract_strided_slice %114 {offsets = [0, 384], sizes = [8, 128], strides = [1, 1]} : vector<8x512xf32> to vector<8x128xf32>
    %130 = arith.negf %129 : vector<8x128xf32>
    %131 = math.exp %130 : vector<8x128xf32>
    %cst_36 = arith.constant 1.000000e+00 : f32
    %132 = vector.broadcast %cst_36 : f32 to vector<8x128xf32>
    %133 = arith.addf %132, %131 : vector<8x128xf32>
    %134 = arith.divf %132, %133 : vector<8x128xf32>
    %135 = arith.mulf %126, %54 : vector<8x128xf32>
    %136 = arith.mulf %120, %128 : vector<8x128xf32>
    %137 = arith.addf %135, %136 : vector<8x128xf32>
    %138 = math.tanh %137 : vector<8x128xf32>
    %139 = arith.mulf %134, %138 : vector<8x128xf32>
    %140 = arith.subf %137, %54 : vector<8x128xf32>
    %141 = vector.broadcast %108 : vector<8x1xf32> to vector<8x128xf32>
    %142 = arith.mulf %141, %140 : vector<8x128xf32>
    %143 = arith.addf %54, %142 : vector<8x128xf32>
    %144 = arith.subf %139, %58 : vector<8x128xf32>
    %145 = vector.broadcast %108 : vector<8x1xf32> to vector<8x128xf32>
    %146 = arith.mulf %145, %144 : vector<8x128xf32>
    %147 = arith.addf %58, %146 : vector<8x128xf32>
    %148 = arith.truncf %147 : vector<8x128xf32> to vector<8x128xbf16>
    %cst_37 = arith.constant dense<0.000000e+00> : vector<8x512xf32>
    %149 = tpu.matmul %148, %5, %cst_37 {dimension_numbers = #tpu.dot_dimension_numbers<[1], [0], [0], [1], [0, 0, 1, 1], [], []>} : vector<8x128xbf16>, vector<128x512xbf16>, vector<8x512xf32> -> vector<8x512xf32>
    %150 = arith.truncf %97 : vector<8x128xf32> to vector<8x128xbf16>
    %cst_38 = arith.constant dense<0.000000e+00> : vector<8x512xf32>
    %151 = tpu.matmul %150, %6, %cst_38 {dimension_numbers = #tpu.dot_dimension_numbers<[1], [0], [0], [1], [0, 0, 1, 1], [], []>} : vector<8x128xbf16>, vector<128x512xbf16>, vector<8x512xf32> -> vector<8x512xf32>
    %152 = arith.addf %149, %151 : vector<8x512xf32>
    %153 = arith.addf %152, %9 : vector<8x512xf32>
    %154 = vector.extract_strided_slice %153 {offsets = [0, 0], sizes = [8, 128], strides = [1, 1]} : vector<8x512xf32> to vector<8x128xf32>
    %155 = arith.negf %154 : vector<8x128xf32>
    %156 = math.exp %155 : vector<8x128xf32>
    %cst_39 = arith.constant 1.000000e+00 : f32
    %157 = vector.broadcast %cst_39 : f32 to vector<8x128xf32>
    %158 = arith.addf %157, %156 : vector<8x128xf32>
    %159 = arith.divf %157, %158 : vector<8x128xf32>
    %160 = vector.extract_strided_slice %153 {offsets = [0, 128], sizes = [8, 128], strides = [1, 1]} : vector<8x512xf32> to vector<8x128xf32>
    %161 = arith.negf %160 : vector<8x128xf32>
    %162 = math.exp %161 : vector<8x128xf32>
    %cst_40 = arith.constant 1.000000e+00 : f32
    %163 = vector.broadcast %cst_40 : f32 to vector<8x128xf32>
    %164 = arith.addf %163, %162 : vector<8x128xf32>
    %165 = arith.divf %163, %164 : vector<8x128xf32>
    %166 = vector.extract_strided_slice %153 {offsets = [0, 256], sizes = [8, 128], strides = [1, 1]} : vector<8x512xf32> to vector<8x128xf32>
    %167 = math.tanh %166 : vector<8x128xf32>
    %168 = vector.extract_strided_slice %153 {offsets = [0, 384], sizes = [8, 128], strides = [1, 1]} : vector<8x512xf32> to vector<8x128xf32>
    %169 = arith.negf %168 : vector<8x128xf32>
    %170 = math.exp %169 : vector<8x128xf32>
    %cst_41 = arith.constant 1.000000e+00 : f32
    %171 = vector.broadcast %cst_41 : f32 to vector<8x128xf32>
    %172 = arith.addf %171, %170 : vector<8x128xf32>
    %173 = arith.divf %171, %172 : vector<8x128xf32>
    %174 = arith.mulf %165, %93 : vector<8x128xf32>
    %175 = arith.mulf %159, %167 : vector<8x128xf32>
    %176 = arith.addf %174, %175 : vector<8x128xf32>
    %177 = math.tanh %176 : vector<8x128xf32>
    %178 = arith.mulf %173, %177 : vector<8x128xf32>
    %179 = arith.subf %176, %93 : vector<8x128xf32>
    %180 = vector.broadcast %108 : vector<8x1xf32> to vector<8x128xf32>
    %181 = arith.mulf %180, %179 : vector<8x128xf32>
    %182 = arith.addf %93, %181 : vector<8x128xf32>
    %183 = arith.subf %178, %97 : vector<8x128xf32>
    %184 = vector.broadcast %108 : vector<8x1xf32> to vector<8x128xf32>
    %185 = arith.mulf %184, %183 : vector<8x128xf32>
    %186 = arith.addf %97, %185 : vector<8x128xf32>
    %187 = vector.broadcast %108 : vector<8x1xf32> to vector<8x128xf32>
    %188 = arith.mulf %187, %178 : vector<8x128xf32>
    %189 = arith.index_cast %c1_i32 : i32 to index
    %c0_42 = arith.constant 0 : index
    %c0_43 = arith.constant 0 : index
    %190 = vector.load %arg16[%189, %c0_42, %c0_43] : memref<8x8x128xf32, #tpu.memory_space<vmem>>, vector<1x8x128xf32>
    %191 = vector.shape_cast %190 : vector<1x8x128xf32> to vector<8x128xf32>
    %192 = vector.shape_cast %188 : vector<8x128xf32> to vector<1x8x128xf32>
    tpu.vector_store %arg16[%189, %c0_42, %c0_43], %192 {strides = array<i32>} : memref<8x8x128xf32, #tpu.memory_space<vmem>>, vector<1x8x128xf32>,
    %c2_i32 = arith.constant 2 : i32
    %193 = arith.addi %10, %c2_i32 : i32
    %194 = vector.broadcast %193 : i32 to vector<8x1xi32>
    %195 = arith.cmpi sgt, %3, %194 : vector<8x1xi32>
    %196 = arith.extui %195 : vector<8x1xi1> to vector<8x1xi32>
    %197 = arith.sitofp %196 : vector<8x1xi32> to vector<8x1xf32>
    %198 = arith.index_cast %c2_i32 : i32 to index
    %c0_44 = arith.constant 0 : index
    %c0_45 = arith.constant 0 : index
    %199 = vector.load %arg1[%198, %c0_44, %c0_45] : memref<8x8x512xf32, #tpu.memory_space<vmem>>, vector<1x8x512xf32>
    %200 = vector.shape_cast %199 : vector<1x8x512xf32> to vector<8x512xf32>
    %201 = arith.truncf %147 : vector<8x128xf32> to vector<8x128xbf16>
    %cst_46 = arith.constant dense<0.000000e+00> : vector<8x512xf32>
    %202 = tpu.matmul %201, %4, %cst_46 {dimension_numbers = #tpu.dot_dimension_numbers<[1], [0], [0], [1], [0, 0, 1, 1], [], []>} : vector<8x128xbf16>, vector<128x512xbf16>, vector<8x512xf32> -> vector<8x512xf32>
    %203 = arith.addf %200, %202 : vector<8x512xf32>
    %204 = vector.extract_strided_slice %203 {offsets = [0, 0], sizes = [8, 128], strides = [1, 1]} : vector<8x512xf32> to vector<8x128xf32>
    %205 = arith.negf %204 : vector<8x128xf32>
    %206 = math.exp %205 : vector<8x128xf32>
    %cst_47 = arith.constant 1.000000e+00 : f32
    %207 = vector.broadcast %cst_47 : f32 to vector<8x128xf32>
    %208 = arith.addf %207, %206 : vector<8x128xf32>
    %209 = arith.divf %207, %208 : vector<8x128xf32>
    %210 = vector.extract_strided_slice %203 {offsets = [0, 128], sizes = [8, 128], strides = [1, 1]} : vector<8x512xf32> to vector<8x128xf32>
    %211 = arith.negf %210 : vector<8x128xf32>
    %212 = math.exp %211 : vector<8x128xf32>
    %cst_48 = arith.constant 1.000000e+00 : f32
    %213 = vector.broadcast %cst_48 : f32 to vector<8x128xf32>
    %214 = arith.addf %213, %212 : vector<8x128xf32>
    %215 = arith.divf %213, %214 : vector<8x128xf32>
    %216 = vector.extract_strided_slice %203 {offsets = [0, 256], sizes = [8, 128], strides = [1, 1]} : vector<8x512xf32> to vector<8x128xf32>
    %217 = math.tanh %216 : vector<8x128xf32>
    %218 = vector.extract_strided_slice %203 {offsets = [0, 384], sizes = [8, 128], strides = [1, 1]} : vector<8x512xf32> to vector<8x128xf32>
    %219 = arith.negf %218 : vector<8x128xf32>
    %220 = math.exp %219 : vector<8x128xf32>
    %cst_49 = arith.constant 1.000000e+00 : f32
    %221 = vector.broadcast %cst_49 : f32 to vector<8x128xf32>
    %222 = arith.addf %221, %220 : vector<8x128xf32>
    %223 = arith.divf %221, %222 : vector<8x128xf32>
    %224 = arith.mulf %215, %143 : vector<8x128xf32>
    %225 = arith.mulf %209, %217 : vector<8x128xf32>
    %226 = arith.addf %224, %225 : vector<8x128xf32>
    %227 = math.tanh %226 : vector<8x128xf32>
    %228 = arith.mulf %223, %227 : vector<8x128xf32>
    %229 = arith.subf %226, %143 : vector<8x128xf32>
    %230 = vector.broadcast %197 : vector<8x1xf32> to vector<8x128xf32>
    %231 = arith.mulf %230, %229 : vector<8x128xf32>
    %232 = arith.addf %143, %231 : vector<8x128xf32>
    %233 = arith.subf %228, %147 : vector<8x128xf32>
    %234 = vector.broadcast %197 : vector<8x1xf32> to vector<8x128xf32>
    %235 = arith.mulf %234, %233 : vector<8x128xf32>
    %236 = arith.addf %147, %235 : vector<8x128xf32>
    %237 = arith.truncf %236 : vector<8x128xf32> to vector<8x128xbf16>
    %cst_50 = arith.constant dense<0.000000e+00> : vector<8x512xf32>
    %238 = tpu.matmul %237, %5, %cst_50 {dimension_numbers = #tpu.dot_dimension_numbers<[1], [0], [0], [1], [0, 0, 1, 1], [], []>} : vector<8x128xbf16>, vector<128x512xbf16>, vector<8x512xf32> -> vector<8x512xf32>
    %239 = arith.truncf %186 : vector<8x128xf32> to vector<8x128xbf16>
    %cst_51 = arith.constant dense<0.000000e+00> : vector<8x512xf32>
    %240 = tpu.matmul %239, %6, %cst_51 {dimension_numbers = #tpu.dot_dimension_numbers<[1], [0], [0], [1], [0, 0, 1, 1], [], []>} : vector<8x128xbf16>, vector<128x512xbf16>, vector<8x512xf32> -> vector<8x512xf32>
    %241 = arith.addf %238, %240 : vector<8x512xf32>
    %242 = arith.addf %241, %9 : vector<8x512xf32>
    %243 = vector.extract_strided_slice %242 {offsets = [0, 0], sizes = [8, 128], strides = [1, 1]} : vector<8x512xf32> to vector<8x128xf32>
    %244 = arith.negf %243 : vector<8x128xf32>
    %245 = math.exp %244 : vector<8x128xf32>
    %cst_52 = arith.constant 1.000000e+00 : f32
    %246 = vector.broadcast %cst_52 : f32 to vector<8x128xf32>
    %247 = arith.addf %246, %245 : vector<8x128xf32>
    %248 = arith.divf %246, %247 : vector<8x128xf32>
    %249 = vector.extract_strided_slice %242 {offsets = [0, 128], sizes = [8, 128], strides = [1, 1]} : vector<8x512xf32> to vector<8x128xf32>
    %250 = arith.negf %249 : vector<8x128xf32>
    %251 = math.exp %250 : vector<8x128xf32>
    %cst_53 = arith.constant 1.000000e+00 : f32
    %252 = vector.broadcast %cst_53 : f32 to vector<8x128xf32>
    %253 = arith.addf %252, %251 : vector<8x128xf32>
    %254 = arith.divf %252, %253 : vector<8x128xf32>
    %255 = vector.extract_strided_slice %242 {offsets = [0, 256], sizes = [8, 128], strides = [1, 1]} : vector<8x512xf32> to vector<8x128xf32>
    %256 = math.tanh %255 : vector<8x128xf32>
    %257 = vector.extract_strided_slice %242 {offsets = [0, 384], sizes = [8, 128], strides = [1, 1]} : vector<8x512xf32> to vector<8x128xf32>
    %258 = arith.negf %257 : vector<8x128xf32>
    %259 = math.exp %258 : vector<8x128xf32>
    %cst_54 = arith.constant 1.000000e+00 : f32
    %260 = vector.broadcast %cst_54 : f32 to vector<8x128xf32>
    %261 = arith.addf %260, %259 : vector<8x128xf32>
    %262 = arith.divf %260, %261 : vector<8x128xf32>
    %263 = arith.mulf %254, %182 : vector<8x128xf32>
    %264 = arith.mulf %248, %256 : vector<8x128xf32>
    %265 = arith.addf %263, %264 : vector<8x128xf32>
    %266 = math.tanh %265 : vector<8x128xf32>
    %267 = arith.mulf %262, %266 : vector<8x128xf32>
    %268 = arith.subf %265, %182 : vector<8x128xf32>
    %269 = vector.broadcast %197 : vector<8x1xf32> to vector<8x128xf32>
    %270 = arith.mulf %269, %268 : vector<8x128xf32>
    %271 = arith.addf %182, %270 : vector<8x128xf32>
    %272 = arith.subf %267, %186 : vector<8x128xf32>
    %273 = vector.broadcast %197 : vector<8x1xf32> to vector<8x128xf32>
    %274 = arith.mulf %273, %272 : vector<8x128xf32>
    %275 = arith.addf %186, %274 : vector<8x128xf32>
    %276 = vector.broadcast %197 : vector<8x1xf32> to vector<8x128xf32>
    %277 = arith.mulf %276, %267 : vector<8x128xf32>
    %278 = arith.index_cast %c2_i32 : i32 to index
    %c0_55 = arith.constant 0 : index
    %c0_56 = arith.constant 0 : index
    %279 = vector.load %arg16[%278, %c0_55, %c0_56] : memref<8x8x128xf32, #tpu.memory_space<vmem>>, vector<1x8x128xf32>
    %280 = vector.shape_cast %279 : vector<1x8x128xf32> to vector<8x128xf32>
    %281 = vector.shape_cast %277 : vector<8x128xf32> to vector<1x8x128xf32>
    tpu.vector_store %arg16[%278, %c0_55, %c0_56], %281 {strides = array<i32>} : memref<8x8x128xf32, #tpu.memory_space<vmem>>, vector<1x8x128xf32>,
    %c3_i32 = arith.constant 3 : i32
    %282 = arith.addi %10, %c3_i32 : i32
    %283 = vector.broadcast %282 : i32 to vector<8x1xi32>
    %284 = arith.cmpi sgt, %3, %283 : vector<8x1xi32>
    %285 = arith.extui %284 : vector<8x1xi1> to vector<8x1xi32>
    %286 = arith.sitofp %285 : vector<8x1xi32> to vector<8x1xf32>
    %287 = arith.index_cast %c3_i32 : i32 to index
    %c0_57 = arith.constant 0 : index
    %c0_58 = arith.constant 0 : index
    %288 = vector.load %arg1[%287, %c0_57, %c0_58] : memref<8x8x512xf32, #tpu.memory_space<vmem>>, vector<1x8x512xf32>
    %289 = vector.shape_cast %288 : vector<1x8x512xf32> to vector<8x512xf32>
    %290 = arith.truncf %236 : vector<8x128xf32> to vector<8x128xbf16>
    %cst_59 = arith.constant dense<0.000000e+00> : vector<8x512xf32>
    %291 = tpu.matmul %290, %4, %cst_59 {dimension_numbers = #tpu.dot_dimension_numbers<[1], [0], [0], [1], [0, 0, 1, 1], [], []>} : vector<8x128xbf16>, vector<128x512xbf16>, vector<8x512xf32> -> vector<8x512xf32>
    %292 = arith.addf %289, %291 : vector<8x512xf32>
    %293 = vector.extract_strided_slice %292 {offsets = [0, 0], sizes = [8, 128], strides = [1, 1]} : vector<8x512xf32> to vector<8x128xf32>
    %294 = arith.negf %293 : vector<8x128xf32>
    %295 = math.exp %294 : vector<8x128xf32>
    %cst_60 = arith.constant 1.000000e+00 : f32
    %296 = vector.broadcast %cst_60 : f32 to vector<8x128xf32>
    %297 = arith.addf %296, %295 : vector<8x128xf32>
    %298 = arith.divf %296, %297 : vector<8x128xf32>
    %299 = vector.extract_strided_slice %292 {offsets = [0, 128], sizes = [8, 128], strides = [1, 1]} : vector<8x512xf32> to vector<8x128xf32>
    %300 = arith.negf %299 : vector<8x128xf32>
    %301 = math.exp %300 : vector<8x128xf32>
    %cst_61 = arith.constant 1.000000e+00 : f32
    %302 = vector.broadcast %cst_61 : f32 to vector<8x128xf32>
    %303 = arith.addf %302, %301 : vector<8x128xf32>
    %304 = arith.divf %302, %303 : vector<8x128xf32>
    %305 = vector.extract_strided_slice %292 {offsets = [0, 256], sizes = [8, 128], strides = [1, 1]} : vector<8x512xf32> to vector<8x128xf32>
    %306 = math.tanh %305 : vector<8x128xf32>
    %307 = vector.extract_strided_slice %292 {offsets = [0, 384], sizes = [8, 128], strides = [1, 1]} : vector<8x512xf32> to vector<8x128xf32>
    %308 = arith.negf %307 : vector<8x128xf32>
    %309 = math.exp %308 : vector<8x128xf32>
    %cst_62 = arith.constant 1.000000e+00 : f32
    %310 = vector.broadcast %cst_62 : f32 to vector<8x128xf32>
    %311 = arith.addf %310, %309 : vector<8x128xf32>
    %312 = arith.divf %310, %311 : vector<8x128xf32>
    %313 = arith.mulf %304, %232 : vector<8x128xf32>
    %314 = arith.mulf %298, %306 : vector<8x128xf32>
    %315 = arith.addf %313, %314 : vector<8x128xf32>
    %316 = math.tanh %315 : vector<8x128xf32>
    %317 = arith.mulf %312, %316 : vector<8x128xf32>
    %318 = arith.subf %315, %232 : vector<8x128xf32>
    %319 = vector.broadcast %286 : vector<8x1xf32> to vector<8x128xf32>
    %320 = arith.mulf %319, %318 : vector<8x128xf32>
    %321 = arith.addf %232, %320 : vector<8x128xf32>
    %322 = arith.subf %317, %236 : vector<8x128xf32>
    %323 = vector.broadcast %286 : vector<8x1xf32> to vector<8x128xf32>
    %324 = arith.mulf %323, %322 : vector<8x128xf32>
    %325 = arith.addf %236, %324 : vector<8x128xf32>
    %326 = arith.truncf %325 : vector<8x128xf32> to vector<8x128xbf16>
    %cst_63 = arith.constant dense<0.000000e+00> : vector<8x512xf32>
    %327 = tpu.matmul %326, %5, %cst_63 {dimension_numbers = #tpu.dot_dimension_numbers<[1], [0], [0], [1], [0, 0, 1, 1], [], []>} : vector<8x128xbf16>, vector<128x512xbf16>, vector<8x512xf32> -> vector<8x512xf32>
    %328 = arith.truncf %275 : vector<8x128xf32> to vector<8x128xbf16>
    %cst_64 = arith.constant dense<0.000000e+00> : vector<8x512xf32>
    %329 = tpu.matmul %328, %6, %cst_64 {dimension_numbers = #tpu.dot_dimension_numbers<[1], [0], [0], [1], [0, 0, 1, 1], [], []>} : vector<8x128xbf16>, vector<128x512xbf16>, vector<8x512xf32> -> vector<8x512xf32>
    %330 = arith.addf %327, %329 : vector<8x512xf32>
    %331 = arith.addf %330, %9 : vector<8x512xf32>
    %332 = vector.extract_strided_slice %331 {offsets = [0, 0], sizes = [8, 128], strides = [1, 1]} : vector<8x512xf32> to vector<8x128xf32>
    %333 = arith.negf %332 : vector<8x128xf32>
    %334 = math.exp %333 : vector<8x128xf32>
    %cst_65 = arith.constant 1.000000e+00 : f32
    %335 = vector.broadcast %cst_65 : f32 to vector<8x128xf32>
    %336 = arith.addf %335, %334 : vector<8x128xf32>
    %337 = arith.divf %335, %336 : vector<8x128xf32>
    %338 = vector.extract_strided_slice %331 {offsets = [0, 128], sizes = [8, 128], strides = [1, 1]} : vector<8x512xf32> to vector<8x128xf32>
    %339 = arith.negf %338 : vector<8x128xf32>
    %340 = math.exp %339 : vector<8x128xf32>
    %cst_66 = arith.constant 1.000000e+00 : f32
    %341 = vector.broadcast %cst_66 : f32 to vector<8x128xf32>
    %342 = arith.addf %341, %340 : vector<8x128xf32>
    %343 = arith.divf %341, %342 : vector<8x128xf32>
    %344 = vector.extract_strided_slice %331 {offsets = [0, 256], sizes = [8, 128], strides = [1, 1]} : vector<8x512xf32> to vector<8x128xf32>
    %345 = math.tanh %344 : vector<8x128xf32>
    %346 = vector.extract_strided_slice %331 {offsets = [0, 384], sizes = [8, 128], strides = [1, 1]} : vector<8x512xf32> to vector<8x128xf32>
    %347 = arith.negf %346 : vector<8x128xf32>
    %348 = math.exp %347 : vector<8x128xf32>
    %cst_67 = arith.constant 1.000000e+00 : f32
    %349 = vector.broadcast %cst_67 : f32 to vector<8x128xf32>
    %350 = arith.addf %349, %348 : vector<8x128xf32>
    %351 = arith.divf %349, %350 : vector<8x128xf32>
    %352 = arith.mulf %343, %271 : vector<8x128xf32>
    %353 = arith.mulf %337, %345 : vector<8x128xf32>
    %354 = arith.addf %352, %353 : vector<8x128xf32>
    %355 = math.tanh %354 : vector<8x128xf32>
    %356 = arith.mulf %351, %355 : vector<8x128xf32>
    %357 = arith.subf %354, %271 : vector<8x128xf32>
    %358 = vector.broadcast %286 : vector<8x1xf32> to vector<8x128xf32>
    %359 = arith.mulf %358, %357 : vector<8x128xf32>
    %360 = arith.addf %271, %359 : vector<8x128xf32>
    %361 = arith.subf %356, %275 : vector<8x128xf32>
    %362 = vector.broadcast %286 : vector<8x1xf32> to vector<8x128xf32>
    %363 = arith.mulf %362, %361 : vector<8x128xf32>
    %364 = arith.addf %275, %363 : vector<8x128xf32>
    %365 = vector.broadcast %286 : vector<8x1xf32> to vector<8x128xf32>
    %366 = arith.mulf %365, %356 : vector<8x128xf32>
    %367 = arith.index_cast %c3_i32 : i32 to index
    %c0_68 = arith.constant 0 : index
    %c0_69 = arith.constant 0 : index
    %368 = vector.load %arg16[%367, %c0_68, %c0_69] : memref<8x8x128xf32, #tpu.memory_space<vmem>>, vector<1x8x128xf32>
    %369 = vector.shape_cast %368 : vector<1x8x128xf32> to vector<8x128xf32>
    %370 = vector.shape_cast %366 : vector<8x128xf32> to vector<1x8x128xf32>
    tpu.vector_store %arg16[%367, %c0_68, %c0_69], %370 {strides = array<i32>} : memref<8x8x128xf32, #tpu.memory_space<vmem>>, vector<1x8x128xf32>,
    %c4_i32 = arith.constant 4 : i32
    %371 = arith.addi %10, %c4_i32 : i32
    %372 = vector.broadcast %371 : i32 to vector<8x1xi32>
    %373 = arith.cmpi sgt, %3, %372 : vector<8x1xi32>
    %374 = arith.extui %373 : vector<8x1xi1> to vector<8x1xi32>
    %375 = arith.sitofp %374 : vector<8x1xi32> to vector<8x1xf32>
    %376 = arith.index_cast %c4_i32 : i32 to index
    %c0_70 = arith.constant 0 : index
    %c0_71 = arith.constant 0 : index
    %377 = vector.load %arg1[%376, %c0_70, %c0_71] : memref<8x8x512xf32, #tpu.memory_space<vmem>>, vector<1x8x512xf32>
    %378 = vector.shape_cast %377 : vector<1x8x512xf32> to vector<8x512xf32>
    %379 = arith.truncf %325 : vector<8x128xf32> to vector<8x128xbf16>
    %cst_72 = arith.constant dense<0.000000e+00> : vector<8x512xf32>
    %380 = tpu.matmul %379, %4, %cst_72 {dimension_numbers = #tpu.dot_dimension_numbers<[1], [0], [0], [1], [0, 0, 1, 1], [], []>} : vector<8x128xbf16>, vector<128x512xbf16>, vector<8x512xf32> -> vector<8x512xf32>
    %381 = arith.addf %378, %380 : vector<8x512xf32>
    %382 = vector.extract_strided_slice %381 {offsets = [0, 0], sizes = [8, 128], strides = [1, 1]} : vector<8x512xf32> to vector<8x128xf32>
    %383 = arith.negf %382 : vector<8x128xf32>
    %384 = math.exp %383 : vector<8x128xf32>
    %cst_73 = arith.constant 1.000000e+00 : f32
    %385 = vector.broadcast %cst_73 : f32 to vector<8x128xf32>
    %386 = arith.addf %385, %384 : vector<8x128xf32>
    %387 = arith.divf %385, %386 : vector<8x128xf32>
    %388 = vector.extract_strided_slice %381 {offsets = [0, 128], sizes = [8, 128], strides = [1, 1]} : vector<8x512xf32> to vector<8x128xf32>
    %389 = arith.negf %388 : vector<8x128xf32>
    %390 = math.exp %389 : vector<8x128xf32>
    %cst_74 = arith.constant 1.000000e+00 : f32
    %391 = vector.broadcast %cst_74 : f32 to vector<8x128xf32>
    %392 = arith.addf %391, %390 : vector<8x128xf32>
    %393 = arith.divf %391, %392 : vector<8x128xf32>
    %394 = vector.extract_strided_slice %381 {offsets = [0, 256], sizes = [8, 128], strides = [1, 1]} : vector<8x512xf32> to vector<8x128xf32>
    %395 = math.tanh %394 : vector<8x128xf32>
    %396 = vector.extract_strided_slice %381 {offsets = [0, 384], sizes = [8, 128], strides = [1, 1]} : vector<8x512xf32> to vector<8x128xf32>
    %397 = arith.negf %396 : vector<8x128xf32>
    %398 = math.exp %397 : vector<8x128xf32>
    %cst_75 = arith.constant 1.000000e+00 : f32
    %399 = vector.broadcast %cst_75 : f32 to vector<8x128xf32>
    %400 = arith.addf %399, %398 : vector<8x128xf32>
    %401 = arith.divf %399, %400 : vector<8x128xf32>
    %402 = arith.mulf %393, %321 : vector<8x128xf32>
    %403 = arith.mulf %387, %395 : vector<8x128xf32>
    %404 = arith.addf %402, %403 : vector<8x128xf32>
    %405 = math.tanh %404 : vector<8x128xf32>
    %406 = arith.mulf %401, %405 : vector<8x128xf32>
    %407 = arith.subf %404, %321 : vector<8x128xf32>
    %408 = vector.broadcast %375 : vector<8x1xf32> to vector<8x128xf32>
    %409 = arith.mulf %408, %407 : vector<8x128xf32>
    %410 = arith.addf %321, %409 : vector<8x128xf32>
    %411 = arith.subf %406, %325 : vector<8x128xf32>
    %412 = vector.broadcast %375 : vector<8x1xf32> to vector<8x128xf32>
    %413 = arith.mulf %412, %411 : vector<8x128xf32>
    %414 = arith.addf %325, %413 : vector<8x128xf32>
    %415 = arith.truncf %414 : vector<8x128xf32> to vector<8x128xbf16>
    %cst_76 = arith.constant dense<0.000000e+00> : vector<8x512xf32>
    %416 = tpu.matmul %415, %5, %cst_76 {dimension_numbers = #tpu.dot_dimension_numbers<[1], [0], [0], [1], [0, 0, 1, 1], [], []>} : vector<8x128xbf16>, vector<128x512xbf16>, vector<8x512xf32> -> vector<8x512xf32>
    %417 = arith.truncf %364 : vector<8x128xf32> to vector<8x128xbf16>
    %cst_77 = arith.constant dense<0.000000e+00> : vector<8x512xf32>
    %418 = tpu.matmul %417, %6, %cst_77 {dimension_numbers = #tpu.dot_dimension_numbers<[1], [0], [0], [1], [0, 0, 1, 1], [], []>} : vector<8x128xbf16>, vector<128x512xbf16>, vector<8x512xf32> -> vector<8x512xf32>
    %419 = arith.addf %416, %418 : vector<8x512xf32>
    %420 = arith.addf %419, %9 : vector<8x512xf32>
    %421 = vector.extract_strided_slice %420 {offsets = [0, 0], sizes = [8, 128], strides = [1, 1]} : vector<8x512xf32> to vector<8x128xf32>
    %422 = arith.negf %421 : vector<8x128xf32>
    %423 = math.exp %422 : vector<8x128xf32>
    %cst_78 = arith.constant 1.000000e+00 : f32
    %424 = vector.broadcast %cst_78 : f32 to vector<8x128xf32>
    %425 = arith.addf %424, %423 : vector<8x128xf32>
    %426 = arith.divf %424, %425 : vector<8x128xf32>
    %427 = vector.extract_strided_slice %420 {offsets = [0, 128], sizes = [8, 128], strides = [1, 1]} : vector<8x512xf32> to vector<8x128xf32>
    %428 = arith.negf %427 : vector<8x128xf32>
    %429 = math.exp %428 : vector<8x128xf32>
    %cst_79 = arith.constant 1.000000e+00 : f32
    %430 = vector.broadcast %cst_79 : f32 to vector<8x128xf32>
    %431 = arith.addf %430, %429 : vector<8x128xf32>
    %432 = arith.divf %430, %431 : vector<8x128xf32>
    %433 = vector.extract_strided_slice %420 {offsets = [0, 256], sizes = [8, 128], strides = [1, 1]} : vector<8x512xf32> to vector<8x128xf32>
    %434 = math.tanh %433 : vector<8x128xf32>
    %435 = vector.extract_strided_slice %420 {offsets = [0, 384], sizes = [8, 128], strides = [1, 1]} : vector<8x512xf32> to vector<8x128xf32>
    %436 = arith.negf %435 : vector<8x128xf32>
    %437 = math.exp %436 : vector<8x128xf32>
    %cst_80 = arith.constant 1.000000e+00 : f32
    %438 = vector.broadcast %cst_80 : f32 to vector<8x128xf32>
    %439 = arith.addf %438, %437 : vector<8x128xf32>
    %440 = arith.divf %438, %439 : vector<8x128xf32>
    %441 = arith.mulf %432, %360 : vector<8x128xf32>
    %442 = arith.mulf %426, %434 : vector<8x128xf32>
    %443 = arith.addf %441, %442 : vector<8x128xf32>
    %444 = math.tanh %443 : vector<8x128xf32>
    %445 = arith.mulf %440, %444 : vector<8x128xf32>
    %446 = arith.subf %443, %360 : vector<8x128xf32>
    %447 = vector.broadcast %375 : vector<8x1xf32> to vector<8x128xf32>
    %448 = arith.mulf %447, %446 : vector<8x128xf32>
    %449 = arith.addf %360, %448 : vector<8x128xf32>
    %450 = arith.subf %445, %364 : vector<8x128xf32>
    %451 = vector.broadcast %375 : vector<8x1xf32> to vector<8x128xf32>
    %452 = arith.mulf %451, %450 : vector<8x128xf32>
    %453 = arith.addf %364, %452 : vector<8x128xf32>
    %454 = vector.broadcast %375 : vector<8x1xf32> to vector<8x128xf32>
    %455 = arith.mulf %454, %445 : vector<8x128xf32>
    %456 = arith.index_cast %c4_i32 : i32 to index
    %c0_81 = arith.constant 0 : index
    %c0_82 = arith.constant 0 : index
    %457 = vector.load %arg16[%456, %c0_81, %c0_82] : memref<8x8x128xf32, #tpu.memory_space<vmem>>, vector<1x8x128xf32>
    %458 = vector.shape_cast %457 : vector<1x8x128xf32> to vector<8x128xf32>
    %459 = vector.shape_cast %455 : vector<8x128xf32> to vector<1x8x128xf32>
    tpu.vector_store %arg16[%456, %c0_81, %c0_82], %459 {strides = array<i32>} : memref<8x8x128xf32, #tpu.memory_space<vmem>>, vector<1x8x128xf32>,
    %c5_i32 = arith.constant 5 : i32
    %460 = arith.addi %10, %c5_i32 : i32
    %461 = vector.broadcast %460 : i32 to vector<8x1xi32>
    %462 = arith.cmpi sgt, %3, %461 : vector<8x1xi32>
    %463 = arith.extui %462 : vector<8x1xi1> to vector<8x1xi32>
    %464 = arith.sitofp %463 : vector<8x1xi32> to vector<8x1xf32>
    %465 = arith.index_cast %c5_i32 : i32 to index
    %c0_83 = arith.constant 0 : index
    %c0_84 = arith.constant 0 : index
    %466 = vector.load %arg1[%465, %c0_83, %c0_84] : memref<8x8x512xf32, #tpu.memory_space<vmem>>, vector<1x8x512xf32>
    %467 = vector.shape_cast %466 : vector<1x8x512xf32> to vector<8x512xf32>
    %468 = arith.truncf %414 : vector<8x128xf32> to vector<8x128xbf16>
    %cst_85 = arith.constant dense<0.000000e+00> : vector<8x512xf32>
    %469 = tpu.matmul %468, %4, %cst_85 {dimension_numbers = #tpu.dot_dimension_numbers<[1], [0], [0], [1], [0, 0, 1, 1], [], []>} : vector<8x128xbf16>, vector<128x512xbf16>, vector<8x512xf32> -> vector<8x512xf32>
    %470 = arith.addf %467, %469 : vector<8x512xf32>
    %471 = vector.extract_strided_slice %470 {offsets = [0, 0], sizes = [8, 128], strides = [1, 1]} : vector<8x512xf32> to vector<8x128xf32>
    %472 = arith.negf %471 : vector<8x128xf32>
    %473 = math.exp %472 : vector<8x128xf32>
    %cst_86 = arith.constant 1.000000e+00 : f32
    %474 = vector.broadcast %cst_86 : f32 to vector<8x128xf32>
    %475 = arith.addf %474, %473 : vector<8x128xf32>
    %476 = arith.divf %474, %475 : vector<8x128xf32>
    %477 = vector.extract_strided_slice %470 {offsets = [0, 128], sizes = [8, 128], strides = [1, 1]} : vector<8x512xf32> to vector<8x128xf32>
    %478 = arith.negf %477 : vector<8x128xf32>
    %479 = math.exp %478 : vector<8x128xf32>
    %cst_87 = arith.constant 1.000000e+00 : f32
    %480 = vector.broadcast %cst_87 : f32 to vector<8x128xf32>
    %481 = arith.addf %480, %479 : vector<8x128xf32>
    %482 = arith.divf %480, %481 : vector<8x128xf32>
    %483 = vector.extract_strided_slice %470 {offsets = [0, 256], sizes = [8, 128], strides = [1, 1]} : vector<8x512xf32> to vector<8x128xf32>
    %484 = math.tanh %483 : vector<8x128xf32>
    %485 = vector.extract_strided_slice %470 {offsets = [0, 384], sizes = [8, 128], strides = [1, 1]} : vector<8x512xf32> to vector<8x128xf32>
    %486 = arith.negf %485 : vector<8x128xf32>
    %487 = math.exp %486 : vector<8x128xf32>
    %cst_88 = arith.constant 1.000000e+00 : f32
    %488 = vector.broadcast %cst_88 : f32 to vector<8x128xf32>
    %489 = arith.addf %488, %487 : vector<8x128xf32>
    %490 = arith.divf %488, %489 : vector<8x128xf32>
    %491 = arith.mulf %482, %410 : vector<8x128xf32>
    %492 = arith.mulf %476, %484 : vector<8x128xf32>
    %493 = arith.addf %491, %492 : vector<8x128xf32>
    %494 = math.tanh %493 : vector<8x128xf32>
    %495 = arith.mulf %490, %494 : vector<8x128xf32>
    %496 = arith.subf %493, %410 : vector<8x128xf32>
    %497 = vector.broadcast %464 : vector<8x1xf32> to vector<8x128xf32>
    %498 = arith.mulf %497, %496 : vector<8x128xf32>
    %499 = arith.addf %410, %498 : vector<8x128xf32>
    %500 = arith.subf %495, %414 : vector<8x128xf32>
    %501 = vector.broadcast %464 : vector<8x1xf32> to vector<8x128xf32>
    %502 = arith.mulf %501, %500 : vector<8x128xf32>
    %503 = arith.addf %414, %502 : vector<8x128xf32>
    %504 = arith.truncf %503 : vector<8x128xf32> to vector<8x128xbf16>
    %cst_89 = arith.constant dense<0.000000e+00> : vector<8x512xf32>
    %505 = tpu.matmul %504, %5, %cst_89 {dimension_numbers = #tpu.dot_dimension_numbers<[1], [0], [0], [1], [0, 0, 1, 1], [], []>} : vector<8x128xbf16>, vector<128x512xbf16>, vector<8x512xf32> -> vector<8x512xf32>
    %506 = arith.truncf %453 : vector<8x128xf32> to vector<8x128xbf16>
    %cst_90 = arith.constant dense<0.000000e+00> : vector<8x512xf32>
    %507 = tpu.matmul %506, %6, %cst_90 {dimension_numbers = #tpu.dot_dimension_numbers<[1], [0], [0], [1], [0, 0, 1, 1], [], []>} : vector<8x128xbf16>, vector<128x512xbf16>, vector<8x512xf32> -> vector<8x512xf32>
    %508 = arith.addf %505, %507 : vector<8x512xf32>
    %509 = arith.addf %508, %9 : vector<8x512xf32>
    %510 = vector.extract_strided_slice %509 {offsets = [0, 0], sizes = [8, 128], strides = [1, 1]} : vector<8x512xf32> to vector<8x128xf32>
    %511 = arith.negf %510 : vector<8x128xf32>
    %512 = math.exp %511 : vector<8x128xf32>
    %cst_91 = arith.constant 1.000000e+00 : f32
    %513 = vector.broadcast %cst_91 : f32 to vector<8x128xf32>
    %514 = arith.addf %513, %512 : vector<8x128xf32>
    %515 = arith.divf %513, %514 : vector<8x128xf32>
    %516 = vector.extract_strided_slice %509 {offsets = [0, 128], sizes = [8, 128], strides = [1, 1]} : vector<8x512xf32> to vector<8x128xf32>
    %517 = arith.negf %516 : vector<8x128xf32>
    %518 = math.exp %517 : vector<8x128xf32>
    %cst_92 = arith.constant 1.000000e+00 : f32
    %519 = vector.broadcast %cst_92 : f32 to vector<8x128xf32>
    %520 = arith.addf %519, %518 : vector<8x128xf32>
    %521 = arith.divf %519, %520 : vector<8x128xf32>
    %522 = vector.extract_strided_slice %509 {offsets = [0, 256], sizes = [8, 128], strides = [1, 1]} : vector<8x512xf32> to vector<8x128xf32>
    %523 = math.tanh %522 : vector<8x128xf32>
    %524 = vector.extract_strided_slice %509 {offsets = [0, 384], sizes = [8, 128], strides = [1, 1]} : vector<8x512xf32> to vector<8x128xf32>
    %525 = arith.negf %524 : vector<8x128xf32>
    %526 = math.exp %525 : vector<8x128xf32>
    %cst_93 = arith.constant 1.000000e+00 : f32
    %527 = vector.broadcast %cst_93 : f32 to vector<8x128xf32>
    %528 = arith.addf %527, %526 : vector<8x128xf32>
    %529 = arith.divf %527, %528 : vector<8x128xf32>
    %530 = arith.mulf %521, %449 : vector<8x128xf32>
    %531 = arith.mulf %515, %523 : vector<8x128xf32>
    %532 = arith.addf %530, %531 : vector<8x128xf32>
    %533 = math.tanh %532 : vector<8x128xf32>
    %534 = arith.mulf %529, %533 : vector<8x128xf32>
    %535 = arith.subf %532, %449 : vector<8x128xf32>
    %536 = vector.broadcast %464 : vector<8x1xf32> to vector<8x128xf32>
    %537 = arith.mulf %536, %535 : vector<8x128xf32>
    %538 = arith.addf %449, %537 : vector<8x128xf32>
    %539 = arith.subf %534, %453 : vector<8x128xf32>
    %540 = vector.broadcast %464 : vector<8x1xf32> to vector<8x128xf32>
    %541 = arith.mulf %540, %539 : vector<8x128xf32>
    %542 = arith.addf %453, %541 : vector<8x128xf32>
    %543 = vector.broadcast %464 : vector<8x1xf32> to vector<8x128xf32>
    %544 = arith.mulf %543, %534 : vector<8x128xf32>
    %545 = arith.index_cast %c5_i32 : i32 to index
    %c0_94 = arith.constant 0 : index
    %c0_95 = arith.constant 0 : index
    %546 = vector.load %arg16[%545, %c0_94, %c0_95] : memref<8x8x128xf32, #tpu.memory_space<vmem>>, vector<1x8x128xf32>
    %547 = vector.shape_cast %546 : vector<1x8x128xf32> to vector<8x128xf32>
    %548 = vector.shape_cast %544 : vector<8x128xf32> to vector<1x8x128xf32>
    tpu.vector_store %arg16[%545, %c0_94, %c0_95], %548 {strides = array<i32>} : memref<8x8x128xf32, #tpu.memory_space<vmem>>, vector<1x8x128xf32>,
    %c6_i32 = arith.constant 6 : i32
    %549 = arith.addi %10, %c6_i32 : i32
    %550 = vector.broadcast %549 : i32 to vector<8x1xi32>
    %551 = arith.cmpi sgt, %3, %550 : vector<8x1xi32>
    %552 = arith.extui %551 : vector<8x1xi1> to vector<8x1xi32>
    %553 = arith.sitofp %552 : vector<8x1xi32> to vector<8x1xf32>
    %554 = arith.index_cast %c6_i32 : i32 to index
    %c0_96 = arith.constant 0 : index
    %c0_97 = arith.constant 0 : index
    %555 = vector.load %arg1[%554, %c0_96, %c0_97] : memref<8x8x512xf32, #tpu.memory_space<vmem>>, vector<1x8x512xf32>
    %556 = vector.shape_cast %555 : vector<1x8x512xf32> to vector<8x512xf32>
    %557 = arith.truncf %503 : vector<8x128xf32> to vector<8x128xbf16>
    %cst_98 = arith.constant dense<0.000000e+00> : vector<8x512xf32>
    %558 = tpu.matmul %557, %4, %cst_98 {dimension_numbers = #tpu.dot_dimension_numbers<[1], [0], [0], [1], [0, 0, 1, 1], [], []>} : vector<8x128xbf16>, vector<128x512xbf16>, vector<8x512xf32> -> vector<8x512xf32>
    %559 = arith.addf %556, %558 : vector<8x512xf32>
    %560 = vector.extract_strided_slice %559 {offsets = [0, 0], sizes = [8, 128], strides = [1, 1]} : vector<8x512xf32> to vector<8x128xf32>
    %561 = arith.negf %560 : vector<8x128xf32>
    %562 = math.exp %561 : vector<8x128xf32>
    %cst_99 = arith.constant 1.000000e+00 : f32
    %563 = vector.broadcast %cst_99 : f32 to vector<8x128xf32>
    %564 = arith.addf %563, %562 : vector<8x128xf32>
    %565 = arith.divf %563, %564 : vector<8x128xf32>
    %566 = vector.extract_strided_slice %559 {offsets = [0, 128], sizes = [8, 128], strides = [1, 1]} : vector<8x512xf32> to vector<8x128xf32>
    %567 = arith.negf %566 : vector<8x128xf32>
    %568 = math.exp %567 : vector<8x128xf32>
    %cst_100 = arith.constant 1.000000e+00 : f32
    %569 = vector.broadcast %cst_100 : f32 to vector<8x128xf32>
    %570 = arith.addf %569, %568 : vector<8x128xf32>
    %571 = arith.divf %569, %570 : vector<8x128xf32>
    %572 = vector.extract_strided_slice %559 {offsets = [0, 256], sizes = [8, 128], strides = [1, 1]} : vector<8x512xf32> to vector<8x128xf32>
    %573 = math.tanh %572 : vector<8x128xf32>
    %574 = vector.extract_strided_slice %559 {offsets = [0, 384], sizes = [8, 128], strides = [1, 1]} : vector<8x512xf32> to vector<8x128xf32>
    %575 = arith.negf %574 : vector<8x128xf32>
    %576 = math.exp %575 : vector<8x128xf32>
    %cst_101 = arith.constant 1.000000e+00 : f32
    %577 = vector.broadcast %cst_101 : f32 to vector<8x128xf32>
    %578 = arith.addf %577, %576 : vector<8x128xf32>
    %579 = arith.divf %577, %578 : vector<8x128xf32>
    %580 = arith.mulf %571, %499 : vector<8x128xf32>
    %581 = arith.mulf %565, %573 : vector<8x128xf32>
    %582 = arith.addf %580, %581 : vector<8x128xf32>
    %583 = math.tanh %582 : vector<8x128xf32>
    %584 = arith.mulf %579, %583 : vector<8x128xf32>
    %585 = arith.subf %582, %499 : vector<8x128xf32>
    %586 = vector.broadcast %553 : vector<8x1xf32> to vector<8x128xf32>
    %587 = arith.mulf %586, %585 : vector<8x128xf32>
    %588 = arith.addf %499, %587 : vector<8x128xf32>
    %589 = arith.subf %584, %503 : vector<8x128xf32>
    %590 = vector.broadcast %553 : vector<8x1xf32> to vector<8x128xf32>
    %591 = arith.mulf %590, %589 : vector<8x128xf32>
    %592 = arith.addf %503, %591 : vector<8x128xf32>
    %593 = arith.truncf %592 : vector<8x128xf32> to vector<8x128xbf16>
    %cst_102 = arith.constant dense<0.000000e+00> : vector<8x512xf32>
    %594 = tpu.matmul %593, %5, %cst_102 {dimension_numbers = #tpu.dot_dimension_numbers<[1], [0], [0], [1], [0, 0, 1, 1], [], []>} : vector<8x128xbf16>, vector<128x512xbf16>, vector<8x512xf32> -> vector<8x512xf32>
    %595 = arith.truncf %542 : vector<8x128xf32> to vector<8x128xbf16>
    %cst_103 = arith.constant dense<0.000000e+00> : vector<8x512xf32>
    %596 = tpu.matmul %595, %6, %cst_103 {dimension_numbers = #tpu.dot_dimension_numbers<[1], [0], [0], [1], [0, 0, 1, 1], [], []>} : vector<8x128xbf16>, vector<128x512xbf16>, vector<8x512xf32> -> vector<8x512xf32>
    %597 = arith.addf %594, %596 : vector<8x512xf32>
    %598 = arith.addf %597, %9 : vector<8x512xf32>
    %599 = vector.extract_strided_slice %598 {offsets = [0, 0], sizes = [8, 128], strides = [1, 1]} : vector<8x512xf32> to vector<8x128xf32>
    %600 = arith.negf %599 : vector<8x128xf32>
    %601 = math.exp %600 : vector<8x128xf32>
    %cst_104 = arith.constant 1.000000e+00 : f32
    %602 = vector.broadcast %cst_104 : f32 to vector<8x128xf32>
    %603 = arith.addf %602, %601 : vector<8x128xf32>
    %604 = arith.divf %602, %603 : vector<8x128xf32>
    %605 = vector.extract_strided_slice %598 {offsets = [0, 128], sizes = [8, 128], strides = [1, 1]} : vector<8x512xf32> to vector<8x128xf32>
    %606 = arith.negf %605 : vector<8x128xf32>
    %607 = math.exp %606 : vector<8x128xf32>
    %cst_105 = arith.constant 1.000000e+00 : f32
    %608 = vector.broadcast %cst_105 : f32 to vector<8x128xf32>
    %609 = arith.addf %608, %607 : vector<8x128xf32>
    %610 = arith.divf %608, %609 : vector<8x128xf32>
    %611 = vector.extract_strided_slice %598 {offsets = [0, 256], sizes = [8, 128], strides = [1, 1]} : vector<8x512xf32> to vector<8x128xf32>
    %612 = math.tanh %611 : vector<8x128xf32>
    %613 = vector.extract_strided_slice %598 {offsets = [0, 384], sizes = [8, 128], strides = [1, 1]} : vector<8x512xf32> to vector<8x128xf32>
    %614 = arith.negf %613 : vector<8x128xf32>
    %615 = math.exp %614 : vector<8x128xf32>
    %cst_106 = arith.constant 1.000000e+00 : f32
    %616 = vector.broadcast %cst_106 : f32 to vector<8x128xf32>
    %617 = arith.addf %616, %615 : vector<8x128xf32>
    %618 = arith.divf %616, %617 : vector<8x128xf32>
    %619 = arith.mulf %610, %538 : vector<8x128xf32>
    %620 = arith.mulf %604, %612 : vector<8x128xf32>
    %621 = arith.addf %619, %620 : vector<8x128xf32>
    %622 = math.tanh %621 : vector<8x128xf32>
    %623 = arith.mulf %618, %622 : vector<8x128xf32>
    %624 = arith.subf %621, %538 : vector<8x128xf32>
    %625 = vector.broadcast %553 : vector<8x1xf32> to vector<8x128xf32>
    %626 = arith.mulf %625, %624 : vector<8x128xf32>
    %627 = arith.addf %538, %626 : vector<8x128xf32>
    %628 = arith.subf %623, %542 : vector<8x128xf32>
    %629 = vector.broadcast %553 : vector<8x1xf32> to vector<8x128xf32>
    %630 = arith.mulf %629, %628 : vector<8x128xf32>
    %631 = arith.addf %542, %630 : vector<8x128xf32>
    %632 = vector.broadcast %553 : vector<8x1xf32> to vector<8x128xf32>
    %633 = arith.mulf %632, %623 : vector<8x128xf32>
    %634 = arith.index_cast %c6_i32 : i32 to index
    %c0_107 = arith.constant 0 : index
    %c0_108 = arith.constant 0 : index
    %635 = vector.load %arg16[%634, %c0_107, %c0_108] : memref<8x8x128xf32, #tpu.memory_space<vmem>>, vector<1x8x128xf32>
    %636 = vector.shape_cast %635 : vector<1x8x128xf32> to vector<8x128xf32>
    %637 = vector.shape_cast %633 : vector<8x128xf32> to vector<1x8x128xf32>
    tpu.vector_store %arg16[%634, %c0_107, %c0_108], %637 {strides = array<i32>} : memref<8x8x128xf32, #tpu.memory_space<vmem>>, vector<1x8x128xf32>,
    %c7_i32 = arith.constant 7 : i32
    %638 = arith.addi %10, %c7_i32 : i32
    %639 = vector.broadcast %638 : i32 to vector<8x1xi32>
    %640 = arith.cmpi sgt, %3, %639 : vector<8x1xi32>
    %641 = arith.extui %640 : vector<8x1xi1> to vector<8x1xi32>
    %642 = arith.sitofp %641 : vector<8x1xi32> to vector<8x1xf32>
    %643 = arith.index_cast %c7_i32 : i32 to index
    %c0_109 = arith.constant 0 : index
    %c0_110 = arith.constant 0 : index
    %644 = vector.load %arg1[%643, %c0_109, %c0_110] : memref<8x8x512xf32, #tpu.memory_space<vmem>>, vector<1x8x512xf32>
    %645 = vector.shape_cast %644 : vector<1x8x512xf32> to vector<8x512xf32>
    %646 = arith.truncf %592 : vector<8x128xf32> to vector<8x128xbf16>
    %cst_111 = arith.constant dense<0.000000e+00> : vector<8x512xf32>
    %647 = tpu.matmul %646, %4, %cst_111 {dimension_numbers = #tpu.dot_dimension_numbers<[1], [0], [0], [1], [0, 0, 1, 1], [], []>} : vector<8x128xbf16>, vector<128x512xbf16>, vector<8x512xf32> -> vector<8x512xf32>
    %648 = arith.addf %645, %647 : vector<8x512xf32>
    %649 = vector.extract_strided_slice %648 {offsets = [0, 0], sizes = [8, 128], strides = [1, 1]} : vector<8x512xf32> to vector<8x128xf32>
    %650 = arith.negf %649 : vector<8x128xf32>
    %651 = math.exp %650 : vector<8x128xf32>
    %cst_112 = arith.constant 1.000000e+00 : f32
    %652 = vector.broadcast %cst_112 : f32 to vector<8x128xf32>
    %653 = arith.addf %652, %651 : vector<8x128xf32>
    %654 = arith.divf %652, %653 : vector<8x128xf32>
    %655 = vector.extract_strided_slice %648 {offsets = [0, 128], sizes = [8, 128], strides = [1, 1]} : vector<8x512xf32> to vector<8x128xf32>
    %656 = arith.negf %655 : vector<8x128xf32>
    %657 = math.exp %656 : vector<8x128xf32>
    %cst_113 = arith.constant 1.000000e+00 : f32
    %658 = vector.broadcast %cst_113 : f32 to vector<8x128xf32>
    %659 = arith.addf %658, %657 : vector<8x128xf32>
    %660 = arith.divf %658, %659 : vector<8x128xf32>
    %661 = vector.extract_strided_slice %648 {offsets = [0, 256], sizes = [8, 128], strides = [1, 1]} : vector<8x512xf32> to vector<8x128xf32>
    %662 = math.tanh %661 : vector<8x128xf32>
    %663 = vector.extract_strided_slice %648 {offsets = [0, 384], sizes = [8, 128], strides = [1, 1]} : vector<8x512xf32> to vector<8x128xf32>
    %664 = arith.negf %663 : vector<8x128xf32>
    %665 = math.exp %664 : vector<8x128xf32>
    %cst_114 = arith.constant 1.000000e+00 : f32
    %666 = vector.broadcast %cst_114 : f32 to vector<8x128xf32>
    %667 = arith.addf %666, %665 : vector<8x128xf32>
    %668 = arith.divf %666, %667 : vector<8x128xf32>
    %669 = arith.mulf %660, %588 : vector<8x128xf32>
    %670 = arith.mulf %654, %662 : vector<8x128xf32>
    %671 = arith.addf %669, %670 : vector<8x128xf32>
    %672 = math.tanh %671 : vector<8x128xf32>
    %673 = arith.mulf %668, %672 : vector<8x128xf32>
    %674 = arith.subf %671, %588 : vector<8x128xf32>
    %675 = vector.broadcast %642 : vector<8x1xf32> to vector<8x128xf32>
    %676 = arith.mulf %675, %674 : vector<8x128xf32>
    %677 = arith.addf %588, %676 : vector<8x128xf32>
    %678 = arith.subf %673, %592 : vector<8x128xf32>
    %679 = vector.broadcast %642 : vector<8x1xf32> to vector<8x128xf32>
    %680 = arith.mulf %679, %678 : vector<8x128xf32>
    %681 = arith.addf %592, %680 : vector<8x128xf32>
    %682 = arith.truncf %681 : vector<8x128xf32> to vector<8x128xbf16>
    %cst_115 = arith.constant dense<0.000000e+00> : vector<8x512xf32>
    %683 = tpu.matmul %682, %5, %cst_115 {dimension_numbers = #tpu.dot_dimension_numbers<[1], [0], [0], [1], [0, 0, 1, 1], [], []>} : vector<8x128xbf16>, vector<128x512xbf16>, vector<8x512xf32> -> vector<8x512xf32>
    %684 = arith.truncf %631 : vector<8x128xf32> to vector<8x128xbf16>
    %cst_116 = arith.constant dense<0.000000e+00> : vector<8x512xf32>
    %685 = tpu.matmul %684, %6, %cst_116 {dimension_numbers = #tpu.dot_dimension_numbers<[1], [0], [0], [1], [0, 0, 1, 1], [], []>} : vector<8x128xbf16>, vector<128x512xbf16>, vector<8x512xf32> -> vector<8x512xf32>
    %686 = arith.addf %683, %685 : vector<8x512xf32>
    %687 = arith.addf %686, %9 : vector<8x512xf32>
    %688 = vector.extract_strided_slice %687 {offsets = [0, 0], sizes = [8, 128], strides = [1, 1]} : vector<8x512xf32> to vector<8x128xf32>
    %689 = arith.negf %688 : vector<8x128xf32>
    %690 = math.exp %689 : vector<8x128xf32>
    %cst_117 = arith.constant 1.000000e+00 : f32
    %691 = vector.broadcast %cst_117 : f32 to vector<8x128xf32>
    %692 = arith.addf %691, %690 : vector<8x128xf32>
    %693 = arith.divf %691, %692 : vector<8x128xf32>
    %694 = vector.extract_strided_slice %687 {offsets = [0, 128], sizes = [8, 128], strides = [1, 1]} : vector<8x512xf32> to vector<8x128xf32>
    %695 = arith.negf %694 : vector<8x128xf32>
    %696 = math.exp %695 : vector<8x128xf32>
    %cst_118 = arith.constant 1.000000e+00 : f32
    %697 = vector.broadcast %cst_118 : f32 to vector<8x128xf32>
    %698 = arith.addf %697, %696 : vector<8x128xf32>
    %699 = arith.divf %697, %698 : vector<8x128xf32>
    %700 = vector.extract_strided_slice %687 {offsets = [0, 256], sizes = [8, 128], strides = [1, 1]} : vector<8x512xf32> to vector<8x128xf32>
    %701 = math.tanh %700 : vector<8x128xf32>
    %702 = vector.extract_strided_slice %687 {offsets = [0, 384], sizes = [8, 128], strides = [1, 1]} : vector<8x512xf32> to vector<8x128xf32>
    %703 = arith.negf %702 : vector<8x128xf32>
    %704 = math.exp %703 : vector<8x128xf32>
    %cst_119 = arith.constant 1.000000e+00 : f32
    %705 = vector.broadcast %cst_119 : f32 to vector<8x128xf32>
    %706 = arith.addf %705, %704 : vector<8x128xf32>
    %707 = arith.divf %705, %706 : vector<8x128xf32>
    %708 = arith.mulf %699, %627 : vector<8x128xf32>
    %709 = arith.mulf %693, %701 : vector<8x128xf32>
    %710 = arith.addf %708, %709 : vector<8x128xf32>
    %711 = math.tanh %710 : vector<8x128xf32>
    %712 = arith.mulf %707, %711 : vector<8x128xf32>
    %713 = arith.subf %710, %627 : vector<8x128xf32>
    %714 = vector.broadcast %642 : vector<8x1xf32> to vector<8x128xf32>
    %715 = arith.mulf %714, %713 : vector<8x128xf32>
    %716 = arith.addf %627, %715 : vector<8x128xf32>
    %717 = arith.subf %712, %631 : vector<8x128xf32>
    %718 = vector.broadcast %642 : vector<8x1xf32> to vector<8x128xf32>
    %719 = arith.mulf %718, %717 : vector<8x128xf32>
    %720 = arith.addf %631, %719 : vector<8x128xf32>
    %721 = vector.broadcast %642 : vector<8x1xf32> to vector<8x128xf32>
    %722 = arith.mulf %721, %712 : vector<8x128xf32>
    %723 = arith.index_cast %c7_i32 : i32 to index
    %c0_120 = arith.constant 0 : index
    %c0_121 = arith.constant 0 : index
    %724 = vector.load %arg16[%723, %c0_120, %c0_121] : memref<8x8x128xf32, #tpu.memory_space<vmem>>, vector<1x8x128xf32>
    %725 = vector.shape_cast %724 : vector<1x8x128xf32> to vector<8x128xf32>
    %726 = vector.shape_cast %722 : vector<8x128xf32> to vector<1x8x128xf32>
    tpu.vector_store %arg16[%723, %c0_120, %c0_121], %726 {strides = array<i32>} : memref<8x8x128xf32, #tpu.memory_space<vmem>>, vector<1x8x128xf32>,
    %c8_i32_122 = arith.constant 8 : i32
    %c0_123 = arith.constant 0 : index
    %c0_124 = arith.constant 0 : index
    %727 = vector.load %arg12[%c0_123, %c0_124] : memref<8x128xf32, #tpu.memory_space<vmem>>, vector<8x128xf32>
    tpu.vector_store %arg12[%c0_123, %c0_124], %681 {strides = array<i32>} : memref<8x128xf32, #tpu.memory_space<vmem>>, vector<8x128xf32>,
    %c0_125 = arith.constant 0 : index
    %c0_126 = arith.constant 0 : index
    %728 = vector.load %arg13[%c0_125, %c0_126] : memref<8x128xf32, #tpu.memory_space<vmem>>, vector<8x128xf32>
    tpu.vector_store %arg13[%c0_125, %c0_126], %677 {strides = array<i32>} : memref<8x128xf32, #tpu.memory_space<vmem>>, vector<8x128xf32>,
    %c0_127 = arith.constant 0 : index
    %c0_128 = arith.constant 0 : index
    %729 = vector.load %arg14[%c0_127, %c0_128] : memref<8x128xf32, #tpu.memory_space<vmem>>, vector<8x128xf32>
    tpu.vector_store %arg14[%c0_127, %c0_128], %720 {strides = array<i32>} : memref<8x128xf32, #tpu.memory_space<vmem>>, vector<8x128xf32>,
    %c0_129 = arith.constant 0 : index
    %c0_130 = arith.constant 0 : index
    %730 = vector.load %arg15[%c0_129, %c0_130] : memref<8x128xf32, #tpu.memory_space<vmem>>, vector<8x128xf32>
    tpu.vector_store %arg15[%c0_129, %c0_130], %716 {strides = array<i32>} : memref<8x128xf32, #tpu.memory_space<vmem>>, vector<8x128xf32>,
    %c0_131 = arith.constant 0 : index
    %c0_132 = arith.constant 0 : index
    %c0_133 = arith.constant 0 : index
    %731 = vector.load %arg16[%c0_131, %c0_132, %c0_133] : memref<8x8x128xf32, #tpu.memory_space<vmem>>, vector<8x8x128xf32>
    %732 = vector.shape_cast %731 : vector<8x8x128xf32> to vector<64x128xf32>
    %733 = arith.truncf %732 : vector<64x128xf32> to vector<64x128xbf16>
    %c0_134 = arith.constant 0 : index
    %c0_135 = arith.constant 0 : index
    %734 = vector.load %arg7[%c0_134, %c0_135] : memref<128x128xbf16, #tpu.memory_space<vmem>>, vector<128x128xbf16>
    %cst_136 = arith.constant dense<0.000000e+00> : vector<64x128xf32>
    %735 = tpu.matmul %733, %734, %cst_136 {dimension_numbers = #tpu.dot_dimension_numbers<[1], [0], [0], [1], [0, 0, 1, 1], [], []>} : vector<64x128xbf16>, vector<128x128xbf16>, vector<64x128xf32> -> vector<64x128xf32>
    %c0_137 = arith.constant 0 : index
    %c0_138 = arith.constant 0 : index
    %736 = vector.load %arg8[%c0_137, %c0_138] : memref<1x128xf32, #tpu.memory_space<vmem>>, vector<1x128xf32>
    %737 = vector.broadcast %736 : vector<1x128xf32> to vector<64x128xf32>
    %738 = arith.addf %735, %737 : vector<64x128xf32>
    %cst_139 = arith.constant 0.000000e+00 : f32
    %739 = vector.broadcast %cst_139 : f32 to vector<64x128xf32>
    %740 = arith.maximumf %738, %739 : vector<64x128xf32>
    %741 = arith.truncf %740 : vector<64x128xf32> to vector<64x128xbf16>
    %c0_140 = arith.constant 0 : index
    %c0_141 = arith.constant 0 : index
    %742 = vector.load %arg9[%c0_140, %c0_141] : memref<128x128xbf16, #tpu.memory_space<vmem>>, vector<128x128xbf16>
    %cst_142 = arith.constant dense<0.000000e+00> : vector<64x128xf32>
    %743 = tpu.matmul %741, %742, %cst_142 {dimension_numbers = #tpu.dot_dimension_numbers<[1], [0], [0], [1], [0, 0, 1, 1], [], []>} : vector<64x128xbf16>, vector<128x128xbf16>, vector<64x128xf32> -> vector<64x128xf32>
    %c0_143 = arith.constant 0 : index
    %c0_144 = arith.constant 0 : index
    %744 = vector.load %arg10[%c0_143, %c0_144] : memref<1x128xf32, #tpu.memory_space<vmem>>, vector<1x128xf32>
    %745 = vector.broadcast %744 : vector<1x128xf32> to vector<64x128xf32>
    %746 = arith.addf %743, %745 : vector<64x128xf32>
    %747 = vector.shape_cast %746 : vector<64x128xf32> to vector<8x8x128xf32>
    %c0_145 = arith.constant 0 : index
    %c0_146 = arith.constant 0 : index
    %c0_147 = arith.constant 0 : index
    %748 = vector.load %arg11[%c0_145, %c0_146, %c0_147] : memref<8x8x128xf32, #tpu.memory_space<vmem>>, vector<8x8x128xf32>
    tpu.vector_store %arg11[%c0_145, %c0_146, %c0_147], %747 {strides = array<i32>} : memref<8x8x128xf32, #tpu.memory_space<vmem>>, vector<8x8x128xf32>,
    return
  }
  func.func @transform_0(%arg0: i32) -> (i32, i32, i32) {
    %c0_i32 = arith.constant 0 : i32
    %c0_i32_0 = arith.constant 0 : i32
    %c0_i32_1 = arith.constant 0 : i32
    return %arg0, %c0_i32, %c0_i32_0 : i32, i32, i32
  }
  func.func @transform_1(%arg0: i32) -> (i32, i32) {
    %c0_i32 = arith.constant 0 : i32
    %c0_i32_0 = arith.constant 0 : i32
    %c0_i32_1 = arith.constant 0 : i32
    return %c0_i32, %c0_i32_0 : i32, i32
  }
  func.func @transform_2(%arg0: i32) -> (i32, i32) {
    %c0_i32 = arith.constant 0 : i32
    %c0_i32_0 = arith.constant 0 : i32
    %c0_i32_1 = arith.constant 0 : i32
    return %c0_i32, %c0_i32_0 : i32, i32
  }
  func.func @transform_3(%arg0: i32) -> (i32, i32) {
    %c0_i32 = arith.constant 0 : i32
    %c0_i32_0 = arith.constant 0 : i32
    %c0_i32_1 = arith.constant 0 : i32
    return %c0_i32, %c0_i32_0 : i32, i32
  }
  func.func @transform_4(%arg0: i32) -> (i32, i32) {
    %c0_i32 = arith.constant 0 : i32
    %c0_i32_0 = arith.constant 0 : i32
    %c0_i32_1 = arith.constant 0 : i32
    return %c0_i32, %c0_i32_0 : i32, i32
  }
  func.func @transform_5(%arg0: i32) -> (i32, i32) {
    %c0_i32 = arith.constant 0 : i32
    %c0_i32_0 = arith.constant 0 : i32
    %c0_i32_1 = arith.constant 0 : i32
    return %c0_i32, %c0_i32_0 : i32, i32
  }
  func.func @transform_6(%arg0: i32) -> (i32, i32) {
    %c0_i32 = arith.constant 0 : i32
    %c0_i32_0 = arith.constant 0 : i32
    %c0_i32_1 = arith.constant 0 : i32
    return %c0_i32, %c0_i32_0 : i32, i32
  }
  func.func @transform_7(%arg0: i32) -> (i32, i32) {
    %c0_i32 = arith.constant 0 : i32
    %c0_i32_0 = arith.constant 0 : i32
    %c0_i32_1 = arith.constant 0 : i32
    return %c0_i32, %c0_i32_0 : i32, i32
  }
  func.func @transform_8(%arg0: i32) -> (i32, i32) {
    %c0_i32 = arith.constant 0 : i32
    %c0_i32_0 = arith.constant 0 : i32
    %c0_i32_1 = arith.constant 0 : i32
    return %c0_i32, %c0_i32_0 : i32, i32
  }
  func.func @transform_9(%arg0: i32) -> (i32, i32) {
    %c0_i32 = arith.constant 0 : i32
    %c0_i32_0 = arith.constant 0 : i32
    %c0_i32_1 = arith.constant 0 : i32
    return %c0_i32, %c0_i32_0 : i32, i32
  }
  func.func @transform_10(%arg0: i32) -> (i32, i32, i32) {
    %c0_i32 = arith.constant 0 : i32
    %c0_i32_0 = arith.constant 0 : i32
    %c0_i32_1 = arith.constant 0 : i32
    return %arg0, %c0_i32, %c0_i32_0 : i32, i32, i32
  }
}

</mosaic_0001>

<bundles_post_ra>
// kernel: tpu_custom_call.1
= control target key start
LH: loop header
LB: loop body
LE: loop exit
PB: predicated region body
PF: predicated region fallthrough
CT: control target
= control target key end

     0   :  { %s7553_s0 = inlined_call_operand.hbm [shape: f32[16,8,512], index: 0, kind: input, shape index: {}]   ;;  %s7554_s1 = inlined_call_operand.vmem [shape: s32[8,1], index: 1, kind: input, shape index: {}]   ;;  %s7555_s2 = inlined_call_operand.hbm [shape: bf16[128,512], index: 2, kind: input, shape index: {}]   ;;  %s7556_s3 = inlined_call_operand.hbm [shape: bf16[128,512], index: 3, kind: input, shape index: {}]   ;;  %s7557_s4 = inlined_call_operand.hbm [shape: bf16[128,512], index: 4, kind: input, shape index: {}]   ;;  %s7558_s5 = inlined_call_operand.vmem [shape: f32[1,512], index: 5, kind: input, shape index: {}]   ;;  %s7559_s6 = inlined_call_operand.hbm [shape: bf16[128,128], index: 6, kind: input, shape index: {}]   ;;  %s7560_s7 = inlined_call_operand.vmem [shape: f32[1,128], index: 7, kind: input, shape index: {}]   ;;  %s7561_s8 = inlined_call_operand.hbm [shape: bf16[128,128], index: 8, kind: input, shape index: {}]   ;;  %s7562_s9 = inlined_call_operand.vmem [shape: f32[1,128], index: 9, kind: input, shape index: {}]   ;;  %s7563_s10 = inlined_call_operand.hbm [shape: f32[16,8,128], index: 10, kind: output, shape index: {}]  }
   0x1   :  { %7847 = sst [smem:[#allocation93_spill]] %s7555_s2 }
   0x2   :  { %7848 = sst [smem:[#allocation94_spill]] %s7556_s3 }
   0x3   :  { %7849 = sst [smem:[#allocation95_spill]] %s7557_s4 }
   0x4   :  { %7850 = sst [smem:[#allocation96_spill]] %s7559_s6 }
   0x5   :  { %15 = vsyncpa [#allocation8], 0 }
   0x6   :  { %17 = vsyncpa [#allocation8 + $0x1], 0 }
   0x7   :  { %18 = vsyncpa [#allocation11], 0 }
   0x8   :  { %19 = vsyncpa [#allocation14], 0 }
   0x9   :  { %20 = vsyncpa [#allocation17], 0 }
   0xa   :  { %21 = vsyncpa [#allocation9], 0 }
   0xb   :  { %23 = vsyncpa [#allocation9 + $0x1], 0  ;;  %s5507_s13 = smov 0   ;;  %s5509_s14 = smov 0  }
   0xc   :  { %s5511_s15 = smov 0   ;;  %s5513_s16 = smov 0  }
   0xd LB: > { %s5434_s17 = smov [#allocation10]   ;;  %s5528_s19 = sadd.s32 4294967295, %s5432_s16   ;;  %s5432_s16 = sphi %s5513_s16, %s8303_s16   ;;  %s5428_s15 = sphi %s5511_s15, %s8302_s15   ;;  %s5424_s14 = sphi %s5509_s14, %s8301_s14   ;;  %s5420_s13 = sphi %s5507_s13, %s8300_s13  }
   0xe   : > { %s290_s18 = sshll.u32 %s5434_s17, 4  ;;  %p4181_p0 = scmp.ge.s32.totalorder %s5432_s16, 1  ;;  %s291_s18 = int_to_ptr.vmem [resolvable:$true] %s290_s18 }
   0xf   : > { %p7564_p1 = scmp.eq.s32.totalorder %s5528_s19, 0  ;;  %p275_p2 = scmp.lt.s32.totalorder %s5432_s16, 3 }
  0x10   : > { %s5435_s21 = smov [#allocation13]   ;;  %s5436_s24 = smov [#allocation12]  }
  0x11   : > { %p5534_p4 = pnand %p4181_p0, %p275_p2  ;;  %s316_s22 = sshll.u32 %s5435_s21, 4  ;;  %s5547_s22 = int_to_ptr.vmem [resolvable:$true] %s316_s22 }
  0x12   : > { %s303_s25 = sshll.u32 %s5436_s24, 4  ;;  %s5209_s27 = scalar_lea.vmem %s291_s18, 4096  ;;  %s5549_s25 = int_to_ptr.vmem [resolvable:$true] %s303_s25 }
  0x13   : > { %s7851_s20 = scalar_select %p5534_p4, 1, 0 }
  0x14   : > { %p4504_p6 = pneg %p5534_p4  ;;  %p5210_p9 = scmp.ne.s32.totalorder %s291_s18, %s5209_s27 }
  0x15   : > { %p5217_p12 = scmp.lt.s32.totalorder %s291_s18, %s291_s18  ;;  %p5218_p13 = scmp.lt.s32.totalorder %s5209_s27, %s5209_s27 }
  0x16   : > { %p5543_p7 = pnand %p4504_p6, %p7564_p1 }
  0x17   : > { %p5219_p0 = por %p5218_p13, %p5217_p12 }
  0x18   : > { %p5553_p8 = pneg %p5543_p7 }
  0x1a   : > { %p5212_p10 = pnand %p5210_p9, %p5553_p8 }
  0x1c   : > { %p5213_p11 = pneg %p5212_p10 }
  0x1e   : > { %p5220_p2 = pnand %p5219_p0, %p5213_p11 }
  0x20   : > { %5223 = shalt.err (!%p5220_p2)
}
  0x21   : > { %s5437_s28 = smov 256   ;;  %s5438_s29 = smov 16  }
  0x22   : > { %s7854_s2 = sld [smem:[#allocation93_spill]]  ;;  %s5235_s12 = scalar_lea.vmem %s5547_s22, 4096 }
  0x23   : > { %p5236_p6 = scmp.ne.s32.totalorder %s5547_s22, %s5235_s12  ;;  %p5243_p11 = scmp.lt.s32.totalorder %s5547_s22, %s5547_s22 }
  0x24   : > { %p5244_p12 = scmp.lt.s32.totalorder %s5235_s12, %s5235_s12 }
  0x25   : > { %p5238_p9 = pnand %p5236_p6, %p5553_p8 }
  0x26   : > { %p5245_p13 = por %p5244_p12, %p5243_p11 }
  0x27   : > { %p5239_p10 = pneg %p5238_p9 }
  0x28   : > { %4507 = dma.hbm_to_vmem [thread:$0]  (!%p5543_p7), %s7854_s2, 4096, %s291_s18, [#allocation11], %s5437_s28, %s5437_s28, %s5438_s29  }
  0x29   : > { %p5246_p0 = pnand %p5245_p13, %p5239_p10 }
  0x2b   : > { %5249 = shalt.err (!%p5246_p0)
}
  0x2c   : > { %s7855_s4 = sld [smem:[#allocation95_spill]]  ;;  %s5261_s18 = scalar_lea.vmem %s5549_s25, 4096 }
  0x2d   : > { %p5262_p2 = scmp.ne.s32.totalorder %s5549_s25, %s5261_s18  ;;  %p5269_p11 = scmp.lt.s32.totalorder %s5549_s25, %s5549_s25 }
  0x2e   : > { %p5270_p10 = scmp.lt.s32.totalorder %s5261_s18, %s5261_s18 }
  0x2f   : > { %p5264_p6 = pnand %p5262_p2, %p5553_p8 }
  0x30   : > { %p5271_p12 = por %p5270_p10, %p5269_p11 }
  0x31   : > { %p5265_p9 = pneg %p5264_p6 }
  0x32   : > { %4513 = dma.hbm_to_vmem [thread:$0]  (!%p5543_p7), %s7855_s4, 4096, %s5547_s22, [#allocation14], %s5437_s28, %s5437_s28, %s5438_s29  }
  0x33   : > { %p5272_p13 = pnand %p5271_p12, %p5265_p9 }
  0x35   : > { %5275 = shalt.err (!%p5272_p13)
}
  0x36   : > { %s7856_s3 = sld [smem:[#allocation94_spill]]  ;;  %s5439_s22 = smov [#allocation15]  }
  0x37   : > { %s332_s30 = sshll.u32 %s5439_s22, 4  ;;  %s333_s30 = int_to_ptr.vmem [resolvable:$true] %s332_s30 }
  0x38   : > { %s5287_s11 = scalar_lea.vmem %s333_s30, 1024  ;;  %p5295_p5 = scmp.lt.s32.totalorder %s333_s30, %s333_s30 }
  0x39   : > { %p5288_p0 = scmp.ne.s32.totalorder %s333_s30, %s5287_s11  ;;  %p5296_p11 = scmp.lt.s32.totalorder %s5287_s11, %s5287_s11 }
  0x3b   : > { %p5290_p2 = pnand %p5288_p0, %p5553_p8  ;;  %p5297_p9 = por %p5296_p11, %p5295_p5 }
  0x3c   : > { %4510 = dma.hbm_to_vmem [thread:$0]  (!%p5543_p7), %s7856_s3, 4096, %s5549_s25, [#allocation11], %s5437_s28, %s5437_s28, %s5438_s29  }
  0x3d   : > { %p5291_p6 = pneg %p5290_p2 }
  0x3f   : > { %p5298_p10 = pnand %p5297_p9, %p5291_p6 }
  0x41   : > { %5301 = shalt.err (!%p5298_p10)
}
  0x42   : > { %s5440_s12 = smov 64   ;;  %s5441_s17 = smov 4  }
  0x43   : > { %s7857_s6 = sld [smem:[#allocation96_spill]]  ;;  %s5442_s28 = smov [#allocation16]  }
  0x44   : > { %s348_s29 = sshll.u32 %s5442_s28, 4  ;;  %s349_s29 = int_to_ptr.vmem [resolvable:$true] %s348_s29 }
  0x45   : > { %s5313_s18 = scalar_lea.vmem %s349_s29, 1024  ;;  %p5321_p5 = scmp.lt.s32.totalorder %s349_s29, %s349_s29 }
  0x46   : > { %p5314_p12 = scmp.ne.s32.totalorder %s349_s29, %s5313_s18  ;;  %p5322_p2 = scmp.lt.s32.totalorder %s5313_s18, %s5313_s18 }
  0x48   : > { %p5316_p13 = pnand %p5314_p12, %p5553_p8  ;;  %p5323_p6 = por %p5322_p2, %p5321_p5 }
  0x49   : > { %4516 = dma.hbm_to_vmem [thread:$0]  (!%p5543_p7), %s7857_s6, 1024, %s333_s30, [#allocation14], %s5440_s12, %s5440_s12, %s5441_s17  }
  0x4a   : > { %p5317_p0 = pneg %p5316_p13 }
  0x4c   : > { %p5324_p11 = pnand %p5323_p6, %p5317_p0 }
  0x4e   : > { %5327 = shalt.err (!%p5324_p11)
}
  0x4f   : > { %4519 = dma.hbm_to_vmem [thread:$0]  (!%p5543_p7), %s7561_s8, 1024, %s349_s29, [#allocation17], %s5440_s12, %s5440_s12, %s5441_s17  }
  0x50   : > { %s4180_s26 = sadd.s32 4294967294, %s5432_s16   ;;  %s5604_s23 = sadd.s32 1, %s5432_s16  }
  0x51   : > { %s36_s22 = sadd.s32 1, %s5428_s15  ;;  %s33_s30 = ssub.s32 %s5432_s16, %s5604_s23 }
  0x52   : > { %p43_p8 = scmp.ne.s32.totalorder %s5428_s15, %s5424_s14  ;;  %p34_p9 = scmp.eq.s32.totalorder %s33_s30, 0 }
  0x53   : > { %p44_p10 = scmp.eq.s32.totalorder %s5432_s16, 0  ;;  %p49_p12 = scmp.ne.s32.totalorder %s5424_s14, %s5420_s13 }
  0x54   : > { %p262_p13 = scmp.eq.s32.totalorder %s5528_s19, 1  ;;  %p268_p2 = scmp.eq.s32.totalorder %s4180_s26, 1 }
  0x55   : > { %s5616_s11 = scalar_select %p34_p9, %s5428_s15, %s36_s22  }
  0x56   : > { %p45_p0 = por %p44_p10, %p43_p8  ;;  %p5620_p5 = por %p7564_p1, %p49_p12 }
  0x57   : > { %p5624_p7 = por %p262_p13, %p43_p8  ;;  %p4533_p6 = scmp.lt.s32.totalorder %s5432_s16, 2 }
  0x58   : > { %s7858_s21 = scalar_select %p5620_p5, 1, 0 }
  0x59   : > { %s7859_s12 = scalar_select %p5624_p7, 1, 0 }
  0x5a   : > { %s365_s17 = sand.u32 1, %s5428_s15   ;;  %p5630_p11 = por %p268_p2, %p49_p12 }
  0x5b   : > { %s4188_s28 = sshll.u32 %s365_s17, 8  ;;  %s4406_s29 = sshll.u32 %s5432_s16, 12 }
  0x5c   : > { %s7860_s25 = scalar_select %p5630_p11, 1, 0 }
  0x5d   : > { %s5638_s27 = scalar_lea.hbm %s7553_s0, %s4406_s29  ;;  %s369_s22 = scalar_lea.vmem [#allocation7], %s4188_s28 }
  0x5e   : > { %s377_s30 = sshll.u32 %s369_s22, 4  ;;  %p5640_p8 = pnand %p4533_p6, %p45_p0  ;;  %s5644_s30 = int_to_ptr.vmem [resolvable:$true] %s377_s30 }
  0x5f   : > { %s5646_s2 = scalar_lea.sflag [#allocation8], %s365_s17  ;;  %s5328_s3 = scalar_lea.hbm %s5638_s27, 4096 }
  0x60   : > { %p5329_p9 = scmp.ne.s32.totalorder %s5638_s27, %s5328_s3  ;;  %p5330_p10 = pneg %p5640_p8 }
  0x61   : > { %s5333_s28 = scalar_lea.hbm %s7553_s0, 8192  ;;  %p5334_p0 = scmp.lt.s32.totalorder %s5638_s27, %s7553_s0 }
  0x62   : > { %p5331_p12 = pnand %p5330_p10, %p5329_p9  ;;  %p5335_p2 = scmp.lt.s32.totalorder %s5333_s28, %s5328_s3 }
  0x64   : > { %p5332_p13 = pneg %p5331_p12  ;;  %p5336_p6 = por %p5335_p2, %p5334_p0 }
  0x66   : > { %p5337_p3 = pnand %p5336_p6, %p5332_p13 }
  0x68   : > { %5340 = shalt.err (!%p5337_p3)
}
  0x69   : > { %s5341_s17 = scalar_lea.vmem %s5644_s30, 4096  ;;  %s5443_s4 = smov [#allocation7]  }
  0x6a   : > { %p5342_p1 = scmp.ne.s32.totalorder %s5644_s30, %s5341_s17  ;;  %s5346_s6 = sshll.u32 %s5443_s4, 4  ;;  %s5347_s6 = int_to_ptr.vmem [resolvable:$false] %s5346_s6 }
  0x6b   : > { %s5348_s29 = scalar_lea.vmem %s5347_s6, 8192  ;;  %p5349_p12 = scmp.lt.s32.totalorder %s5644_s30, %s5347_s6 }
  0x6c   : > { %p5344_p11 = pnand %p5342_p1, %p5330_p10  ;;  %p5350_p7 = scmp.lt.s32.totalorder %s5348_s29, %s5341_s17 }
  0x6e   : > { %p5345_p9 = pneg %p5344_p11  ;;  %p5351_p5 = por %p5350_p7, %p5349_p12 }
  0x70   : > { %p5352_p4 = pnand %p5351_p5, %p5345_p9 }
  0x72   : > { %5355 = shalt.err (!%p5352_p4)
}
  0x73   : > { %s5444_s3 = smov 512   ;;  %s5445_s18 = smov 32  }
  0x74   : > { %4523 = dma.hbm_to_vmem [thread:$0]  (!%p5640_p8), %s5638_s27, 4096, %s5644_s30, %s5646_s2, %s5444_s3, %s5444_s3, %s5445_s18  }
  0x75   : > { %p7862_p1 = scmp.ne.s32.totalorder %s7851_s20, 0 }
  0x77   : > { %389 = sbr.rel (%p7862_p1) target bundleno = 3151 (0xc4f), region = 60 }
  0x7c   : > { %s5670_s4 = sand.u32 1, %s5424_s14   ;;  %p7863_p3 = scmp.ne.s32.totalorder %s7858_s21, 0 }
  0x7d   : > { %s4193_s6 = sshll.u32 %s5670_s4, 8  ;;  %s392_s28 = scalar_lea.sflag [#allocation8], %s5670_s4 }
  0x7e   : > { %s5674_s24 = scalar_lea.vmem [#allocation7], %s4193_s6 }
  0x7f   : > { %5399 = dma.done.wait (%p7863_p3), %s392_s28, 4096  }
  0x80   : > { %5401 = vsyncadd (%p7863_p3), %s392_s28, 4294963200  ;;  %p7864_p4 = scmp.eq.s32.totalorder %s5528_s19, 0 }
  0x82   : > { %5403 = dma.done.wait (%p7864_p4), [#allocation11], 8192   ;;  %p7865_p5 = pmov %p7864_p4 }
  0x83   : > { %p7866_p7 = pmov %p7864_p4 }
  0x84   : > { %5405 = vsyncadd (%p7865_p5), [#allocation11], 4294959104 }
  0x85   : > { %5407 = dma.done.wait (%p7866_p7), [#allocation14], 5120   ;;  %p7867_p11 = pmov %p7864_p4 }
  0x86   : > { %p7868_p8 = pmov %p7864_p4 }
  0x87   : > { %5409 = vsyncadd (%p7867_p11), [#allocation14], 4294962176 }
  0x88   : > { %5411 = dma.done.wait (%p7868_p8), [#allocation17], 1024   ;;  %p7869_p10 = pmov %p7864_p4 }
  0x89   : > { %s4199_s2 = sshll.u32 %s5670_s4, 6  ;;  %p7870_p13 = scmp.ne.s32.totalorder %s5528_s19, 0 }
  0x8a   : > { %5413 = vsyncadd (%p7869_p10), [#allocation17], 4294966272  ;;  %s5693_s20 = scalar_lea.vmem [#allocation18], %s4199_s2 }
  0x8b   : > { %458 = sbr.rel (%p7870_p13) target bundleno = 147 (0x93), region = 88 }
  0x90   : > { %v5446_v0 = vmov 0.0  }
  0x91   : > { %459 = vst [vmem:[#allocation2] sm:$0xff] %v5446_v0  ;;  %460 = vst [vmem:[#allocation3] sm:$0xff] %v5446_v0 }
  0x92   : > { %461 = vst [vmem:[#allocation4] sm:$0xff] %v5446_v0  ;;  %462 = vst [vmem:[#allocation5] sm:$0xff] %v5446_v0 }
  0x93 PF: > { %v5697_v1 = vld [vmem:[#allocation10 + $0xe4] ss:$16 sps:$4 sm:$0xff]   ;;  %v5699_v2 = vld [vmem:[#allocation10 + $0xe0] ss:$16 sps:$4 sm:$0xff]   ;;  %v7570_v3 = vmov 0   ;;  %s5755_s21 = sshll.u32 %s5528_s19, 3 }
  0x94   : > { %788 = vmatprep.mubr.bf16.mxu0 %v7570_v3  ;;  %829 = vmatprep.mubr.bf16.mxu1 %v7570_v3  ;;  %v5704_v4 = vld [vmem:[#allocation10 + $0xc4] ss:$16 sps:$4 sm:$0xff]   ;;  %v5708_v5 = vld [vmem:[#allocation10 + $0xc0] ss:$16 sps:$4 sm:$0xff]   ;;  %v5714_v7 = vld [vmem:[#allocation10 + $0xec] ss:$16 sps:$4 sm:$0xff]   ;;  %v587_v24 = vstv %s5755_s21 }
  0x95   : > { %756 = vmatprep.subr.bf16.mxu0 %v5697_v1  ;;  %4588 = vset.pattern.permute.xlu0 %v7570_v3  ;;  %v5712_v6 = vld [vmem:[#allocation10 + $0xa4] ss:$16 sps:$4 sm:$0xff]   ;;  %v5716_v8 = vld [vmem:[#allocation10 + $0xe8] ss:$16 sps:$4 sm:$0xff]   ;;  %v5719_v9 = vld [vmem:[#allocation10 + $0xa0] ss:$16 sps:$4 sm:$0xff]  }
  0x96   : > { %757 = vmatpush1.bf16.msra.mxu0 %v5699_v2  ;;  %4589 = vset.pattern.permute.xlu1 %v7570_v3  ;;  %v5723_v10 = vld [vmem:[#allocation10 + $0x84] ss:$16 sps:$4 sm:$0xff]   ;;  %v5726_v11 = vld [vmem:[#allocation10 + $0xcc] ss:$16 sps:$4 sm:$0xff]   ;;  %v5728_v12 = vld [vmem:[#allocation10 + $0xc8] ss:$16 sps:$4 sm:$0xff]  }
  0x97   : > { %758 = vmatprep.subr.bf16.mxu0 %v5704_v4  ;;  %797 = vmatprep.subr.bf16.mxu1 %v5714_v7  ;;  %v5732_v13 = vld [vmem:[#allocation10 + $0x80] ss:$16 sps:$4 sm:$0xff]   ;;  %v5734_v14 = vld [vmem:[#allocation10 + $0x64] ss:$16 sps:$4 sm:$0xff]   ;;  %v5736_v15 = vld [vmem:[#allocation10 + $0xac] ss:$16 sps:$4 sm:$0xff]  }
  0x98   : > { %798 = vmatpush1.bf16.msra.mxu1 %v5716_v8  ;;  %v5740_v16 = vld [vmem:[#allocation10 + $0xa8] ss:$16 sps:$4 sm:$0xff]   ;;  %v5743_v17 = vld [vmem:[#allocation10 + $0x8c] ss:$16 sps:$4 sm:$0xff]   ;;  %v5746_v18 = vld [vmem:[#allocation10 + $0x60] ss:$16 sps:$4 sm:$0xff]  }
  0x99   : > { %799 = vmatprep.subr.bf16.mxu1 %v5726_v11  ;;  %v5749_v19 = vld [vmem:[#allocation10 + $0x44] ss:$16 sps:$4 sm:$0xff]   ;;  %v5752_v20 = vld [vmem:[#allocation10 + $0x88] ss:$16 sps:$4 sm:$0xff]   ;;  %v5758_v21 = vld [vmem:[#allocation10 + $0x6c] ss:$16 sps:$4 sm:$0xff]  }
  0x9a   : > { %759 = vmatpush1.bf16.msra.mxu0 %v5708_v5  ;;  %s1399_s27 = sadd.s32 1, %s5755_s21  ;;  %v5761_v22 = vld [vmem:[#allocation10 + $0x40] ss:$16 sps:$4 sm:$0xff]   ;;  %v5764_v23 = vld [vmem:[#allocation10 + $0x24] ss:$16 sps:$4 sm:$0xff]   ;;  %s2401_s22 = sadd.s32 4, %s5755_s21 }
  0x9b   : > { %760 = vmatprep.subr.bf16.mxu0 %v5712_v6  ;;  %v5769_v25 = vld [vmem:[#allocation10 + $0x68] ss:$16 sps:$4 sm:$0xff]   ;;  %v1400_v26 = vstv %s1399_s27  ;;  %v5772_v27 = vld [vmem:[#allocation10 + $0x4c] ss:$16 sps:$4 sm:$0xff]   ;;  %v5777_v28 = vld [vmem:[%s7554_s1] sm:$0xff]  ;;  %v7568_v32 = vmov 0.0   ;;  %v2402_v35 = vstv %s2401_s22 }
  0x9c   : > { %800 = vmatpush1.bf16.msra.mxu1 %v5728_v12  ;;  %7871 = vst [vmem:[#allocation24_spill] sm:$0xff] %v5777_v28  ;;  %v5780_v29 = vld [vmem:[#allocation10 + $0x20] ss:$16 sps:$4 sm:$0xff]   ;;  %vm588_vm0 = vcmp.gt.s32.totalorder %v5777_v28, %v587_v24  ;;  %v5784_v30 = vld [vmem:[#allocation10 + $0x4] ss:$16 sps:$4 sm:$0xff]   ;;  %vm1401_vm1 = vcmp.gt.s32.totalorder %v5777_v28, %v1400_v26  ;;  %s3069_s17 = sadd.s32 6, %s5755_s21  ;;  %vm2403_vm2 = vcmp.gt.s32.totalorder %v5777_v28, %v2402_v35 }
  0x9d   : > { %801 = vmatprep.subr.bf16.mxu1 %v5736_v15  ;;  %v5786_v31 = vld [vmem:[#allocation10 + $0x48] ss:$16 sps:$4 sm:$0xff]   ;;  %v4202_v33 = vsel %vm588_vm0, 1.0, %v7568_v32  ;;  %v5792_v34 = vld [vmem:[#allocation10 + $0x2c] ss:$16 sps:$4 sm:$0xff]   ;;  %v5796_v37 = vld [vmem:[#allocation2] sm:$0xff]  ;;  %v3070_v42 = vstv %s3069_s17 }
  0x9e   : > { %761 = vmatpush1.bf16.msra.mxu0 %v5719_v9  ;;  %v5794_v36 = vld [vmem:[#allocation10] ss:$16 sps:$4 sm:$0xff]   ;;  %869 = vperm.xlu0 %4588, %v4202_v33   ;;  %v5800_v38 = vld [vmem:[#allocation10 + $0x28] ss:$16 sps:$4 sm:$0xff]   ;;  %v4305_v39 = vsel %vm1401_vm1, 1.0, %v7568_v32  ;;  %v595_v44 = vpack.c.bf16 %v5796_v37, %v5796_v37  ;;  %v4338_v46 = vsel %vm2403_vm2, 1.0, %v7568_v32  ;;  %vm3071_vm3 = vcmp.gt.s32.totalorder %v5777_v28, %v3070_v42 }
  0x9f   : > { %762 = vmatprep.subr.bf16.mxu0 %v5723_v10  ;;  %v5803_v40 = vld [vmem:[#allocation13 + $0xe4] ss:$16 sps:$4 sm:$0xff]   ;;  %v5806_v41 = vld [vmem:[#allocation10 + $0xc] ss:$16 sps:$4 sm:$0xff]   ;;  %v5812_v43 = vld [vmem:[#allocation13 + $0xe0] ss:$16 sps:$4 sm:$0xff]  }
  0xa0   : > { %802 = vmatpush1.bf16.msra.mxu1 %v5740_v16  ;;  %v5816_v45 = vld [vmem:[#allocation10 + $0x8] ss:$16 sps:$4 sm:$0xff]   ;;  %v4360_v47 = vsel %vm3071_vm3, 1.0, %v7568_v32  ;;  %v5829_v48 = vld [vmem:[#allocation13 + $0xc4] ss:$16 sps:$4 sm:$0xff]   ;;  %s1733_s18 = sadd.s32 2, %s5755_s21 }
  0xa1   : > { %803 = vmatprep.subr.bf16.mxu1 %v5743_v17  ;;  %v5831_v49 = vld [vmem:[#allocation13 + $0xec] ss:$16 sps:$4 sm:$0xff]   ;;  %v5833_v50 = vld [vmem:[#allocation13 + $0xc0] ss:$16 sps:$4 sm:$0xff]   ;;  %v5835_v51 = vld [vmem:[#allocation13 + $0xe8] ss:$16 sps:$4 sm:$0xff]  }
  0xa2   : > { %763 = vmatpush1.bf16.msra.mxu0 %v5732_v13  ;;  %1522 = vperm.xlu0 %4588, %v4305_v39   ;;  %v5841_v52 = vld [vmem:[#allocation13 + $0xa4] ss:$16 sps:$4 sm:$0xff]   ;;  %v5843_v53 = vld [vmem:[#allocation13 + $0xcc] ss:$16 sps:$4 sm:$0xff]   ;;  %v5845_v54 = vld [vmem:[#allocation13 + $0xa0] ss:$16 sps:$4 sm:$0xff]  }
  0xa3   : > { %764 = vmatprep.subr.bf16.mxu0 %v5734_v14  ;;  %v5847_v55 = vld [vmem:[#allocation13 + $0xc8] ss:$16 sps:$4 sm:$0xff]   ;;  %v5853_v56 = vld [vmem:[#allocation13 + $0x84] ss:$16 sps:$4 sm:$0xff]   ;;  %v5855_v57 = vld [vmem:[#allocation13 + $0xac] ss:$16 sps:$4 sm:$0xff]  }
  0xa4   : > { %804 = vmatpush1.bf16.msra.mxu1 %v5752_v20  ;;  %7872 = vst [vmem:[#allocation25_spill] sm:$0xff] %v5853_v56  ;;  %v5857_v58 = vld [vmem:[#allocation13 + $0x80] ss:$16 sps:$4 sm:$0xff]   ;;  %v5859_v59 = vld [vmem:[#allocation13 + $0xa8] ss:$16 sps:$4 sm:$0xff]   ;;  %s2067_s6 = sadd.s32 3, %s5755_s21 }
  0xa5   : > { %805 = vmatprep.subr.bf16.mxu1 %v5758_v21  ;;  %7873 = vst [vmem:[#allocation26_spill] sm:$0xff] %v5857_v58  ;;  %7874 = vst [vmem:[#allocation27_spill] sm:$0xff] %v5859_v59  ;;  %v5865_v60 = vld [vmem:[#allocation13 + $0x64] ss:$16 sps:$4 sm:$0xff]   ;;  %v5867_v61 = vld [vmem:[#allocation13 + $0x8c] ss:$16 sps:$4 sm:$0xff]  }
  0xa6   : > { %765 = vmatpush1.bf16.msra.mxu0 %v5746_v18  ;;  %2524 = vperm.xlu0 %4588, %v4338_v46   ;;  %7875 = vst [vmem:[#allocation28_spill] sm:$0xff] %v5865_v60  ;;  %7876 = vst [vmem:[#allocation29_spill] sm:$0xff] %v5867_v61  ;;  %v5869_v62 = vld [vmem:[#allocation13 + $0x60] ss:$16 sps:$4 sm:$0xff]   ;;  %v5871_v63 = vld [vmem:[#allocation13 + $0x88] ss:$16 sps:$4 sm:$0xff]  }
  0xa7   : > { %766 = vmatprep.subr.bf16.mxu0 %v5749_v19  ;;  %7877 = vst [vmem:[#allocation30_spill] sm:$0xff] %v5869_v62  ;;  %7878 = vst [vmem:[#allocation31_spill] sm:$0xff] %v5871_v63  ;;  %v5877_v0 = vld [vmem:[#allocation13 + $0x44] ss:$16 sps:$4 sm:$0xff]   ;;  %v5879_v24 = vld [vmem:[#allocation13 + $0x6c] ss:$16 sps:$4 sm:$0xff]  }
  0xa8   : > { %806 = vmatpush1.bf16.msra.mxu1 %v5769_v25  ;;  %7879 = vst [vmem:[#allocation32_spill] sm:$0xff] %v5877_v0  ;;  %7880 = vst [vmem:[#allocation33_spill] sm:$0xff] %v5879_v24  ;;  %v5881_v26 = vld [vmem:[#allocation13 + $0x40] ss:$16 sps:$4 sm:$0xff]   ;;  %v5883_v33 = vld [vmem:[#allocation13 + $0x68] ss:$16 sps:$4 sm:$0xff]  }
  0xa9   : > { %807 = vmatprep.subr.bf16.mxu1 %v5772_v27  ;;  %7881 = vst [vmem:[#allocation34_spill] sm:$0xff] %v5881_v26  ;;  %7882 = vst [vmem:[#allocation35_spill] sm:$0xff] %v5883_v33  ;;  %v5889_v35 = vld [vmem:[#allocation13 + $0x24] ss:$16 sps:$4 sm:$0xff]   ;;  %v5891_v39 = vld [vmem:[#allocation13 + $0x4c] ss:$16 sps:$4 sm:$0xff]  }
  0xaa   : > { %767 = vmatpush1.bf16.msra.mxu0 %v5761_v22  ;;  %3192 = vperm.xlu0 %4588, %v4360_v47   ;;  %7883 = vst [vmem:[#allocation36_spill] sm:$0xff] %v5889_v35  ;;  %7884 = vst [vmem:[#allocation37_spill] sm:$0xff] %v5891_v39  ;;  %v5893_v42 = vld [vmem:[#allocation13 + $0x20] ss:$16 sps:$4 sm:$0xff]   ;;  %v5901_v46 = vld [vmem:[#allocation13 + $0x4] ss:$16 sps:$4 sm:$0xff]  }
  0xab   : > { %768 = vmatprep.subr.bf16.mxu0 %v5764_v23  ;;  %7885 = vst [vmem:[#allocation38_spill] sm:$0xff] %v5893_v42  ;;  %7887 = vst [vmem:[#allocation40_spill] sm:$0xff] %v5901_v46  ;;  %v5903_v47 = vld [vmem:[#allocation13 + $0x2c] ss:$16 sps:$4 sm:$0xff]   ;;  %v5905_v32 = vld [vmem:[#allocation13] ss:$16 sps:$4 sm:$0xff]  }
  0xac   : > { %808 = vmatpush1.bf16.msra.mxu1 %v5786_v31  ;;  %7888 = vst [vmem:[#allocation41_spill] sm:$0xff] %v5903_v47  ;;  %7889 = vst [vmem:[#allocation42_spill] sm:$0xff] %v5905_v32  ;;  %v5912_v28 = vld [vmem:[#allocation4] sm:$0xff]  ;;  %s2735_s28 = sadd.s32 5, %s5755_s21  ;;  %s3403_s2 = sadd.s32 7, %s5755_s21 }
  0xad   : > { %809 = vmatprep.subr.bf16.mxu1 %v5792_v34  ;;  %7891 = vst [vmem:[#allocation44_spill] sm:$0xff] %v5912_v28  ;;  %s4407_s26 = sshll.u32 %s5528_s19, 10  ;;  %s4059_s22 = sshll.u32 %s5693_s20, 4  ;;  %s7508_s22 = int_to_ptr.vmem [resolvable:$true] %s4059_s22 }
  0xae   : > { %769 = vmatpush1.bf16.msra.mxu0 %v5780_v29  ;;  %s7506_s3 = scalar_lea.hbm %s7563_s10, %s4407_s26  ;;  %s5356_s19 = scalar_lea.vmem %s7508_s22, 1024 }
  0xaf   : > { %770 = vmatprep.subr.bf16.mxu0 %v5784_v30  ;;  %p5357_p0 = scmp.ne.s32.totalorder %s7508_s22, %s5356_s19  ;;  %p8297_p2 = scmp.ne.s32.totalorder %s7859_s12, 0 }
  0xb0   : > { %810 = vmatpush1.bf16.msra.mxu1 %v5800_v38 }
  0xb1   : > { %811 = vmatprep.subr.bf16.mxu1 %v5806_v41  ;;  %p5358_p6 = pnand %p5357_p0, %p8297_p2 }
  0xb2   : > { %771 = vmatpush1.bf16.msra.mxu0 %v5794_v36 }
  0xb3   : > { %1039 = vmatprep.subr.bf16.mxu0 %v5803_v40  ;;  %p5359_p9 = pneg %p5358_p6 }
  0xb4   : > { %812 = vmatpush1.bf16.msra.mxu1 %v5816_v45 }
  0xb5   : > { %789 = vmatmul.mubr.bf16.vlgmr.msra.gmra.mxu0 %v595_v44  ;;  %1080 = vmatprep.subr.bf16.mxu1 %v5831_v49 }
  0xb6   : > { %1040 = vmatpush1.bf16.msra.mxu0 %v5812_v43  ;;  %1071 = vmatprep.mubr.bf16.mxu0 %v7570_v3 }
  0xb7   : > { %830 = vmatmul.mubr.bf16.vlgmr.msra.gmra.mxu1 %v595_v44  ;;  %1041 = vmatprep.subr.bf16.mxu0 %v5829_v48  ;;  %v5895_v44 = vld [vmem:[#allocation13 + $0x48] ss:$16 sps:$4 sm:$0xff]  }
  0xb8   : > { %1112 = vmatprep.mubr.bf16.mxu1 %v7570_v3  ;;  %1081 = vmatpush1.bf16.msra.mxu1 %v5835_v51  ;;  %7886 = vst [vmem:[#allocation39_spill] sm:$0xff] %v5895_v44  ;;  %v5907_v3 = vld [vmem:[#allocation13 + $0x28] ss:$16 sps:$4 sm:$0xff]  }
  0xb9   : > { %1082 = vmatprep.subr.bf16.mxu1 %v5843_v53  ;;  %7890 = vst [vmem:[#allocation43_spill] sm:$0xff] %v5907_v3 }
  0xba   : > { %1042 = vmatpush1.bf16.msra.mxu0 %v5833_v50 }
  0xbb   : > { %1043 = vmatprep.subr.bf16.mxu0 %v5841_v52 }
  0xbc   : > { %1083 = vmatpush1.bf16.msra.mxu1 %v5847_v55 }
  0xbd   : > { %1084 = vmatprep.subr.bf16.mxu1 %v5855_v57 }
  0xbe   : > { %1044 = vmatpush1.bf16.msra.mxu0 %v5845_v54 }
  0xbf   : > { %1045 = vmatprep.subr.bf16.mxu0 %v5853_v56 }
  0xc0   : > { %1085 = vmatpush1.bf16.msra.mxu1 %v5859_v59 }
  0xc1   : > { %1086 = vmatprep.subr.bf16.mxu1 %v5867_v61 }
  0xc2   : > { %1046 = vmatpush1.bf16.msra.mxu0 %v5857_v58 }
  0xc3   : > { %1047 = vmatprep.subr.bf16.mxu0 %v5865_v60 }
  0xc4   : > { %1087 = vmatpush1.bf16.msra.mxu1 %v5871_v63  ;;  %v593_v63 = vld [vmem:[%s5674_s24 + $0x10] sm:$0xff] }
  0xc5   : > { %1088 = vmatprep.subr.bf16.mxu1 %v5879_v24  ;;  %v594_v24 = vld [vmem:[%s5674_s24 + $0x18] sm:$0xff] }
  0xc6   : > { %1048 = vmatpush1.bf16.msra.mxu0 %v5869_v62 }
  0xc7   : > { %1049 = vmatprep.subr.bf16.mxu0 %v5877_v0  ;;  %v5942_v0 = vld [vmem:[#allocation12 + $0xa4] ss:$16 sps:$4 sm:$0xff]  }
  0xc8   : > { %1089 = vmatpush1.bf16.msra.mxu1 %v5883_v33  ;;  %7902 = vst [vmem:[#allocation54_spill] sm:$0xff] %v5942_v0 }
  0xc9   : > { %1090 = vmatprep.subr.bf16.mxu1 %v5891_v39  ;;  %v7898_v39 = vmov 0  }
  0xca   : > { %1050 = vmatpush1.bf16.msra.mxu0 %v5881_v26  ;;  %v5922_v26 = vld [vmem:[#allocation12 + $0xe4] ss:$16 sps:$4 sm:$0xff]  }
  0xcb   : > { %1051 = vmatprep.subr.bf16.mxu0 %v5889_v35  ;;  %v5917_v35 = vld [vmem:[#allocation13 + $0xc] ss:$16 sps:$4 sm:$0xff]   ;;  %7894 = vst [vmem:[#allocation47_spill] sm:$0xff] %v5922_v26 }
  0xcc   : > { %1091 = vmatpush1.bf16.msra.mxu1 %v5895_v44  ;;  %7892 = vst [vmem:[#allocation45_spill] sm:$0xff] %v5917_v35  ;;  %v5919_v44 = vld [vmem:[#allocation13 + $0x8] ss:$16 sps:$4 sm:$0xff]  }
  0xcd   : > { %1092 = vmatprep.subr.bf16.mxu1 %v5903_v47  ;;  %7893 = vst [vmem:[#allocation46_spill] sm:$0xff] %v5919_v44  ;;  %v5926_v47 = vld [vmem:[#allocation12 + $0xe0] ss:$16 sps:$4 sm:$0xff]  }
  0xce   : > { %1052 = vmatpush1.bf16.msra.mxu0 %v5893_v42  ;;  %v878_v42 = vpack.c.bf16 %v5912_v28, %v5912_v28  ;;  %7896 = vst [vmem:[#allocation49_spill] sm:$0xff] %v5926_v47  ;;  %v5933_v28 = vld [vmem:[#allocation12 + $0xe8] ss:$16 sps:$4 sm:$0xff]  }
  0xcf   : > { %1053 = vmatprep.subr.bf16.mxu0 %v5901_v46  ;;  %v5924_v46 = vld [vmem:[#allocation12 + $0xec] ss:$16 sps:$4 sm:$0xff]   ;;  %7899 = vst [vmem:[#allocation51_spill] sm:$0xff] %v5933_v28 }
  0xd0   : > { %1093 = vmatpush1.bf16.msra.mxu1 %v5907_v3  ;;  %7895 = vst [vmem:[#allocation48_spill] sm:$0xff] %v5924_v46  ;;  %v5939_v3 = vld [vmem:[#allocation12 + $0xc0] ss:$16 sps:$4 sm:$0xff]  }
  0xd1   : > { %1094 = vmatprep.subr.bf16.mxu1 %v5917_v35  ;;  %v5937_v35 = vld [vmem:[#allocation12 + $0xcc] ss:$16 sps:$4 sm:$0xff]   ;;  %7901 = vst [vmem:[#allocation53_spill] sm:$0xff] %v5939_v3 }
  0xd2   : > { %1054 = vmatpush1.bf16.msra.mxu0 %v5905_v32  ;;  %v5928_v32 = vld [vmem:[#allocation12 + $0xc4] ss:$16 sps:$4 sm:$0xff]   ;;  %7900 = vst [vmem:[#allocation52_spill] sm:$0xff] %v5937_v35 }
  0xd3   : > { %7897 = vst [vmem:[#allocation50_spill] sm:$0xff] %v5928_v32  ;;  %1281 = vmatprep.subr.bf16.mxu0 %v5922_v26 }
  0xd4   : > { %1095 = vmatpush1.bf16.msra.mxu1 %v5919_v44  ;;  %v5945_v44 = vld [vmem:[#allocation12 + $0xc8] ss:$16 sps:$4 sm:$0xff]  }
  0xd5   : > { %1072 = vmatmul.mubr.bf16.vlgmr.msra.gmra.mxu0 %v878_v42  ;;  %1322 = vmatprep.subr.bf16.mxu1 %v5924_v46  ;;  %7903 = vst [vmem:[#allocation55_spill] sm:$0xff] %v5945_v44  ;;  %v5952_v46 = vld [vmem:[#allocation12 + $0xa0] ss:$16 sps:$4 sm:$0xff]  }
  0xd6   : > { %1313 = vmatprep.mubr.bf16.mxu0 %v7898_v39  ;;  %1282 = vmatpush1.bf16.msra.mxu0 %v5926_v47  ;;  %v5950_v47 = vld [vmem:[#allocation12 + $0xac] ss:$16 sps:$4 sm:$0xff]   ;;  %7905 = vst [vmem:[#allocation57_spill] sm:$0xff] %v5952_v46 }
  0xd7   : > { %1283 = vmatprep.subr.bf16.mxu0 %v5928_v32  ;;  %1113 = vmatmul.mubr.bf16.vlgmr.msra.gmra.mxu1 %v878_v42  ;;  %7904 = vst [vmem:[#allocation56_spill] sm:$0xff] %v5950_v47  ;;  %v5956_v32 = vld [vmem:[#allocation12 + $0xa8] ss:$16 sps:$4 sm:$0xff]   ;;  %v5961_v42 = vld [vmem:[#allocation12 + $0x84] ss:$16 sps:$4 sm:$0xff]  }
  0xd8   : > { %1323 = vmatpush1.bf16.msra.mxu1 %v5933_v28  ;;  %1354 = vmatprep.mubr.bf16.mxu1 %v7898_v39  ;;  %7906 = vst [vmem:[#allocation58_spill] sm:$0xff] %v5956_v32  ;;  %7907 = vst [vmem:[#allocation59_spill] sm:$0xff] %v5961_v42  ;;  %v5967_v28 = vld [vmem:[#allocation12 + $0x88] ss:$16 sps:$4 sm:$0xff]  }
  0xd9   : > { %1324 = vmatprep.subr.bf16.mxu1 %v5937_v35  ;;  %v5963_v35 = vld [vmem:[#allocation12 + $0x8c] ss:$16 sps:$4 sm:$0xff]   ;;  %7910 = vst [vmem:[#allocation62_spill] sm:$0xff] %v5967_v28 }
  0xda   : > { %1284 = vmatpush1.bf16.msra.mxu0 %v5939_v3  ;;  %7908 = vst [vmem:[#allocation60_spill] sm:$0xff] %v5963_v35  ;;  %v5965_v3 = vld [vmem:[#allocation12 + $0x80] ss:$16 sps:$4 sm:$0xff]  }
  0xdb   : > { %1285 = vmatprep.subr.bf16.mxu0 %v5942_v0  ;;  %7909 = vst [vmem:[#allocation61_spill] sm:$0xff] %v5965_v3  ;;  %v5979_v0 = vld [vmem:[#allocation12 + $0x68] ss:$16 sps:$4 sm:$0xff]  }
  0xdc   : > { %1325 = vmatpush1.bf16.msra.mxu1 %v5945_v44  ;;  %7914 = vst [vmem:[#allocation66_spill] sm:$0xff] %v5979_v0 }
  0xdd   : > { %1326 = vmatprep.subr.bf16.mxu1 %v5950_v47  ;;  %v5973_v47 = vld [vmem:[#allocation12 + $0x64] ss:$16 sps:$4 sm:$0xff]  }
  0xde   : > { %1286 = vmatpush1.bf16.msra.mxu0 %v5952_v46  ;;  %7911 = vst [vmem:[#allocation63_spill] sm:$0xff] %v5973_v47  ;;  %v5975_v46 = vld [vmem:[#allocation12 + $0x6c] ss:$16 sps:$4 sm:$0xff]  }
  0xdf   : > { %1287 = vmatprep.subr.bf16.mxu0 %v5961_v42  ;;  %7912 = vst [vmem:[#allocation64_spill] sm:$0xff] %v5975_v46  ;;  %v5991_v42 = vld [vmem:[#allocation12 + $0x48] ss:$16 sps:$4 sm:$0xff]  }
  0xe0   : > { %1327 = vmatpush1.bf16.msra.mxu1 %v5956_v32  ;;  %v5977_v32 = vld [vmem:[#allocation12 + $0x60] ss:$16 sps:$4 sm:$0xff]   ;;  %7918 = vst [vmem:[#allocation70_spill] sm:$0xff] %v5991_v42 }
  0xe1   : > { %1328 = vmatprep.subr.bf16.mxu1 %v5963_v35  ;;  %7913 = vst [vmem:[#allocation65_spill] sm:$0xff] %v5977_v32  ;;  %v5985_v35 = vld [vmem:[#allocation12 + $0x44] ss:$16 sps:$4 sm:$0xff]  }
  0xe2   : > { %1288 = vmatpush1.bf16.msra.mxu0 %v5965_v3  ;;  %7915 = vst [vmem:[#allocation67_spill] sm:$0xff] %v5985_v35  ;;  %v5987_v3 = vld [vmem:[#allocation12 + $0x4c] ss:$16 sps:$4 sm:$0xff]  }
  0xe3   : > { %1289 = vmatprep.subr.bf16.mxu0 %v5973_v47  ;;  %7916 = vst [vmem:[#allocation68_spill] sm:$0xff] %v5987_v3  ;;  %v6003_v47 = vld [vmem:[#allocation12 + $0x28] ss:$16 sps:$4 sm:$0xff]  }
  0xe4   : > { %1329 = vmatpush1.bf16.msra.mxu1 %v5967_v28  ;;  %v5989_v28 = vld [vmem:[#allocation12 + $0x40] ss:$16 sps:$4 sm:$0xff]   ;;  %7922 = vst [vmem:[#allocation74_spill] sm:$0xff] %v6003_v47 }
  0xe5   : > { %1330 = vmatprep.subr.bf16.mxu1 %v5975_v46  ;;  %7917 = vst [vmem:[#allocation69_spill] sm:$0xff] %v5989_v28  ;;  %v5997_v46 = vld [vmem:[#allocation12 + $0x24] ss:$16 sps:$4 sm:$0xff]  }
  0xe6   : > { %1290 = vmatpush1.bf16.msra.mxu0 %v5977_v32  ;;  %7919 = vst [vmem:[#allocation71_spill] sm:$0xff] %v5997_v46  ;;  %v5999_v32 = vld [vmem:[#allocation12 + $0x2c] ss:$16 sps:$4 sm:$0xff]  }
  0xe7   : > { %1291 = vmatprep.subr.bf16.mxu0 %v5985_v35  ;;  %7920 = vst [vmem:[#allocation72_spill] sm:$0xff] %v5999_v32  ;;  %v6015_v35 = vld [vmem:[#allocation12 + $0x8] ss:$16 sps:$4 sm:$0xff]  }
  0xe8   : > { %1331 = vmatpush1.bf16.msra.mxu1 %v5979_v0  ;;  %v6001_v0 = vld [vmem:[#allocation12 + $0x20] ss:$16 sps:$4 sm:$0xff]   ;;  %7926 = vst [vmem:[#allocation78_spill] sm:$0xff] %v6015_v35 }
  0xe9   : > { %1332 = vmatprep.subr.bf16.mxu1 %v5987_v3  ;;  %7921 = vst [vmem:[#allocation73_spill] sm:$0xff] %v6001_v0  ;;  %v6013_v3 = vld [vmem:[#allocation12] ss:$16 sps:$4 sm:$0xff]  }
  0xea   : > { %1292 = vmatpush1.bf16.msra.mxu0 %v5989_v28  ;;  %v6009_v28 = vld [vmem:[#allocation12 + $0x4] ss:$16 sps:$4 sm:$0xff]   ;;  %7925 = vst [vmem:[#allocation77_spill] sm:$0xff] %v6013_v3 }
  0xeb   : > { %1293 = vmatprep.subr.bf16.mxu0 %v5997_v46  ;;  %7923 = vst [vmem:[#allocation75_spill] sm:$0xff] %v6009_v28 }
  0xec   : > { %1333 = vmatpush1.bf16.msra.mxu1 %v5991_v42  ;;  %v6011_v42 = vld [vmem:[#allocation12 + $0xc] ss:$16 sps:$4 sm:$0xff]  }
  0xed   : > { %1334 = vmatprep.subr.bf16.mxu1 %v5999_v32  ;;  %7924 = vst [vmem:[#allocation76_spill] sm:$0xff] %v6011_v42  ;;  %v592_v32 = vld [vmem:[%s5674_s24 + $0x8] sm:$0xff] }
  0xee   : > { %1294 = vmatpush1.bf16.msra.mxu0 %v6001_v0 }
  0xef   : > { %1295 = vmatprep.subr.bf16.mxu0 %v6009_v28 }
  0xf0   : > { %1335 = vmatpush1.bf16.msra.mxu1 %v6003_v47  ;;  %v591_v47 = vld [vmem:[%s5674_s24] sm:$0xff] }
  0xf1   : > { %1336 = vmatprep.subr.bf16.mxu1 %v6011_v42 }
  0xf2   : > { %1296 = vmatpush1.bf16.msra.mxu0 %v6013_v3 }
  0xf3   : > { %1409 = vmatprep.subr.bf16.mxu0 %v5697_v1 }
  0xf4   : > { %1337 = vmatpush1.bf16.msra.mxu1 %v6015_v35 }
  0xf5   : > { %1450 = vmatprep.subr.bf16.mxu1 %v5714_v7 }
 0x175   : > { %v790_v0 = vpop.f32.mrf.mxu0 }
 0x176   : > { %v838_v46 = vadd.f32 %v790_v0, %v591_v47 }
 0x177   : > { %v792_v44 = vpop.f32.mrf.mxu0  ;;  %v831_v62 = vpop.f32.mrf.mxu1 }
 0x178   : > { %v4235_v26 = vmul.f32 -1.442695, %v838_v46  ;;  %v839_v33 = vadd.f32 %v792_v44, %v592_v32  ;;  %v840_v58 = vadd.f32 %v831_v62, %v593_v63  ;;  %v6034_v63 = vpop.permute.xlu0 %869 }
 0x179   : > { %v794_v28 = vpop.f32.mrf.mxu0  ;;  %v833_v35 = vpop.f32.mrf.mxu1 }
 0x17a   : > { %4750 = vpow2.f32 %v4235_v26  ;;  %v4236_v42 = vmul.f32 -1.442695, %v839_v33  ;;  %v841_v7 = vadd.f32 %v833_v35, %v594_v24  ;;  %v6027_v33 = vld [vmem:[#allocation3] sm:$0xff] }
 0x17b   : > { %v795_v3 = vpop.f32.mrf.mxu0  ;;  %v835_v1 = vpop.f32.mrf.mxu1 }
 0x17c   : > { %4752 = vpow2.f32 %v4236_v42  ;;  %v4237_v61 = vmul.f32 -1.442695, %v841_v7  ;;  %v560_v7 = vld [vmem:[%s7558_s5] sm:$0xf] }
 0x17d   : > { %v836_v60 = vpop.f32.mrf.mxu1  ;;  %4754 = vtanh.f32 %v840_v58 }
 0x17e   : > { %4756 = vpow2.f32 %v4237_v61 }
 0x187   : > { %v4751_v56 = vpop.eup %4750 }
 0x188   : > { %v845_v59 = vadd.f32 1.0, %v4751_v56 }
 0x189   : > { %v4753_v0 = vpop.eup %4752 }
 0x18a   : > { %4758 = vrcp.f32 %v845_v59  ;;  %v851_v28 = vadd.f32 1.0, %v4753_v0  ;;  %v4755_v32 = vpop.eup %4754 }
 0x18b   : > { %v4757_v26 = vpop.eup %4756 }
 0x18c   : > { %4760 = vrcp.f32 %v851_v28  ;;  %v858_v46 = vadd.f32 1.0, %v4757_v26 }
 0x18e   : > { %4762 = vrcp.f32 %v858_v46 }
 0x197   : > { %v4759_v3 = vpop.eup %4758 }
 0x198   : > { %v862_v24 = vmul.f32 %v4759_v3, %v4755_v32 }
 0x199   : > { %v4761_v44 = vpop.eup %4760 }
 0x19a   : > { %v861_v60 = vmul.f32 %v4761_v44, %v6027_v33 }
 0x19b   : > { %v4763_v56 = vpop.eup %4762 }
 0x19c   : > { %v6030_v62 = vadd.f32 %v862_v24, %v861_v60 }
 0x19e   : > { %4764 = vtanh.f32 %v6030_v62 }
 0x1ab   : > { %v4765_v58 = vpop.eup %4764 }
 0x1ac   : > { %v865_v59 = vmul.f32 %v4765_v58, %v4763_v56 }
 0x1ae   : > { %v874_v61 = vsub.f32 %v865_v59, %v5796_v37 }
 0x1b0   : > { %v875_v35 = vmul.f32 %v874_v61, %v6034_v63  ;;  %v1734_v61 = vstv %s1733_s18  ;;  %s4046_s18 = scalar_lea.sflag [#allocation9], %s5670_s4 }
 0x1b2   : > { %v6038_v47 = vadd.f32 %v875_v35, %v5796_v37  ;;  %v7946_v37 = vld [vmem:[#allocation42_spill] sm:$0xff]  ;;  %v2068_v35 = vstv %s2067_s6  ;;  %s5449_s6 = smov [#allocation18]  }
 0x1b4   : > { %v877_v42 = vpack.c.bf16 %v6038_v47, %v6038_v47 }
 0x1b6   : > { %1314 = vmatmul.mubr.bf16.vlgmr.msra.gmra.mxu0 %v877_v42  ;;  %1355 = vmatmul.mubr.bf16.vlgmr.msra.gmra.mxu1 %v877_v42 }
 0x1b7   : > { %1410 = vmatpush1.bf16.msra.mxu0 %v5699_v2  ;;  %1451 = vmatpush1.bf16.msra.mxu1 %v5716_v8  ;;  %v1073_v2 = vpop.f32.mrf.mxu0 }
 0x1b8   : > { %1411 = vmatprep.subr.bf16.mxu0 %v5704_v4  ;;  %1452 = vmatprep.subr.bf16.mxu1 %v5726_v11 }
 0x1b9   : > { %1441 = vmatprep.mubr.bf16.mxu0 %v7898_v39  ;;  %1482 = vmatprep.mubr.bf16.mxu1 %v7898_v39  ;;  %v1075_v4 = vpop.f32.mrf.mxu0 }
 0x1bb   : > { %1412 = vmatpush1.bf16.msra.mxu0 %v5708_v5  ;;  %1453 = vmatpush1.bf16.msra.mxu1 %v5728_v12  ;;  %v1077_v5 = vpop.f32.mrf.mxu0  ;;  %v7927_v12 = vld [vmem:[#allocation27_spill] sm:$0xff] }
 0x1bc   : > { %1413 = vmatprep.subr.bf16.mxu0 %v5712_v6  ;;  %1454 = vmatprep.subr.bf16.mxu1 %v5736_v15  ;;  %v6076_v6 = vpop.f32.mrf.mxu1  ;;  %v7930_v15 = vld [vmem:[#allocation26_spill] sm:$0xff] }
 0x1bd   : > { %v1078_v8 = vpop.f32.mrf.mxu0 }
 0x1bf   : > { %1414 = vmatpush1.bf16.msra.mxu0 %v5719_v9  ;;  %1455 = vmatpush1.bf16.msra.mxu1 %v5740_v16  ;;  %v6080_v9 = vpop.f32.mrf.mxu1  ;;  %v7931_v16 = vld [vmem:[#allocation31_spill] sm:$0xff] }
 0x1c0   : > { %1415 = vmatprep.subr.bf16.mxu0 %v5723_v10  ;;  %1456 = vmatprep.subr.bf16.mxu1 %v5743_v17  ;;  %v7932_v17 = vld [vmem:[#allocation28_spill] sm:$0xff] }
 0x1c1   : > { %v1118_v10 = vpop.f32.mrf.mxu1 }
 0x1c3   : > { %1416 = vmatpush1.bf16.msra.mxu0 %v5732_v13  ;;  %1457 = vmatpush1.bf16.msra.mxu1 %v5752_v20  ;;  %v1119_v11 = vpop.f32.mrf.mxu1  ;;  %v7928_v13 = vld [vmem:[#allocation25_spill] sm:$0xff]  ;;  %v7935_v20 = vld [vmem:[#allocation35_spill] sm:$0xff] }
 0x1c4   : > { %1417 = vmatprep.subr.bf16.mxu0 %v5734_v14  ;;  %1458 = vmatprep.subr.bf16.mxu1 %v5758_v21  ;;  %v7929_v14 = vld [vmem:[#allocation29_spill] sm:$0xff]  ;;  %v7936_v21 = vld [vmem:[#allocation32_spill] sm:$0xff] }
 0x1c5   : > { %v7950_v11 = vld [vmem:[#allocation24_spill] sm:$0xff] }
 0x1c6   : > { %vm1735_vm4 = vcmp.gt.s32.totalorder %v7950_v11, %v1734_v61  ;;  %vm2069_vm5 = vcmp.gt.s32.totalorder %v7950_v11, %v2068_v35 }
 0x1c7   : > { %1418 = vmatpush1.bf16.msra.mxu0 %v5746_v18  ;;  %1459 = vmatpush1.bf16.msra.mxu1 %v5769_v25  ;;  %v7933_v18 = vld [vmem:[#allocation33_spill] sm:$0xff]  ;;  %v7939_v25 = vld [vmem:[#allocation39_spill] sm:$0xff] }
 0x1c8   : > { %1419 = vmatprep.subr.bf16.mxu0 %v5749_v19  ;;  %1460 = vmatprep.subr.bf16.mxu1 %v5772_v27  ;;  %v7934_v19 = vld [vmem:[#allocation30_spill] sm:$0xff]  ;;  %v7940_v27 = vld [vmem:[#allocation36_spill] sm:$0xff] }
 0x1cb   : > { %1420 = vmatpush1.bf16.msra.mxu0 %v5761_v22  ;;  %1461 = vmatpush1.bf16.msra.mxu1 %v5786_v31  ;;  %v7937_v22 = vld [vmem:[#allocation37_spill] sm:$0xff]  ;;  %v7943_v31 = vld [vmem:[#allocation43_spill] sm:$0xff] }
 0x1cc   : > { %1421 = vmatprep.subr.bf16.mxu0 %v5764_v23  ;;  %1462 = vmatprep.subr.bf16.mxu1 %v5792_v34  ;;  %v7938_v23 = vld [vmem:[#allocation34_spill] sm:$0xff]  ;;  %v7944_v34 = vld [vmem:[#allocation40_spill] sm:$0xff] }
 0x1cf   : > { %1422 = vmatpush1.bf16.msra.mxu0 %v5780_v29  ;;  %1463 = vmatpush1.bf16.msra.mxu1 %v5800_v38  ;;  %v7941_v29 = vld [vmem:[#allocation41_spill] sm:$0xff]  ;;  %v7947_v38 = vld [vmem:[#allocation46_spill] sm:$0xff] }
 0x1d0   : > { %1423 = vmatprep.subr.bf16.mxu0 %v5784_v30  ;;  %1464 = vmatprep.subr.bf16.mxu1 %v5806_v41  ;;  %v7942_v30 = vld [vmem:[#allocation38_spill] sm:$0xff]  ;;  %v7949_v41 = vld [vmem:[#allocation48_spill] sm:$0xff] }
 0x1d3   : > { %1424 = vmatpush1.bf16.msra.mxu0 %v5794_v36  ;;  %1465 = vmatpush1.bf16.msra.mxu1 %v5816_v45  ;;  %v7945_v36 = vld [vmem:[#allocation45_spill] sm:$0xff] }
 0x1d4   : > { %1532 = vmatprep.subr.bf16.mxu0 %v5803_v40  ;;  %1573 = vmatprep.subr.bf16.mxu1 %v5831_v49  ;;  %v7948_v40 = vld [vmem:[#allocation47_spill] sm:$0xff] }
 0x1d6   : > { %1442 = vmatmul.mubr.bf16.vlgmr.msra.gmra.mxu0 %v877_v42  ;;  %1483 = vmatmul.mubr.bf16.vlgmr.msra.gmra.mxu1 %v877_v42 }
 0x1d7   : > { %1533 = vmatpush1.bf16.msra.mxu0 %v5812_v43  ;;  %1574 = vmatpush1.bf16.msra.mxu1 %v5835_v51  ;;  %v562_v43 = vlaneseq }
 0x1d8   : > { %1534 = vmatprep.subr.bf16.mxu0 %v5829_v48  ;;  %1575 = vmatprep.subr.bf16.mxu1 %v5843_v53 }
 0x1d9   : > { %1564 = vmatprep.mubr.bf16.mxu0 %v7898_v39  ;;  %1605 = vmatprep.mubr.bf16.mxu1 %v7898_v39  ;;  %v563_v45 = vshrl.u32 %v562_v43, 7  ;;  %v7951_v43 = vmov 0.0  }
 0x1db   : > { %1535 = vmatpush1.bf16.msra.mxu0 %v5833_v50  ;;  %1576 = vmatpush1.bf16.msra.mxu1 %v5847_v55  ;;  %v564_v1 = vsub.s32 0, %v563_v45  ;;  %v568_v0 = vsub.s32 1, %v563_v45  ;;  %v576_v8 = vsub.s32 3, %v563_v45 }
 0x1dc   : > { %1536 = vmatprep.subr.bf16.mxu0 %v5841_v52  ;;  %1577 = vmatprep.subr.bf16.mxu1 %v5855_v57 }
 0x1dd   : > { %v6117_v28 = vrot.slane %v560_v7, %v564_v1  ;;  %v6119_v44 = vrot.slane %v560_v7, %v568_v0  ;;  %v4316_v1 = vsel %vm1735_vm4, 1.0, %v7951_v43  ;;  %v2736_v0 = vstv %s2735_s28  ;;  %s5360_s28 = sshll.u32 %s5449_s6, 4  ;;  %s5361_s28 = int_to_ptr.vmem [resolvable:$false] %s5360_s28 }
 0x1de   : > { %1856 = vperm.xlu1 %4589, %v4316_v1   ;;  %vm2737_vm6 = vcmp.gt.s32.totalorder %v7950_v11, %v2736_v0  ;;  %p5363_p12 = scmp.lt.s32.totalorder %s7508_s22, %s5361_s28 }
 0x1df   : > { %1537 = vmatpush1.bf16.msra.mxu0 %v5845_v54  ;;  %1578 = vmatpush1.bf16.msra.mxu1 %v7927_v12 }
 0x1e0   : > { %1538 = vmatprep.subr.bf16.mxu0 %v7928_v13  ;;  %1579 = vmatprep.subr.bf16.mxu1 %v7929_v14 }
 0x1e3   : > { %1539 = vmatpush1.bf16.msra.mxu0 %v7930_v15  ;;  %1580 = vmatpush1.bf16.msra.mxu1 %v7931_v16 }
 0x1e4   : > { %1540 = vmatprep.subr.bf16.mxu0 %v7932_v17  ;;  %1581 = vmatprep.subr.bf16.mxu1 %v7933_v18 }
 0x1e7   : > { %1541 = vmatpush1.bf16.msra.mxu0 %v7934_v19  ;;  %1582 = vmatpush1.bf16.msra.mxu1 %v7935_v20 }
 0x1e8   : > { %1542 = vmatprep.subr.bf16.mxu0 %v7936_v21  ;;  %1583 = vmatprep.subr.bf16.mxu1 %v7937_v22 }
 0x1eb   : > { %1543 = vmatpush1.bf16.msra.mxu0 %v7938_v23  ;;  %1584 = vmatpush1.bf16.msra.mxu1 %v7939_v25 }
 0x1ec   : > { %1544 = vmatprep.subr.bf16.mxu0 %v7940_v27  ;;  %1585 = vmatprep.subr.bf16.mxu1 %v7941_v29 }
 0x1ef   : > { %1545 = vmatpush1.bf16.msra.mxu0 %v7942_v30  ;;  %1586 = vmatpush1.bf16.msra.mxu1 %v7943_v31 }
 0x1f0   : > { %1546 = vmatprep.subr.bf16.mxu0 %v7944_v34  ;;  %1587 = vmatprep.subr.bf16.mxu1 %v7945_v36 }
 0x1f3   : > { %1547 = vmatpush1.bf16.msra.mxu0 %v7946_v37  ;;  %1588 = vmatpush1.bf16.msra.mxu1 %v7947_v38 }
 0x1f4   : > { %1614 = vmatprep.subr.bf16.mxu0 %v7948_v40  ;;  %1655 = vmatprep.subr.bf16.mxu1 %v7949_v41 }
 0x276   : > { %v1315_v32 = vpop.f32.mrf.mxu0  ;;  %v1356_v26 = vpop.f32.mrf.mxu1 }
 0x277   : > { %v1316_v3 = vadd.f32 %v1315_v32, %v1073_v2  ;;  %v4327_v32 = vsel %vm2069_vm5, 1.0, %v7951_v43  ;;  %v1357_v35 = vadd.f32 %v1356_v26, %v6076_v6  ;;  %v4307_v6 = vld [vmem:[%s5674_s24 + $0x28] sm:$0xff] }
 0x278   : > { %v1317_v46 = vpop.f32.mrf.mxu0  ;;  %v1358_v60 = vpop.f32.mrf.mxu1  ;;  %2190 = vperm.xlu1 %4589, %v4327_v32  }
 0x279   : > { %v1363_v24 = vadd.f32 %v1316_v3, %v6117_v28  ;;  %v1318_v56 = vadd.f32 %v1317_v46, %v1075_v4  ;;  %v6131_v3 = vrot.slane %v560_v7, %v576_v8  ;;  %v1359_v46 = vadd.f32 %v1358_v60, %v6080_v9 }
 0x27a   : > { %v1319_v58 = vpop.f32.mrf.mxu0  ;;  %v1360_v59 = vpop.f32.mrf.mxu1 }
 0x27b   : > { %v4302_v42 = vmul.f32 -1.442695, %v1363_v24  ;;  %v1364_v5 = vadd.f32 %v1318_v56, %v6119_v44  ;;  %v3404_v24 = vstv %s3403_s2  ;;  %v572_v56 = vsub.s32 2, %v563_v45  ;;  %s5362_s2 = scalar_lea.vmem %s5361_s28, 2048 }
 0x27c   : > { %v1320_v2 = vpop.f32.mrf.mxu0  ;;  %v1361_v10 = vpop.f32.mrf.mxu1  ;;  %v4349_v58 = vsel %vm2737_vm6, 1.0, %v7951_v43  ;;  %v1366_v59 = vadd.f32 %v1359_v46, %v6131_v3  ;;  %vm3405_vm7 = vcmp.gt.s32.totalorder %v7950_v11, %v3404_v24  ;;  %v6145_v24 = vld [vmem:[#allocation5] sm:$0xff]  ;;  %p5364_p1 = scmp.lt.s32.totalorder %s5362_s2, %s5356_s19 }
 0x27d   : > { %4766 = vpow2.f32 %v4302_v42  ;;  %v4303_v4 = vmul.f32 -1.442695, %v1364_v5  ;;  %v6138_v61 = vrot.slane %v560_v7, %v572_v56  ;;  %2858 = vperm.xlu1 %4589, %v4349_v58   ;;  %v4371_v9 = vsel %vm3405_vm7, 1.0, %v7951_v43  ;;  %v4306_v7 = vld [vmem:[%s5674_s24 + $0x20] sm:$0xff] }
 0x27e   : > { %v4304_v60 = vmul.f32 -1.442695, %v1366_v59  ;;  %p5365_p3 = por %p5364_p1, %p5363_p12 }
 0x27f   : > { %4768 = vpow2.f32 %v4303_v4  ;;  %v1365_v45 = vadd.f32 %v1357_v35, %v6138_v61 }
 0x280   : > { %4770 = vpow2.f32 %v4304_v60  ;;  %p5366_p4 = pnand %p5365_p3, %p5359_p9 }
 0x281   : > { %3526 = vperm.xlu1 %4589, %v4371_v9  }
 0x28a   : > { %v4767_v42 = vpop.eup %4766 }
 0x28b   : > { %v1370_v5 = vadd.f32 1.0, %v4767_v42 }
 0x28c   : > { %v4769_v8 = vpop.eup %4768 }
 0x28d   : > { %4772 = vrcp.f32 %v1370_v5  ;;  %v1376_v2 = vadd.f32 1.0, %v4769_v8  ;;  %v4771_v43 = vpop.eup %4770 }
 0x28e   : > { %4774 = vtanh.f32 %v1365_v45  ;;  %v1383_v60 = vadd.f32 1.0, %v4771_v43 }
 0x28f   : > { %4776 = vrcp.f32 %v1376_v2 }
 0x296   : > { %v1443_v10 = vpop.f32.mrf.mxu0  ;;  %v1484_v11 = vpop.f32.mrf.mxu1 }
 0x297   : > { %v1491_v26 = vadd.f32 %v4306_v7, %v1443_v10  ;;  %v4309_v7 = vld [vmem:[%s5674_s24 + $0x38] sm:$0xff] }
 0x298   : > { %v1445_v4 = vpop.f32.mrf.mxu0  ;;  %v1486_v1 = vpop.f32.mrf.mxu1 }
 0x299   : > { %v4310_v0 = vmul.f32 -1.442695, %v1491_v26  ;;  %v1492_v32 = vadd.f32 %v4307_v6, %v1445_v4  ;;  %v1494_v10 = vadd.f32 %v4309_v7, %v1486_v1  ;;  %v4308_v6 = vld [vmem:[%s5674_s24 + $0x30] sm:$0xff] }
 0x29a   : > { %v4773_v46 = vpop.eup %4772  ;;  %v1447_v56 = vpop.f32.mrf.mxu0 }
 0x29b   : > { %v1488_v58 = vpop.f32.mrf.mxu1  ;;  %v4775_v59 = vpop.eup %4774  ;;  %4778 = vpow2.f32 %v4310_v0  ;;  %v4311_v35 = vmul.f32 -1.442695, %v1492_v32  ;;  %v4312_v26 = vmul.f32 -1.442695, %v1494_v10  ;;  %v1493_v0 = vadd.f32 %v4308_v6, %v1484_v11 }
 0x29c   : > { %v4777_v9 = vpop.eup %4776  ;;  %v1448_v42 = vpop.f32.mrf.mxu0  ;;  %v1387_v5 = vmul.f32 %v4775_v59, %v4773_v46 }
 0x29d   : > { %v1489_v45 = vpop.f32.mrf.mxu1  ;;  %v1386_v8 = vmul.f32 %v4777_v9, %v6145_v24  ;;  %4780 = vpow2.f32 %v4311_v35  ;;  %v866_v35 = vsub.f32 %v6030_v62, %v6027_v33  ;;  %v7952_v9 = vld [vmem:[#allocation44_spill] sm:$0xff] }
 0x29e   : > { %4782 = vrcp.f32 %v1383_v60 }
 0x29f   : > { %v6148_v2 = vadd.f32 %v1387_v5, %v1386_v8  ;;  %v872_v11 = vmul.f32 %v6034_v63, %v866_v35  ;;  %v7959_v35 = vld [vmem:[#allocation54_spill] sm:$0xff] }
 0x2a1   : > { %4784 = vtanh.f32 %v6148_v2  ;;  %v873_v10 = vadd.f32 %v872_v11, %v6027_v33  ;;  %v7957_v33 = vld [vmem:[#allocation53_spill] sm:$0xff] }
 0x2a2   : > { %4786 = vpow2.f32 %v4312_v26  ;;  %v7953_v26 = vld [vmem:[#allocation49_spill] sm:$0xff] }
 0x2a8   : > { %v4779_v4 = vpop.eup %4778 }
 0x2a9   : > { %v1498_v32 = vadd.f32 1.0, %v4779_v4  ;;  %v7954_v4 = vld [vmem:[#allocation51_spill] sm:$0xff] }
 0x2aa   : > { %v4781_v56 = vpop.eup %4780 }
 0x2ab   : > { %4788 = vrcp.f32 %v1498_v32  ;;  %v1504_v43 = vadd.f32 1.0, %v4781_v56  ;;  %v4783_v46 = vpop.eup %4782  ;;  %v7955_v56 = vld [vmem:[#allocation50_spill] sm:$0xff] }
 0x2ac   : > { %4790 = vtanh.f32 %v1493_v0 }
 0x2ad   : > { %4792 = vrcp.f32 %v1504_v43  ;;  %v7956_v43 = vld [vmem:[#allocation52_spill] sm:$0xff] }
 0x2ae   : > { %v4785_v58 = vpop.eup %4784 }
 0x2af   : > { %v6153_v59 = vmul.f32 %v4785_v58, %v4783_v46  ;;  %v4787_v45 = vpop.eup %4786  ;;  %v7958_v58 = vld [vmem:[#allocation55_spill] sm:$0xff] }
 0x2b0   : > { %v1511_v6 = vadd.f32 1.0, %v4787_v45  ;;  %v7961_v45 = vld [vmem:[#allocation57_spill] sm:$0xff] }
 0x2b1   : > { %v1394_v1 = vsub.f32 %v6153_v59, %v7952_v9 }
 0x2b2   : > { %4794 = vrcp.f32 %v1511_v6  ;;  %v7965_v6 = vld [vmem:[#allocation61_spill] sm:$0xff] }
 0x2b3   : > { %v1395_v60 = vmul.f32 %v1394_v1, %v6034_v63 }
 0x2b5   : > { %v6162_v42 = vadd.f32 %v1395_v60, %v7952_v9  ;;  %v7960_v9 = vld [vmem:[#allocation56_spill] sm:$0xff]  ;;  %v6177_v60 = vpop.permute.xlu0 %1522 }
 0x2b7   : > { %v1531_v5 = vpack.c.bf16 %v6162_v42, %v6162_v42 }
 0x2b8   : > { %v4789_v8 = vpop.eup %4788 }
 0x2b9   : > { %v4791_v7 = vpop.eup %4790  ;;  %1565 = vmatmul.mubr.bf16.vlgmr.msra.gmra.mxu0 %v1531_v5  ;;  %1606 = vmatmul.mubr.bf16.vlgmr.msra.gmra.mxu1 %v1531_v5  ;;  %v7962_v5 = vld [vmem:[#allocation58_spill] sm:$0xff] }
 0x2ba   : > { %v4793_v62 = vpop.eup %4792  ;;  %1615 = vmatpush1.bf16.msra.mxu0 %v7953_v26  ;;  %1656 = vmatpush1.bf16.msra.mxu1 %v7954_v4  ;;  %v1515_v0 = vmul.f32 %v4791_v7, %v4789_v8  ;;  %v7963_v8 = vld [vmem:[#allocation59_spill] sm:$0xff]  ;;  %v7964_v7 = vld [vmem:[#allocation60_spill] sm:$0xff]  ;;  %v7966_v26 = vld [vmem:[#allocation62_spill] sm:$0xff] }
 0x2bb   : > { %v1514_v32 = vmul.f32 %v4793_v62, %v873_v10  ;;  %1616 = vmatprep.subr.bf16.mxu0 %v7955_v56  ;;  %1657 = vmatprep.subr.bf16.mxu1 %v7956_v43  ;;  %v7967_v4 = vld [vmem:[#allocation63_spill] sm:$0xff]  ;;  %v7970_v56 = vld [vmem:[#allocation66_spill] sm:$0xff] }
 0x2bc   : > { %1646 = vmatprep.mubr.bf16.mxu0 %v7898_v39  ;;  %1687 = vmatprep.mubr.bf16.mxu1 %v7898_v39 }
 0x2bd   : > { %v1516_v46 = vadd.f32 %v1515_v0, %v1514_v32  ;;  %v7968_v0 = vld [vmem:[#allocation64_spill] sm:$0xff]  ;;  %v7969_v32 = vld [vmem:[#allocation65_spill] sm:$0xff] }
 0x2be   : > { %1617 = vmatpush1.bf16.msra.mxu0 %v7957_v33  ;;  %1658 = vmatpush1.bf16.msra.mxu1 %v7958_v58  ;;  %v7972_v33 = vld [vmem:[#allocation68_spill] sm:$0xff] }
 0x2bf   : > { %4796 = vtanh.f32 %v1516_v46  ;;  %1618 = vmatprep.subr.bf16.mxu0 %v7959_v35  ;;  %1659 = vmatprep.subr.bf16.mxu1 %v7960_v9  ;;  %v1519_v1 = vsub.f32 %v1516_v46, %v873_v10  ;;  %v4795_v43 = vpop.eup %4794  ;;  %v7971_v46 = vld [vmem:[#allocation67_spill] sm:$0xff]  ;;  %v7973_v35 = vld [vmem:[#allocation69_spill] sm:$0xff]  ;;  %v7974_v9 = vld [vmem:[#allocation70_spill] sm:$0xff] }
 0x2c1   : > { %v1525_v11 = vmul.f32 %v6177_v60, %v1519_v1  ;;  %v7975_v1 = vld [vmem:[#allocation71_spill] sm:$0xff] }
 0x2c2   : > { %1619 = vmatpush1.bf16.msra.mxu0 %v7961_v45  ;;  %1660 = vmatpush1.bf16.msra.mxu1 %v7962_v5 }
 0x2c3   : > { %1620 = vmatprep.subr.bf16.mxu0 %v7963_v8  ;;  %1661 = vmatprep.subr.bf16.mxu1 %v7964_v7  ;;  %v6184_v62 = vadd.f32 %v1525_v11, %v873_v10  ;;  %v7976_v11 = vld [vmem:[#allocation72_spill] sm:$0xff]  ;;  %v7977_v8 = vld [vmem:[#allocation73_spill] sm:$0xff]  ;;  %v7978_v7 = vld [vmem:[#allocation74_spill] sm:$0xff] }
 0x2c6   : > { %1621 = vmatpush1.bf16.msra.mxu0 %v7965_v6  ;;  %1662 = vmatpush1.bf16.msra.mxu1 %v7966_v26  ;;  %v7979_v6 = vld [vmem:[#allocation75_spill] sm:$0xff]  ;;  %v7980_v26 = vld [vmem:[#allocation76_spill] sm:$0xff] }
 0x2c7   : > { %1622 = vmatprep.subr.bf16.mxu0 %v7967_v4  ;;  %1663 = vmatprep.subr.bf16.mxu1 %v7968_v0  ;;  %v7981_v0 = vld [vmem:[#allocation77_spill] sm:$0xff] }
 0x2ca   : > { %1623 = vmatpush1.bf16.msra.mxu0 %v7969_v32  ;;  %1664 = vmatpush1.bf16.msra.mxu1 %v7970_v56  ;;  %v7982_v32 = vld [vmem:[#allocation78_spill] sm:$0xff] }
 0x2cb   : > { %1624 = vmatprep.subr.bf16.mxu0 %v7971_v46  ;;  %1665 = vmatprep.subr.bf16.mxu1 %v7972_v33  ;;  %v6216_v46 = vld [vmem:[#allocation10 + $0xec] ss:$16 sps:$4 sm:$0xff]   ;;  %v6224_v33 = vld [vmem:[#allocation10 + $0xe8] ss:$16 sps:$4 sm:$0xff]  }
 0x2cc   : > { %v4797_v58 = vpop.eup %4796  ;;  %7983 = vst [vmem:[#allocation27_spill] sm:$0xff] %v6224_v33 }
 0x2cd   : > { %v1518_v10 = vmul.f32 %v4797_v58, %v4795_v43  ;;  %v6213_v43 = vld [vmem:[#allocation10 + $0xe4] ss:$16 sps:$4 sm:$0xff]  }
 0x2ce   : > { %1625 = vmatpush1.bf16.msra.mxu0 %v7973_v35  ;;  %1666 = vmatpush1.bf16.msra.mxu1 %v7974_v9  ;;  %v6227_v58 = vld [vmem:[#allocation10 + $0xc4] ss:$16 sps:$4 sm:$0xff]   ;;  %v6235_v35 = vld [vmem:[#allocation10 + $0xc0] ss:$16 sps:$4 sm:$0xff]   ;;  %v6238_v9 = vld [vmem:[#allocation10 + $0xc8] ss:$16 sps:$4 sm:$0xff]  }
 0x2cf   : > { %1626 = vmatprep.subr.bf16.mxu0 %v7975_v1  ;;  %1667 = vmatprep.subr.bf16.mxu1 %v7976_v11  ;;  %v1527_v45 = vsub.f32 %v1518_v10, %v6038_v47  ;;  %7984 = vst [vmem:[#allocation25_spill] sm:$0xff] %v6227_v58  ;;  %v6230_v10 = vld [vmem:[#allocation10 + $0xcc] ss:$16 sps:$4 sm:$0xff]   ;;  %7986 = vst [vmem:[#allocation26_spill] sm:$0xff] %v6235_v35  ;;  %v6241_v1 = vld [vmem:[#allocation10 + $0xa4] ss:$16 sps:$4 sm:$0xff]  }
 0x2d0   : > { %7985 = vst [vmem:[#allocation29_spill] sm:$0xff] %v6230_v10  ;;  %7987 = vst [vmem:[#allocation31_spill] sm:$0xff] %v6238_v9  ;;  %v6244_v11 = vld [vmem:[#allocation10 + $0xac] ss:$16 sps:$4 sm:$0xff]  }
 0x2d1   : > { %v1528_v5 = vmul.f32 %v1527_v45, %v6177_v60  ;;  %7988 = vst [vmem:[#allocation28_spill] sm:$0xff] %v6241_v1  ;;  %7989 = vst [vmem:[#allocation33_spill] sm:$0xff] %v6244_v11  ;;  %v6247_v45 = vld [vmem:[#allocation10 + $0xa0] ss:$16 sps:$4 sm:$0xff]  }
 0x2d2   : > { %1627 = vmatpush1.bf16.msra.mxu0 %v7977_v8  ;;  %1668 = vmatpush1.bf16.msra.mxu1 %v7978_v7  ;;  %7990 = vst [vmem:[#allocation30_spill] sm:$0xff] %v6247_v45  ;;  %v6253_v8 = vld [vmem:[#allocation10 + $0x84] ss:$16 sps:$4 sm:$0xff]   ;;  %v6256_v7 = vld [vmem:[#allocation10 + $0x8c] ss:$16 sps:$4 sm:$0xff]  }
 0x2d3   : > { %1628 = vmatprep.subr.bf16.mxu0 %v7979_v6  ;;  %1669 = vmatprep.subr.bf16.mxu1 %v7980_v26  ;;  %v6205_v4 = vadd.f32 %v1528_v5, %v6038_v47  ;;  %v6221_v47 = vld [vmem:[#allocation10 + $0xe0] ss:$16 sps:$4 sm:$0xff]   ;;  %v6250_v5 = vld [vmem:[#allocation10 + $0xa8] ss:$16 sps:$4 sm:$0xff]   ;;  %7992 = vst [vmem:[#allocation32_spill] sm:$0xff] %v6253_v8  ;;  %7993 = vst [vmem:[#allocation37_spill] sm:$0xff] %v6256_v7 }
 0x2d4   : > { %7991 = vst [vmem:[#allocation35_spill] sm:$0xff] %v6250_v5  ;;  %v6259_v6 = vld [vmem:[#allocation10 + $0x80] ss:$16 sps:$4 sm:$0xff]   ;;  %v6262_v26 = vld [vmem:[#allocation10 + $0x88] ss:$16 sps:$4 sm:$0xff]  }
 0x2d5   : > { %v6211_v56 = vpack.c.bf16 %v6205_v4, %v6205_v4  ;;  %7994 = vst [vmem:[#allocation34_spill] sm:$0xff] %v6259_v6  ;;  %7995 = vst [vmem:[#allocation39_spill] sm:$0xff] %v6262_v26 }
 0x2d6   : > { %1629 = vmatpush1.bf16.msra.mxu0 %v7981_v0  ;;  %1670 = vmatpush1.bf16.msra.mxu1 %v7982_v32  ;;  %v6265_v0 = vld [vmem:[#allocation10 + $0x64] ss:$16 sps:$4 sm:$0xff]   ;;  %v6268_v32 = vld [vmem:[#allocation10 + $0x6c] ss:$16 sps:$4 sm:$0xff]  }
 0x2d7   : > { %1743 = vmatprep.subr.bf16.mxu0 %v6213_v43  ;;  %1784 = vmatprep.subr.bf16.mxu1 %v6216_v46  ;;  %7996 = vst [vmem:[#allocation36_spill] sm:$0xff] %v6265_v0  ;;  %7997 = vst [vmem:[#allocation41_spill] sm:$0xff] %v6268_v32 }
 0x2d9   : > { %1647 = vmatmul.mubr.bf16.vlgmr.msra.gmra.mxu0 %v6211_v56  ;;  %1688 = vmatmul.mubr.bf16.vlgmr.msra.gmra.mxu1 %v6211_v56 }
 0x2da   : > { %1744 = vmatpush1.bf16.msra.mxu0 %v6221_v47  ;;  %1785 = vmatpush1.bf16.msra.mxu1 %v6224_v33 }
 0x2db   : > { %1745 = vmatprep.subr.bf16.mxu0 %v6227_v58  ;;  %1786 = vmatprep.subr.bf16.mxu1 %v6230_v10 }
 0x2dc   : > { %1775 = vmatprep.mubr.bf16.mxu0 %v7898_v39  ;;  %1816 = vmatprep.mubr.bf16.mxu1 %v7898_v39 }
 0x2de   : > { %1746 = vmatpush1.bf16.msra.mxu0 %v6235_v35  ;;  %1787 = vmatpush1.bf16.msra.mxu1 %v6238_v9 }
 0x2df   : > { %1747 = vmatprep.subr.bf16.mxu0 %v6241_v1  ;;  %1788 = vmatprep.subr.bf16.mxu1 %v6244_v11 }
 0x2e2   : > { %1748 = vmatpush1.bf16.msra.mxu0 %v6247_v45  ;;  %1789 = vmatpush1.bf16.msra.mxu1 %v6250_v5 }
 0x2e3   : > { %1749 = vmatprep.subr.bf16.mxu0 %v6253_v8  ;;  %1790 = vmatprep.subr.bf16.mxu1 %v6256_v7  ;;  %v6271_v8 = vld [vmem:[#allocation10 + $0x60] ss:$16 sps:$4 sm:$0xff]   ;;  %v6274_v7 = vld [vmem:[#allocation10 + $0x68] ss:$16 sps:$4 sm:$0xff]  }
 0x2e4   : > { %7998 = vst [vmem:[#allocation38_spill] sm:$0xff] %v6271_v8  ;;  %7999 = vst [vmem:[#allocation43_spill] sm:$0xff] %v6274_v7 }
 0x2e6   : > { %1750 = vmatpush1.bf16.msra.mxu0 %v6259_v6  ;;  %1791 = vmatpush1.bf16.msra.mxu1 %v6262_v26  ;;  %v6277_v6 = vld [vmem:[#allocation10 + $0x44] ss:$16 sps:$4 sm:$0xff]   ;;  %v6280_v26 = vld [vmem:[#allocation10 + $0x4c] ss:$16 sps:$4 sm:$0xff]  }
 0x2e7   : > { %1751 = vmatprep.subr.bf16.mxu0 %v6265_v0  ;;  %1792 = vmatprep.subr.bf16.mxu1 %v6268_v32  ;;  %8000 = vst [vmem:[#allocation40_spill] sm:$0xff] %v6277_v6  ;;  %8001 = vst [vmem:[#allocation45_spill] sm:$0xff] %v6280_v26  ;;  %v6283_v0 = vld [vmem:[#allocation10 + $0x40] ss:$16 sps:$4 sm:$0xff]   ;;  %v6286_v32 = vld [vmem:[#allocation10 + $0x48] ss:$16 sps:$4 sm:$0xff]  }
 0x2e8   : > { %8002 = vst [vmem:[#allocation42_spill] sm:$0xff] %v6283_v0  ;;  %8003 = vst [vmem:[#allocation46_spill] sm:$0xff] %v6286_v32 }
 0x2ea   : > { %1752 = vmatpush1.bf16.msra.mxu0 %v6271_v8  ;;  %1793 = vmatpush1.bf16.msra.mxu1 %v6274_v7  ;;  %v6289_v8 = vld [vmem:[#allocation10 + $0x24] ss:$16 sps:$4 sm:$0xff]   ;;  %v6292_v7 = vld [vmem:[#allocation10 + $0x2c] ss:$16 sps:$4 sm:$0xff]  }
 0x2eb   : > { %1753 = vmatprep.subr.bf16.mxu0 %v6277_v6  ;;  %1794 = vmatprep.subr.bf16.mxu1 %v6280_v26  ;;  %8004 = vst [vmem:[#allocation47_spill] sm:$0xff] %v6289_v8  ;;  %8005 = vst [vmem:[#allocation48_spill] sm:$0xff] %v6292_v7  ;;  %v6295_v6 = vld [vmem:[#allocation10 + $0x20] ss:$16 sps:$4 sm:$0xff]   ;;  %v6298_v26 = vld [vmem:[#allocation10 + $0x28] ss:$16 sps:$4 sm:$0xff]  }
 0x2ec   : > { %8006 = vst [vmem:[#allocation24_spill] sm:$0xff] %v6295_v6  ;;  %8007 = vst [vmem:[#allocation44_spill] sm:$0xff] %v6298_v26 }
 0x2ee   : > { %1754 = vmatpush1.bf16.msra.mxu0 %v6283_v0  ;;  %1795 = vmatpush1.bf16.msra.mxu1 %v6286_v32  ;;  %v6301_v0 = vld [vmem:[#allocation10 + $0x4] ss:$16 sps:$4 sm:$0xff]   ;;  %v6304_v32 = vld [vmem:[#allocation10 + $0xc] ss:$16 sps:$4 sm:$0xff]  }
 0x2ef   : > { %1755 = vmatprep.subr.bf16.mxu0 %v6289_v8  ;;  %1796 = vmatprep.subr.bf16.mxu1 %v6292_v7  ;;  %8008 = vst [vmem:[#allocation49_spill] sm:$0xff] %v6301_v0  ;;  %8009 = vst [vmem:[#allocation51_spill] sm:$0xff] %v6304_v32  ;;  %v6307_v8 = vld [vmem:[#allocation10] ss:$16 sps:$4 sm:$0xff]   ;;  %v6310_v7 = vld [vmem:[#allocation10 + $0x8] ss:$16 sps:$4 sm:$0xff]  }
 0x2f0   : > { %8010 = vst [vmem:[#allocation50_spill] sm:$0xff] %v6307_v8  ;;  %8011 = vst [vmem:[#allocation52_spill] sm:$0xff] %v6310_v7 }
 0x2f2   : > { %1756 = vmatpush1.bf16.msra.mxu0 %v6295_v6  ;;  %1797 = vmatpush1.bf16.msra.mxu1 %v6298_v26  ;;  %v6313_v6 = vld [vmem:[#allocation13 + $0xe4] ss:$16 sps:$4 sm:$0xff]  }
 0x2f3   : > { %1757 = vmatprep.subr.bf16.mxu0 %v6301_v0  ;;  %1798 = vmatprep.subr.bf16.mxu1 %v6304_v32  ;;  %8012 = vst [vmem:[#allocation53_spill] sm:$0xff] %v6313_v6  ;;  %v6319_v0 = vld [vmem:[#allocation13 + $0xe0] ss:$16 sps:$4 sm:$0xff]  }
 0x2f4   : > { %8013 = vst [vmem:[#allocation55_spill] sm:$0xff] %v6319_v0 }
 0x2f6   : > { %1758 = vmatpush1.bf16.msra.mxu0 %v6307_v8  ;;  %1799 = vmatpush1.bf16.msra.mxu1 %v6310_v7 }
 0x2f7   : > { %1866 = vmatprep.subr.bf16.mxu0 %v6313_v6  ;;  %1907 = vmatprep.subr.bf16.mxu1 %v5831_v49 }
 0x2f9   : > { %1776 = vmatmul.mubr.bf16.vlgmr.msra.gmra.mxu0 %v6211_v56  ;;  %1817 = vmatmul.mubr.bf16.vlgmr.msra.gmra.mxu1 %v6211_v56  ;;  %v4317_v56 = vld [vmem:[%s5674_s24 + $0x40] sm:$0xff] }
 0x2fa   : > { %1867 = vmatpush1.bf16.msra.mxu0 %v6319_v0  ;;  %1908 = vmatpush1.bf16.msra.mxu1 %v5835_v51 }
 0x2fb   : > { %1868 = vmatprep.subr.bf16.mxu0 %v5829_v48  ;;  %1909 = vmatprep.subr.bf16.mxu1 %v5843_v53 }
 0x2fc   : > { %1898 = vmatprep.mubr.bf16.mxu0 %v7898_v39  ;;  %1939 = vmatprep.mubr.bf16.mxu1 %v7898_v39 }
 0x2fe   : > { %1869 = vmatpush1.bf16.msra.mxu0 %v5833_v50  ;;  %1910 = vmatpush1.bf16.msra.mxu1 %v5847_v55 }
 0x2ff   : > { %1870 = vmatprep.subr.bf16.mxu0 %v5841_v52  ;;  %1911 = vmatprep.subr.bf16.mxu1 %v5855_v57 }
 0x302   : > { %1871 = vmatpush1.bf16.msra.mxu0 %v5845_v54  ;;  %1912 = vmatpush1.bf16.msra.mxu1 %v7927_v12 }
 0x303   : > { %1872 = vmatprep.subr.bf16.mxu0 %v7928_v13  ;;  %1913 = vmatprep.subr.bf16.mxu1 %v7929_v14 }
 0x306   : > { %1873 = vmatpush1.bf16.msra.mxu0 %v7930_v15  ;;  %1914 = vmatpush1.bf16.msra.mxu1 %v7931_v16 }
 0x307   : > { %1874 = vmatprep.subr.bf16.mxu0 %v7932_v17  ;;  %1915 = vmatprep.subr.bf16.mxu1 %v7933_v18 }
 0x30a   : > { %1875 = vmatpush1.bf16.msra.mxu0 %v7934_v19  ;;  %1916 = vmatpush1.bf16.msra.mxu1 %v7935_v20 }
 0x30b   : > { %1876 = vmatprep.subr.bf16.mxu0 %v7936_v21  ;;  %1917 = vmatprep.subr.bf16.mxu1 %v7937_v22 }
 0x30e   : > { %1877 = vmatpush1.bf16.msra.mxu0 %v7938_v23  ;;  %1918 = vmatpush1.bf16.msra.mxu1 %v7939_v25 }
 0x30f   : > { %1878 = vmatprep.subr.bf16.mxu0 %v7940_v27  ;;  %1919 = vmatprep.subr.bf16.mxu1 %v7941_v29 }
 0x312   : > { %1879 = vmatpush1.bf16.msra.mxu0 %v7942_v30  ;;  %1920 = vmatpush1.bf16.msra.mxu1 %v7943_v31 }
 0x313   : > { %1880 = vmatprep.subr.bf16.mxu0 %v7944_v34  ;;  %1921 = vmatprep.subr.bf16.mxu1 %v7945_v36 }
 0x316   : > { %1881 = vmatpush1.bf16.msra.mxu0 %v7946_v37  ;;  %1922 = vmatpush1.bf16.msra.mxu1 %v7947_v38 }
 0x317   : > { %1948 = vmatprep.subr.bf16.mxu0 %v7948_v40  ;;  %1989 = vmatprep.subr.bf16.mxu1 %v7949_v41  ;;  %v1391_v41 = vsub.f32 %v6148_v2, %v6145_v24 }
 0x379   : > { %v1566_v48 = vpop.f32.mrf.mxu0  ;;  %v1607_v49 = vpop.f32.mrf.mxu1 }
 0x37b   : > { %v1568_v50 = vpop.f32.mrf.mxu0  ;;  %v1609_v51 = vpop.f32.mrf.mxu1 }
 0x37d   : > { %v1570_v52 = vpop.f32.mrf.mxu0  ;;  %v1611_v53 = vpop.f32.mrf.mxu1 }
 0x37f   : > { %v1571_v54 = vpop.f32.mrf.mxu0  ;;  %v1612_v55 = vpop.f32.mrf.mxu1 }
 0x399   : > { %v1648_v57 = vpop.f32.mrf.mxu0  ;;  %v1689_v12 = vpop.f32.mrf.mxu1 }
 0x39a   : > { %v1649_v13 = vadd.f32 %v1648_v57, %v1566_v48  ;;  %v1690_v30 = vadd.f32 %v1689_v12, %v1607_v49  ;;  %v1392_v49 = vmul.f32 %v1391_v41, %v6034_v63 }
 0x39b   : > { %v1650_v14 = vpop.f32.mrf.mxu0  ;;  %v1691_v15 = vpop.f32.mrf.mxu1 }
 0x39c   : > { %v1696_v16 = vadd.f32 %v1649_v13, %v6117_v28  ;;  %v1651_v17 = vadd.f32 %v1650_v14, %v1568_v50  ;;  %v1692_v27 = vadd.f32 %v1691_v15, %v1609_v51  ;;  %v1698_v36 = vadd.f32 %v1690_v30, %v6138_v61  ;;  %v4318_v51 = vld [vmem:[%s5674_s24 + $0x48] sm:$0xff] }
 0x39d   : > { %v1652_v18 = vpop.f32.mrf.mxu0  ;;  %v1693_v19 = vpop.f32.mrf.mxu1 }
 0x39e   : > { %v4313_v20 = vmul.f32 -1.442695, %v1696_v16  ;;  %v1697_v21 = vadd.f32 %v1651_v17, %v6119_v44  ;;  %v1699_v29 = vadd.f32 %v1692_v27, %v6131_v3  ;;  %v1393_v17 = vadd.f32 %v1392_v49, %v6145_v24  ;;  %v4320_v27 = vld [vmem:[%s5674_s24 + $0x58] sm:$0xff] }
 0x39f   : > { %v1653_v22 = vpop.f32.mrf.mxu0  ;;  %v1694_v23 = vpop.f32.mrf.mxu1 }
 0x3a0   : > { %4798 = vpow2.f32 %v4313_v20  ;;  %v4314_v25 = vmul.f32 -1.442695, %v1697_v21  ;;  %v4315_v31 = vmul.f32 -1.442695, %v1699_v29 }
 0x3a2   : > { %4800 = vpow2.f32 %v4314_v25 }
 0x3a3   : > { %4802 = vpow2.f32 %v4315_v31 }
 0x3ad   : > { %v4799_v34 = vpop.eup %4798 }
 0x3ae   : > { %v1703_v37 = vadd.f32 1.0, %v4799_v34  ;;  %v4319_v34 = vld [vmem:[%s5674_s24 + $0x50] sm:$0xff] }
 0x3af   : > { %v4801_v38 = vpop.eup %4800 }
 0x3b0   : > { %4804 = vrcp.f32 %v1703_v37  ;;  %v1709_v40 = vadd.f32 1.0, %v4801_v38  ;;  %v4803_v55 = vpop.eup %4802 }
 0x3b1   : > { %4806 = vtanh.f32 %v1698_v36  ;;  %v1716_v19 = vadd.f32 1.0, %v4803_v55  ;;  %v8018_v55 = vld [vmem:[#allocation34_spill] sm:$0xff] }
 0x3b2   : > { %4808 = vrcp.f32 %v1709_v40 }
 0x3b9   : > { %v1777_v48 = vpop.f32.mrf.mxu0  ;;  %v1818_v50 = vpop.f32.mrf.mxu1 }
 0x3ba   : > { %v1825_v52 = vadd.f32 %v4317_v56, %v1777_v48  ;;  %v1827_v38 = vadd.f32 %v4319_v34, %v1818_v50 }
 0x3bb   : > { %v1779_v53 = vpop.f32.mrf.mxu0  ;;  %v1820_v54 = vpop.f32.mrf.mxu1 }
 0x3bc   : > { %v4321_v57 = vmul.f32 -1.442695, %v1825_v52  ;;  %v1826_v12 = vadd.f32 %v4318_v51, %v1779_v53  ;;  %v1828_v30 = vadd.f32 %v4320_v27, %v1820_v54  ;;  %v6373_v53 = vmul.f32 %v6153_v59, %v6034_v63  ;;  %v6413_v27 = vld [vmem:[#allocation12 + $0xac] ss:$16 sps:$4 sm:$0xff]  }
 0x3bd   : > { %v4805_v13 = vpop.eup %4804  ;;  %v1781_v14 = vpop.f32.mrf.mxu0 }
 0x3be   : > { %v1822_v15 = vpop.f32.mrf.mxu1  ;;  %v4807_v16 = vpop.eup %4806  ;;  %4810 = vpow2.f32 %v4321_v57  ;;  %v4322_v2 = vmul.f32 -1.442695, %v1826_v12  ;;  %v4323_v36 = vmul.f32 -1.442695, %v1828_v30  ;;  %8014 = vst [vmem:[#allocation54_spill] sm:$0xff] %v6373_v53  ;;  %v8019_v53 = vld [vmem:[#allocation39_spill] sm:$0xff] }
 0x3bf   : > { %v4809_v18 = vpop.eup %4808  ;;  %v1782_v20 = vpop.f32.mrf.mxu0  ;;  %v1720_v22 = vmul.f32 %v4807_v16, %v4805_v13  ;;  %v6386_v16 = vld [vmem:[#allocation12 + $0xe0] ss:$16 sps:$4 sm:$0xff]  }
 0x3c0   : > { %v1823_v21 = vpop.f32.mrf.mxu1  ;;  %v1719_v23 = vmul.f32 %v4809_v18, %v1393_v17  ;;  %4812 = vpow2.f32 %v4322_v2  ;;  %v6401_v20 = vld [vmem:[#allocation12 + $0xc0] ss:$16 sps:$4 sm:$0xff]  }
 0x3c1   : > { %4814 = vrcp.f32 %v1716_v19  ;;  %v6404_v21 = vld [vmem:[#allocation12 + $0xc8] ss:$16 sps:$4 sm:$0xff]   ;;  %v6417_v30 = vld [vmem:[#allocation12 + $0xa0] ss:$16 sps:$4 sm:$0xff]  }
 0x3c2   : > { %v1721_v25 = vadd.f32 %v1720_v22, %v1719_v23  ;;  %v6407_v22 = vpop.permute.xlu1 %1856 }
 0x3c4   : > { %4816 = vtanh.f32 %v1721_v25  ;;  %v1724_v29 = vsub.f32 %v1721_v25, %v1393_v17  ;;  %v6410_v25 = vld [vmem:[#allocation12 + $0xa4] ss:$16 sps:$4 sm:$0xff]  }
 0x3c5   : > { %4818 = vpow2.f32 %v4323_v36  ;;  %v6426_v36 = vld [vmem:[#allocation12 + $0x84] ss:$16 sps:$4 sm:$0xff]  }
 0x3c6   : > { %v1725_v31 = vmul.f32 %v1724_v29, %v6177_v60 }
 0x3c8   : > { %v6368_v24 = vadd.f32 %v1725_v31, %v1393_v17  ;;  %v6395_v17 = vld [vmem:[#allocation12 + $0xcc] ss:$16 sps:$4 sm:$0xff]   ;;  %v6420_v31 = vld [vmem:[#allocation12 + $0xa8] ss:$16 sps:$4 sm:$0xff]  }
 0x3cb   : > { %v4811_v37 = vpop.eup %4810 }
 0x3cc   : > { %v1832_v40 = vadd.f32 1.0, %v4811_v37  ;;  %v6429_v37 = vld [vmem:[#allocation12 + $0x8c] ss:$16 sps:$4 sm:$0xff]  }
 0x3cd   : > { %v4813_v41 = vpop.eup %4812 }
 0x3ce   : > { %4820 = vrcp.f32 %v1832_v40  ;;  %v1838_v56 = vadd.f32 1.0, %v4813_v41  ;;  %v4815_v48 = vpop.eup %4814  ;;  %v6435_v40 = vld [vmem:[#allocation12 + $0x88] ss:$16 sps:$4 sm:$0xff]   ;;  %v6438_v41 = vld [vmem:[#allocation12 + $0x64] ss:$16 sps:$4 sm:$0xff]  }
 0x3cf   : > { %4822 = vtanh.f32 %v1827_v38  ;;  %v6432_v38 = vld [vmem:[#allocation12 + $0x80] ss:$16 sps:$4 sm:$0xff]  }
 0x3d0   : > { %4824 = vrcp.f32 %v1838_v56  ;;  %v6444_v56 = vld [vmem:[#allocation12 + $0x60] ss:$16 sps:$4 sm:$0xff]  }
 0x3d1   : > { %v4817_v51 = vpop.eup %4816 }
 0x3d2   : > { %v1723_v49 = vmul.f32 %v4817_v51, %v4815_v48  ;;  %v4819_v12 = vpop.eup %4818  ;;  %v6447_v48 = vld [vmem:[#allocation12 + $0x68] ss:$16 sps:$4 sm:$0xff]  }
 0x3d3   : > { %v1845_v59 = vadd.f32 1.0, %v4819_v12 }
 0x3d4   : > { %v1727_v52 = vsub.f32 %v1723_v49, %v6162_v42  ;;  %v6376_v54 = vmul.f32 %v1723_v49, %v6177_v60  ;;  %v6450_v49 = vld [vmem:[#allocation12 + $0x44] ss:$16 sps:$4 sm:$0xff]  }
 0x3d5   : > { %4826 = vrcp.f32 %v1845_v59  ;;  %v6466_v59 = vld [vmem:[#allocation12 + $0x2c] ss:$16 sps:$4 sm:$0xff]  }
 0x3d6   : > { %8015 = vst [vmem:[#allocation56_spill] sm:$0xff] %v6376_v54  ;;  %v1728_v50 = vmul.f32 %v1727_v52, %v6177_v60  ;;  %v6389_v60 = vld [vmem:[#allocation12 + $0xe8] ss:$16 sps:$4 sm:$0xff]   ;;  %v6453_v52 = vld [vmem:[#allocation12 + $0x4c] ss:$16 sps:$4 sm:$0xff]   ;;  %v8020_v54 = vld [vmem:[#allocation36_spill] sm:$0xff] }
 0x3d8   : > { %v6382_v57 = vadd.f32 %v1728_v50, %v6162_v42  ;;  %v6392_v42 = vld [vmem:[#allocation12 + $0xc4] ss:$16 sps:$4 sm:$0xff]  }
 0x3da   : > { %v1865_v13 = vpack.c.bf16 %v6382_v57, %v6382_v57 }
 0x3db   : > { %v4821_v14 = vpop.eup %4820 }
 0x3dc   : > { %v4823_v15 = vpop.eup %4822  ;;  %1899 = vmatmul.mubr.bf16.vlgmr.msra.gmra.mxu0 %v1865_v13  ;;  %1940 = vmatmul.mubr.bf16.vlgmr.msra.gmra.mxu1 %v1865_v13  ;;  %v6456_v13 = vld [vmem:[#allocation12 + $0x40] ss:$16 sps:$4 sm:$0xff]  }
 0x3dd   : > { %v4825_v63 = vpop.eup %4824  ;;  %1949 = vmatpush1.bf16.msra.mxu0 %v6386_v16  ;;  %1990 = vmatpush1.bf16.msra.mxu1 %v6389_v60  ;;  %v1849_v18 = vmul.f32 %v4823_v15, %v4821_v14  ;;  %v6459_v14 = vld [vmem:[#allocation12 + $0x48] ss:$16 sps:$4 sm:$0xff]  }
 0x3de   : > { %1950 = vmatprep.subr.bf16.mxu0 %v6392_v42  ;;  %1991 = vmatprep.subr.bf16.mxu1 %v6395_v17  ;;  %v1848_v2 = vmul.f32 %v4825_v63, %v6184_v62  ;;  %v6463_v63 = vld [vmem:[#allocation12 + $0x24] ss:$16 sps:$4 sm:$0xff]  }
 0x3df   : > { %1980 = vmatprep.mubr.bf16.mxu0 %v7898_v39  ;;  %2021 = vmatprep.mubr.bf16.mxu1 %v7898_v39 }
 0x3e0   : > { %v1850_v19 = vadd.f32 %v1849_v18, %v1848_v2  ;;  %v6470_v18 = vld [vmem:[#allocation12 + $0x20] ss:$16 sps:$4 sm:$0xff]  }
 0x3e1   : > { %1951 = vmatpush1.bf16.msra.mxu0 %v6401_v20  ;;  %1992 = vmatpush1.bf16.msra.mxu1 %v6404_v21 }
 0x3e2   : > { %4828 = vtanh.f32 %v1850_v19  ;;  %v1853_v23 = vsub.f32 %v1850_v19, %v6184_v62  ;;  %1952 = vmatprep.subr.bf16.mxu0 %v6410_v25  ;;  %1993 = vmatprep.subr.bf16.mxu1 %v6413_v27  ;;  %v4827_v51 = vpop.eup %4826  ;;  %v6473_v19 = vld [vmem:[#allocation12 + $0x28] ss:$16 sps:$4 sm:$0xff]  }
 0x3e4   : > { %v1859_v29 = vmul.f32 %v6407_v22, %v1853_v23 }
 0x3e5   : > { %1953 = vmatpush1.bf16.msra.mxu0 %v6417_v30  ;;  %1994 = vmatpush1.bf16.msra.mxu1 %v6420_v31 }
 0x3e6   : > { %v6424_v34 = vadd.f32 %v1859_v29, %v6184_v62  ;;  %1954 = vmatprep.subr.bf16.mxu0 %v6426_v36  ;;  %1995 = vmatprep.subr.bf16.mxu1 %v6429_v37  ;;  %v6441_v62 = vld [vmem:[#allocation12 + $0x6c] ss:$16 sps:$4 sm:$0xff]   ;;  %v6479_v29 = vld [vmem:[#allocation12 + $0x4] ss:$16 sps:$4 sm:$0xff]  }
 0x3e9   : > { %1955 = vmatpush1.bf16.msra.mxu0 %v6432_v38  ;;  %1996 = vmatpush1.bf16.msra.mxu1 %v6435_v40 }
 0x3ea   : > { %1956 = vmatprep.subr.bf16.mxu0 %v6438_v41  ;;  %1997 = vmatprep.subr.bf16.mxu1 %v6441_v62 }
 0x3ed   : > { %1957 = vmatpush1.bf16.msra.mxu0 %v6444_v56  ;;  %1998 = vmatpush1.bf16.msra.mxu1 %v6447_v48 }
 0x3ee   : > { %1958 = vmatprep.subr.bf16.mxu0 %v6450_v49  ;;  %1999 = vmatprep.subr.bf16.mxu1 %v6453_v52 }
 0x3ef   : > { %v4829_v50 = vpop.eup %4828 }
 0x3f0   : > { %v1852_v12 = vmul.f32 %v4829_v50, %v4827_v51  ;;  %v6482_v51 = vld [vmem:[#allocation12 + $0xc] ss:$16 sps:$4 sm:$0xff]  }
 0x3f1   : > { %1959 = vmatpush1.bf16.msra.mxu0 %v6456_v13  ;;  %2000 = vmatpush1.bf16.msra.mxu1 %v6459_v14 }
 0x3f2   : > { %v1861_v15 = vsub.f32 %v1852_v12, %v6205_v4  ;;  %1960 = vmatprep.subr.bf16.mxu0 %v6463_v63  ;;  %2001 = vmatprep.subr.bf16.mxu1 %v6466_v59  ;;  %v6487_v12 = vld [vmem:[#allocation12] ss:$16 sps:$4 sm:$0xff]  }
 0x3f4   : > { %v1862_v2 = vmul.f32 %v1861_v15, %v6407_v22  ;;  %v6490_v15 = vld [vmem:[#allocation12 + $0x8] ss:$16 sps:$4 sm:$0xff]  }
 0x3f5   : > { %1961 = vmatpush1.bf16.msra.mxu0 %v6470_v18  ;;  %2002 = vmatpush1.bf16.msra.mxu1 %v6473_v19 }
 0x3f6   : > { %v6477_v23 = vadd.f32 %v1862_v2, %v6205_v4  ;;  %1962 = vmatprep.subr.bf16.mxu0 %v6479_v29  ;;  %2003 = vmatprep.subr.bf16.mxu1 %v6482_v51  ;;  %v8016_v4 = vld [vmem:[#allocation32_spill] sm:$0xff]  ;;  %v8017_v2 = vld [vmem:[#allocation37_spill] sm:$0xff] }
 0x3f8   : > { %v1864_v50 = vpack.c.bf16 %v6477_v23, %v6477_v23 }
 0x3f9   : > { %1963 = vmatpush1.bf16.msra.mxu0 %v6487_v12  ;;  %2004 = vmatpush1.bf16.msra.mxu1 %v6490_v15 }
 0x3fa   : > { %2077 = vmatprep.subr.bf16.mxu0 %v6213_v43  ;;  %2118 = vmatprep.subr.bf16.mxu1 %v6216_v46 }
 0x3fc   : > { %1981 = vmatmul.mubr.bf16.vlgmr.msra.gmra.mxu0 %v1864_v50  ;;  %2022 = vmatmul.mubr.bf16.vlgmr.msra.gmra.mxu1 %v1864_v50 }
 0x3fd   : > { %2078 = vmatpush1.bf16.msra.mxu0 %v6221_v47  ;;  %2119 = vmatpush1.bf16.msra.mxu1 %v6224_v33 }
 0x3fe   : > { %2079 = vmatprep.subr.bf16.mxu0 %v6227_v58  ;;  %2120 = vmatprep.subr.bf16.mxu1 %v6230_v10 }
 0x3ff   : > { %2109 = vmatprep.mubr.bf16.mxu0 %v7898_v39  ;;  %2150 = vmatprep.mubr.bf16.mxu1 %v7898_v39 }
 0x401   : > { %2080 = vmatpush1.bf16.msra.mxu0 %v6235_v35  ;;  %2121 = vmatpush1.bf16.msra.mxu1 %v6238_v9  ;;  %v8021_v35 = vld [vmem:[#allocation41_spill] sm:$0xff]  ;;  %v8022_v9 = vld [vmem:[#allocation38_spill] sm:$0xff] }
 0x402   : > { %2081 = vmatprep.subr.bf16.mxu0 %v6241_v1  ;;  %2122 = vmatprep.subr.bf16.mxu1 %v6244_v11  ;;  %v8023_v1 = vld [vmem:[#allocation43_spill] sm:$0xff]  ;;  %v8024_v11 = vld [vmem:[#allocation40_spill] sm:$0xff] }
 0x405   : > { %2082 = vmatpush1.bf16.msra.mxu0 %v6247_v45  ;;  %2123 = vmatpush1.bf16.msra.mxu1 %v6250_v5  ;;  %v8025_v45 = vld [vmem:[#allocation45_spill] sm:$0xff]  ;;  %v8026_v5 = vld [vmem:[#allocation42_spill] sm:$0xff] }
 0x406   : > { %2083 = vmatprep.subr.bf16.mxu0 %v8016_v4  ;;  %2124 = vmatprep.subr.bf16.mxu1 %v8017_v2  ;;  %v8027_v4 = vld [vmem:[#allocation46_spill] sm:$0xff]  ;;  %v8028_v2 = vld [vmem:[#allocation47_spill] sm:$0xff] }
 0x409   : > { %2084 = vmatpush1.bf16.msra.mxu0 %v8018_v55  ;;  %2125 = vmatpush1.bf16.msra.mxu1 %v8019_v53  ;;  %v8029_v55 = vld [vmem:[#allocation48_spill] sm:$0xff] }
 0x40a   : > { %2085 = vmatprep.subr.bf16.mxu0 %v8020_v54  ;;  %2126 = vmatprep.subr.bf16.mxu1 %v8021_v35  ;;  %v8030_v53 = vld [vmem:[#allocation24_spill] sm:$0xff]  ;;  %v8031_v35 = vld [vmem:[#allocation49_spill] sm:$0xff] }
 0x40d   : > { %2086 = vmatpush1.bf16.msra.mxu0 %v8022_v9  ;;  %2127 = vmatpush1.bf16.msra.mxu1 %v8023_v1 }
 0x40e   : > { %2087 = vmatprep.subr.bf16.mxu0 %v8024_v11  ;;  %2128 = vmatprep.subr.bf16.mxu1 %v8025_v45 }
 0x411   : > { %2088 = vmatpush1.bf16.msra.mxu0 %v8026_v5  ;;  %2129 = vmatpush1.bf16.msra.mxu1 %v8027_v4  ;;  %v6528_v5 = vld [vmem:[#allocation13 + $0xec] ss:$16 sps:$4 sm:$0xff]  }
 0x412   : > { %2089 = vmatprep.subr.bf16.mxu0 %v8028_v2  ;;  %2130 = vmatprep.subr.bf16.mxu1 %v8029_v55  ;;  %8032 = vst [vmem:[#allocation57_spill] sm:$0xff] %v6528_v5 }
 0x415   : > { %2090 = vmatpush1.bf16.msra.mxu0 %v8030_v53  ;;  %2131 = vmatpush1.bf16.msra.mxu1 %v6298_v26  ;;  %v6532_v53 = vld [vmem:[#allocation13 + $0xe8] ss:$16 sps:$4 sm:$0xff]  }
 0x416   : > { %2091 = vmatprep.subr.bf16.mxu0 %v8031_v35  ;;  %2132 = vmatprep.subr.bf16.mxu1 %v6304_v32  ;;  %8033 = vst [vmem:[#allocation58_spill] sm:$0xff] %v6532_v53  ;;  %v6535_v35 = vld [vmem:[#allocation13 + $0xc4] ss:$16 sps:$4 sm:$0xff]  }
 0x417   : > { %8034 = vst [vmem:[#allocation59_spill] sm:$0xff] %v6535_v35 }
 0x419   : > { %2092 = vmatpush1.bf16.msra.mxu0 %v6307_v8  ;;  %2133 = vmatpush1.bf16.msra.mxu1 %v6310_v7  ;;  %v6538_v8 = vld [vmem:[#allocation13 + $0xcc] ss:$16 sps:$4 sm:$0xff]  }
 0x41a   : > { %2200 = vmatprep.subr.bf16.mxu0 %v6313_v6  ;;  %2241 = vmatprep.subr.bf16.mxu1 %v6528_v5  ;;  %8035 = vst [vmem:[#allocation60_spill] sm:$0xff] %v6538_v8  ;;  %v6543_v5 = vld [vmem:[#allocation13 + $0xc0] ss:$16 sps:$4 sm:$0xff]  }
 0x41b   : > { %8036 = vst [vmem:[#allocation61_spill] sm:$0xff] %v6543_v5 }
 0x41c   : > { %2110 = vmatmul.mubr.bf16.vlgmr.msra.gmra.mxu0 %v1864_v50  ;;  %2151 = vmatmul.mubr.bf16.vlgmr.msra.gmra.mxu1 %v1864_v50  ;;  %v6546_v50 = vld [vmem:[#allocation13 + $0xc8] ss:$16 sps:$4 sm:$0xff]  }
 0x41d   : > { %2201 = vmatpush1.bf16.msra.mxu0 %v6319_v0  ;;  %2242 = vmatpush1.bf16.msra.mxu1 %v6532_v53  ;;  %8037 = vst [vmem:[#allocation62_spill] sm:$0xff] %v6546_v50  ;;  %v6549_v53 = vld [vmem:[#allocation13 + $0xa4] ss:$16 sps:$4 sm:$0xff]   ;;  %v6558_v0 = vld [vmem:[#allocation13 + $0xa8] ss:$16 sps:$4 sm:$0xff]  }
 0x41e   : > { %2202 = vmatprep.subr.bf16.mxu0 %v6535_v35  ;;  %2243 = vmatprep.subr.bf16.mxu1 %v6538_v8  ;;  %8038 = vst [vmem:[#allocation63_spill] sm:$0xff] %v6549_v53  ;;  %v6552_v35 = vld [vmem:[#allocation13 + $0xac] ss:$16 sps:$4 sm:$0xff]   ;;  %v6555_v8 = vld [vmem:[#allocation13 + $0xa0] ss:$16 sps:$4 sm:$0xff]   ;;  %8041 = vst [vmem:[#allocation66_spill] sm:$0xff] %v6558_v0 }
 0x41f   : > { %2232 = vmatprep.mubr.bf16.mxu0 %v7898_v39  ;;  %2273 = vmatprep.mubr.bf16.mxu1 %v7898_v39  ;;  %8039 = vst [vmem:[#allocation64_spill] sm:$0xff] %v6552_v35  ;;  %8040 = vst [vmem:[#allocation65_spill] sm:$0xff] %v6555_v8 }
 0x421   : > { %2203 = vmatpush1.bf16.msra.mxu0 %v6543_v5  ;;  %2244 = vmatpush1.bf16.msra.mxu1 %v6546_v50  ;;  %v6561_v5 = vld [vmem:[#allocation13 + $0x84] ss:$16 sps:$4 sm:$0xff]   ;;  %v6564_v50 = vld [vmem:[#allocation13 + $0x8c] ss:$16 sps:$4 sm:$0xff]  }
 0x422   : > { %2204 = vmatprep.subr.bf16.mxu0 %v6549_v53  ;;  %2245 = vmatprep.subr.bf16.mxu1 %v6552_v35  ;;  %8042 = vst [vmem:[#allocation67_spill] sm:$0xff] %v6561_v5  ;;  %8043 = vst [vmem:[#allocation68_spill] sm:$0xff] %v6564_v50  ;;  %v6567_v53 = vld [vmem:[#allocation13 + $0x80] ss:$16 sps:$4 sm:$0xff]   ;;  %v6570_v35 = vld [vmem:[#allocation13 + $0x88] ss:$16 sps:$4 sm:$0xff]  }
 0x423   : > { %8044 = vst [vmem:[#allocation69_spill] sm:$0xff] %v6567_v53  ;;  %8045 = vst [vmem:[#allocation70_spill] sm:$0xff] %v6570_v35 }
 0x425   : > { %2205 = vmatpush1.bf16.msra.mxu0 %v6555_v8  ;;  %2246 = vmatpush1.bf16.msra.mxu1 %v6558_v0  ;;  %v6573_v8 = vld [vmem:[#allocation13 + $0x64] ss:$16 sps:$4 sm:$0xff]   ;;  %v6576_v0 = vld [vmem:[#allocation13 + $0x6c] ss:$16 sps:$4 sm:$0xff]  }
 0x426   : > { %2206 = vmatprep.subr.bf16.mxu0 %v6561_v5  ;;  %2247 = vmatprep.subr.bf16.mxu1 %v6564_v50  ;;  %8046 = vst [vmem:[#allocation71_spill] sm:$0xff] %v6573_v8  ;;  %8047 = vst [vmem:[#allocation72_spill] sm:$0xff] %v6576_v0  ;;  %v6579_v5 = vld [vmem:[#allocation13 + $0x60] ss:$16 sps:$4 sm:$0xff]   ;;  %v6582_v50 = vld [vmem:[#allocation13 + $0x68] ss:$16 sps:$4 sm:$0xff]  }
 0x427   : > { %8048 = vst [vmem:[#allocation73_spill] sm:$0xff] %v6579_v5  ;;  %8049 = vst [vmem:[#allocation74_spill] sm:$0xff] %v6582_v50 }
 0x429   : > { %2207 = vmatpush1.bf16.msra.mxu0 %v6567_v53  ;;  %2248 = vmatpush1.bf16.msra.mxu1 %v6570_v35  ;;  %v6585_v53 = vld [vmem:[#allocation13 + $0x44] ss:$16 sps:$4 sm:$0xff]   ;;  %v6588_v35 = vld [vmem:[#allocation13 + $0x4c] ss:$16 sps:$4 sm:$0xff]  }
 0x42a   : > { %2208 = vmatprep.subr.bf16.mxu0 %v6573_v8  ;;  %2249 = vmatprep.subr.bf16.mxu1 %v6576_v0  ;;  %8050 = vst [vmem:[#allocation75_spill] sm:$0xff] %v6585_v53  ;;  %8051 = vst [vmem:[#allocation76_spill] sm:$0xff] %v6588_v35  ;;  %v6591_v8 = vld [vmem:[#allocation13 + $0x40] ss:$16 sps:$4 sm:$0xff]   ;;  %v6594_v0 = vld [vmem:[#allocation13 + $0x48] ss:$16 sps:$4 sm:$0xff]  }
 0x42b   : > { %8052 = vst [vmem:[#allocation77_spill] sm:$0xff] %v6591_v8  ;;  %8053 = vst [vmem:[#allocation78_spill] sm:$0xff] %v6594_v0 }
 0x42d   : > { %2209 = vmatpush1.bf16.msra.mxu0 %v6579_v5  ;;  %2250 = vmatpush1.bf16.msra.mxu1 %v6582_v50  ;;  %v6597_v5 = vld [vmem:[#allocation13 + $0x24] ss:$16 sps:$4 sm:$0xff]   ;;  %v6600_v50 = vld [vmem:[#allocation13 + $0x2c] ss:$16 sps:$4 sm:$0xff]  }
 0x42e   : > { %2210 = vmatprep.subr.bf16.mxu0 %v6585_v53  ;;  %2251 = vmatprep.subr.bf16.mxu1 %v6588_v35  ;;  %8054 = vst [vmem:[#allocation79_spill] sm:$0xff] %v6597_v5  ;;  %8055 = vst [vmem:[#allocation80_spill] sm:$0xff] %v6600_v50  ;;  %v6603_v53 = vld [vmem:[#allocation13 + $0x20] ss:$16 sps:$4 sm:$0xff]   ;;  %v6606_v35 = vld [vmem:[#allocation13 + $0x28] ss:$16 sps:$4 sm:$0xff]  }
 0x42f   : > { %8056 = vst [vmem:[#allocation81_spill] sm:$0xff] %v6603_v53  ;;  %8057 = vst [vmem:[#allocation82_spill] sm:$0xff] %v6606_v35 }
 0x431   : > { %2211 = vmatpush1.bf16.msra.mxu0 %v6591_v8  ;;  %2252 = vmatpush1.bf16.msra.mxu1 %v6594_v0  ;;  %v6609_v8 = vld [vmem:[#allocation13 + $0x4] ss:$16 sps:$4 sm:$0xff]   ;;  %v6612_v0 = vld [vmem:[#allocation13 + $0xc] ss:$16 sps:$4 sm:$0xff]  }
 0x432   : > { %2212 = vmatprep.subr.bf16.mxu0 %v6597_v5  ;;  %2253 = vmatprep.subr.bf16.mxu1 %v6600_v50  ;;  %8058 = vst [vmem:[#allocation83_spill] sm:$0xff] %v6609_v8  ;;  %8059 = vst [vmem:[#allocation84_spill] sm:$0xff] %v6612_v0  ;;  %v6615_v5 = vld [vmem:[#allocation13] ss:$16 sps:$4 sm:$0xff]   ;;  %v6618_v50 = vld [vmem:[#allocation13 + $0x8] ss:$16 sps:$4 sm:$0xff]  }
 0x433   : > { %8060 = vst [vmem:[#allocation85_spill] sm:$0xff] %v6615_v5  ;;  %8061 = vst [vmem:[#allocation86_spill] sm:$0xff] %v6618_v50 }
 0x435   : > { %2213 = vmatpush1.bf16.msra.mxu0 %v6603_v53  ;;  %2254 = vmatpush1.bf16.msra.mxu1 %v6606_v35  ;;  %v6621_v53 = vld [vmem:[#allocation12 + $0xe4] ss:$16 sps:$4 sm:$0xff]   ;;  %v6624_v35 = vld [vmem:[#allocation12 + $0xec] ss:$16 sps:$4 sm:$0xff]  }
 0x436   : > { %2214 = vmatprep.subr.bf16.mxu0 %v6609_v8  ;;  %2255 = vmatprep.subr.bf16.mxu1 %v6612_v0  ;;  %8062 = vst [vmem:[#allocation87_spill] sm:$0xff] %v6621_v53  ;;  %8063 = vst [vmem:[#allocation88_spill] sm:$0xff] %v6624_v35 }
 0x439   : > { %2215 = vmatpush1.bf16.msra.mxu0 %v6615_v5  ;;  %2256 = vmatpush1.bf16.msra.mxu1 %v6618_v50 }
 0x43a   : > { %2282 = vmatprep.subr.bf16.mxu0 %v6621_v53  ;;  %2323 = vmatprep.subr.bf16.mxu1 %v6624_v35 }
 0x49c   : > { %v1900_v8 = vpop.f32.mrf.mxu0  ;;  %v1941_v6 = vpop.f32.mrf.mxu1 }
 0x49e   : > { %v1902_v7 = vpop.f32.mrf.mxu0  ;;  %v1943_v0 = vpop.f32.mrf.mxu1 }
 0x4a0   : > { %v1904_v32 = vpop.f32.mrf.mxu0  ;;  %v1945_v26 = vpop.f32.mrf.mxu1 }
 0x4a2   : > { %v1905_v55 = vpop.f32.mrf.mxu0  ;;  %v1946_v5 = vpop.f32.mrf.mxu1 }
 0x4bc   : > { %v1982_v2 = vpop.f32.mrf.mxu0  ;;  %v2023_v4 = vpop.f32.mrf.mxu1 }
 0x4bd   : > { %v1983_v45 = vadd.f32 %v1982_v2, %v1900_v8  ;;  %v2024_v32 = vadd.f32 %v2023_v4, %v1941_v6 }
 0x4be   : > { %v1984_v50 = vpop.f32.mrf.mxu0  ;;  %v2025_v11 = vpop.f32.mrf.mxu1 }
 0x4bf   : > { %v2030_v1 = vadd.f32 %v1983_v45, %v6117_v28  ;;  %v1985_v53 = vadd.f32 %v1984_v50, %v1902_v7  ;;  %v2026_v5 = vadd.f32 %v2025_v11, %v1943_v0  ;;  %v2032_v45 = vadd.f32 %v2024_v32, %v6138_v61 }
 0x4c0   : > { %v1986_v9 = vpop.f32.mrf.mxu0  ;;  %v2027_v54 = vpop.f32.mrf.mxu1 }
 0x4c1   : > { %v4324_v10 = vmul.f32 -1.442695, %v2030_v1  ;;  %v2031_v35 = vadd.f32 %v1985_v53, %v6119_v44  ;;  %v2033_v8 = vadd.f32 %v2026_v5, %v6131_v3 }
 0x4c2   : > { %v1987_v58 = vpop.f32.mrf.mxu0  ;;  %v2028_v33 = vpop.f32.mrf.mxu1 }
 0x4c3   : > { %4830 = vpow2.f32 %v4324_v10  ;;  %v4325_v26 = vmul.f32 -1.442695, %v2031_v35  ;;  %v4326_v55 = vmul.f32 -1.442695, %v2033_v8  ;;  %v4328_v33 = vld [vmem:[%s5674_s24 + $0x60] sm:$0xff]  ;;  %v4329_v35 = vld [vmem:[%s5674_s24 + $0x68] sm:$0xff] }
 0x4c5   : > { %4832 = vpow2.f32 %v4325_v26 }
 0x4c6   : > { %4834 = vpow2.f32 %v4326_v55 }
 0x4d0   : > { %v4831_v2 = vpop.eup %4830 }
 0x4d1   : > { %v2037_v9 = vadd.f32 1.0, %v4831_v2 }
 0x4d2   : > { %v4833_v7 = vpop.eup %4832 }
 0x4d3   : > { %4836 = vrcp.f32 %v2037_v9  ;;  %v2043_v1 = vadd.f32 1.0, %v4833_v7  ;;  %v4835_v54 = vpop.eup %4834 }
 0x4d4   : > { %4838 = vtanh.f32 %v2032_v45  ;;  %v2050_v2 = vadd.f32 1.0, %v4835_v54 }
 0x4d5   : > { %4840 = vrcp.f32 %v2043_v1 }
 0x4dc   : > { %v2111_v58 = vpop.f32.mrf.mxu0  ;;  %v2152_v10 = vpop.f32.mrf.mxu1 }
 0x4dd   : > { %v2159_v11 = vadd.f32 %v4328_v33, %v2111_v58  ;;  %v4331_v58 = vld [vmem:[%s5674_s24 + $0x78] sm:$0xff] }
 0x4de   : > { %v2113_v0 = vpop.f32.mrf.mxu0  ;;  %v2154_v53 = vpop.f32.mrf.mxu1 }
 0x4df   : > { %v4332_v6 = vmul.f32 -1.442695, %v2159_v11  ;;  %v2160_v4 = vadd.f32 %v4329_v35, %v2113_v0  ;;  %v2162_v11 = vadd.f32 %v4331_v58, %v2154_v53 }
 0x4e0   : > { %v4837_v50 = vpop.eup %4836  ;;  %v2115_v26 = vpop.f32.mrf.mxu0 }
 0x4e1   : > { %v2156_v5 = vpop.f32.mrf.mxu1  ;;  %v4839_v8 = vpop.eup %4838  ;;  %4842 = vpow2.f32 %v4332_v6  ;;  %v4333_v32 = vmul.f32 -1.442695, %v2160_v4  ;;  %v4330_v6 = vld [vmem:[%s5674_s24 + $0x70] sm:$0xff]  ;;  %v4334_v54 = vmul.f32 -1.442695, %v2162_v11 }
 0x4e2   : > { %v4841_v55 = vpop.eup %4840  ;;  %v2116_v45 = vpop.f32.mrf.mxu0  ;;  %v2054_v7 = vmul.f32 %v4839_v8, %v4837_v50  ;;  %v2161_v5 = vadd.f32 %v4330_v6, %v2152_v10 }
 0x4e3   : > { %v2157_v9 = vpop.f32.mrf.mxu1  ;;  %v2053_v1 = vmul.f32 %v4841_v55, %v6368_v24  ;;  %4844 = vpow2.f32 %v4333_v32 }
 0x4e4   : > { %4846 = vrcp.f32 %v2050_v2 }
 0x4e5   : > { %v2055_v33 = vadd.f32 %v2054_v7, %v2053_v1 }
 0x4e7   : > { %4848 = vtanh.f32 %v2055_v33  ;;  %v2058_v35 = vsub.f32 %v2055_v33, %v6368_v24 }
 0x4e8   : > { %4850 = vpow2.f32 %v4334_v54  ;;  %v6663_v54 = vpop.permute.xlu1 %2190 }
 0x4e9   : > { %v2059_v0 = vmul.f32 %v2058_v35, %v6407_v22 }
 0x4eb   : > { %v6639_v4 = vadd.f32 %v2059_v0, %v6368_v24 }
 0x4ee   : > { %v4843_v26 = vpop.eup %4842 }
 0x4ef   : > { %v2166_v50 = vadd.f32 1.0, %v4843_v26 }
 0x4f0   : > { %v4845_v8 = vpop.eup %4844 }
 0x4f1   : > { %4852 = vrcp.f32 %v2166_v50  ;;  %v2172_v32 = vadd.f32 1.0, %v4845_v8  ;;  %v4847_v55 = vpop.eup %4846 }
 0x4f2   : > { %4854 = vtanh.f32 %v2161_v5 }
 0x4f3   : > { %4856 = vrcp.f32 %v2172_v32 }
 0x4f4   : > { %v4849_v2 = vpop.eup %4848 }
 0x4f5   : > { %v6641_v45 = vmul.f32 %v4849_v2, %v4847_v55  ;;  %v4851_v10 = vpop.eup %4850 }
 0x4f6   : > { %v2179_v35 = vadd.f32 1.0, %v4851_v10  ;;  %v8065_v10 = vld [vmem:[#allocation25_spill] sm:$0xff] }
 0x4f7   : > { %v2061_v53 = vsub.f32 %v6641_v45, %v6382_v57 }
 0x4f8   : > { %4858 = vrcp.f32 %v2179_v35  ;;  %v8074_v35 = vld [vmem:[#allocation37_spill] sm:$0xff] }
 0x4f9   : > { %v2062_v24 = vmul.f32 %v2061_v53, %v6407_v22 }
 0x4fb   : > { %v6647_v9 = vadd.f32 %v2062_v24, %v6382_v57  ;;  %v8064_v24 = vld [vmem:[#allocation27_spill] sm:$0xff] }
 0x4fd   : > { %v2199_v7 = vpack.c.bf16 %v6647_v9, %v6647_v9 }
 0x4fe   : > { %v4853_v1 = vpop.eup %4852 }
 0x4ff   : > { %v4855_v33 = vpop.eup %4854  ;;  %2233 = vmatmul.mubr.bf16.vlgmr.msra.gmra.mxu0 %v2199_v7  ;;  %2274 = vmatmul.mubr.bf16.vlgmr.msra.gmra.mxu1 %v2199_v7  ;;  %v8067_v7 = vld [vmem:[#allocation26_spill] sm:$0xff] }
 0x500   : > { %v4857_v58 = vpop.eup %4856  ;;  %2283 = vmatpush1.bf16.msra.mxu0 %v6386_v16  ;;  %2324 = vmatpush1.bf16.msra.mxu1 %v6389_v60  ;;  %v2183_v11 = vmul.f32 %v4855_v33, %v4853_v1  ;;  %v8068_v1 = vld [vmem:[#allocation31_spill] sm:$0xff]  ;;  %v8071_v33 = vld [vmem:[#allocation30_spill] sm:$0xff] }
 0x501   : > { %v2182_v0 = vmul.f32 %v4857_v58, %v6424_v34  ;;  %2284 = vmatprep.subr.bf16.mxu0 %v6392_v42  ;;  %2325 = vmatprep.subr.bf16.mxu1 %v6395_v17  ;;  %v8073_v58 = vld [vmem:[#allocation32_spill] sm:$0xff] }
 0x502   : > { %2314 = vmatprep.mubr.bf16.mxu0 %v7898_v39  ;;  %2355 = vmatprep.mubr.bf16.mxu1 %v7898_v39 }
 0x503   : > { %v2184_v57 = vadd.f32 %v2183_v11, %v2182_v0  ;;  %v8075_v11 = vld [vmem:[#allocation34_spill] sm:$0xff]  ;;  %v8076_v0 = vld [vmem:[#allocation39_spill] sm:$0xff] }
 0x504   : > { %2285 = vmatpush1.bf16.msra.mxu0 %v6401_v20  ;;  %2326 = vmatpush1.bf16.msra.mxu1 %v6404_v21 }
 0x505   : > { %4860 = vtanh.f32 %v2184_v57  ;;  %v2187_v6 = vsub.f32 %v2184_v57, %v6424_v34  ;;  %2286 = vmatprep.subr.bf16.mxu0 %v6410_v25  ;;  %2327 = vmatprep.subr.bf16.mxu1 %v6413_v27  ;;  %v4859_v50 = vpop.eup %4858  ;;  %v8077_v57 = vld [vmem:[#allocation36_spill] sm:$0xff] }
 0x507   : > { %v2193_v26 = vmul.f32 %v6663_v54, %v2187_v6  ;;  %v8078_v6 = vld [vmem:[#allocation41_spill] sm:$0xff] }
 0x508   : > { %2287 = vmatpush1.bf16.msra.mxu0 %v6417_v30  ;;  %2328 = vmatpush1.bf16.msra.mxu1 %v6420_v31 }
 0x509   : > { %2288 = vmatprep.subr.bf16.mxu0 %v6426_v36  ;;  %2329 = vmatprep.subr.bf16.mxu1 %v6429_v37  ;;  %v6671_v5 = vadd.f32 %v2193_v26, %v6424_v34  ;;  %v8079_v26 = vld [vmem:[#allocation38_spill] sm:$0xff] }
 0x50c   : > { %2289 = vmatpush1.bf16.msra.mxu0 %v6432_v38  ;;  %2330 = vmatpush1.bf16.msra.mxu1 %v6435_v40 }
 0x50d   : > { %2290 = vmatprep.subr.bf16.mxu0 %v6438_v41  ;;  %2331 = vmatprep.subr.bf16.mxu1 %v6441_v62 }
 0x510   : > { %2291 = vmatpush1.bf16.msra.mxu0 %v6444_v56  ;;  %2332 = vmatpush1.bf16.msra.mxu1 %v6447_v48 }
 0x511   : > { %2292 = vmatprep.subr.bf16.mxu0 %v6450_v49  ;;  %2333 = vmatprep.subr.bf16.mxu1 %v6453_v52 }
 0x512   : > { %v4861_v8 = vpop.eup %4860 }
 0x513   : > { %v2186_v34 = vmul.f32 %v4861_v8, %v4859_v50  ;;  %v8080_v50 = vld [vmem:[#allocation43_spill] sm:$0xff]  ;;  %v8081_v8 = vld [vmem:[#allocation40_spill] sm:$0xff] }
 0x514   : > { %2293 = vmatpush1.bf16.msra.mxu0 %v6456_v13  ;;  %2334 = vmatpush1.bf16.msra.mxu1 %v6459_v14 }
 0x515   : > { %2294 = vmatprep.subr.bf16.mxu0 %v6463_v63  ;;  %2335 = vmatprep.subr.bf16.mxu1 %v6466_v59  ;;  %v2195_v32 = vsub.f32 %v2186_v34, %v6477_v23  ;;  %v8082_v34 = vld [vmem:[#allocation45_spill] sm:$0xff] }
 0x517   : > { %v2196_v55 = vmul.f32 %v2195_v32, %v6663_v54  ;;  %v8083_v32 = vld [vmem:[#allocation42_spill] sm:$0xff] }
 0x518   : > { %2295 = vmatpush1.bf16.msra.mxu0 %v6470_v18  ;;  %2336 = vmatpush1.bf16.msra.mxu1 %v6473_v19 }
 0x519   : > { %2296 = vmatprep.subr.bf16.mxu0 %v6479_v29  ;;  %2337 = vmatprep.subr.bf16.mxu1 %v6482_v51  ;;  %v6692_v2 = vadd.f32 %v2196_v55, %v6477_v23  ;;  %v8066_v23 = vld [vmem:[#allocation29_spill] sm:$0xff]  ;;  %v8084_v55 = vld [vmem:[#allocation46_spill] sm:$0xff] }
 0x51b   : > { %v2198_v53 = vpack.c.bf16 %v6692_v2, %v6692_v2 }
 0x51c   : > { %2297 = vmatpush1.bf16.msra.mxu0 %v6487_v12  ;;  %2338 = vmatpush1.bf16.msra.mxu1 %v6490_v15 }
 0x51d   : > { %2411 = vmatprep.subr.bf16.mxu0 %v6213_v43  ;;  %2452 = vmatprep.subr.bf16.mxu1 %v6216_v46  ;;  %v8069_v43 = vld [vmem:[#allocation28_spill] sm:$0xff]  ;;  %v8070_v46 = vld [vmem:[#allocation33_spill] sm:$0xff] }
 0x51f   : > { %2315 = vmatmul.mubr.bf16.vlgmr.msra.gmra.mxu0 %v2198_v53  ;;  %2356 = vmatmul.mubr.bf16.vlgmr.msra.gmra.mxu1 %v2198_v53 }
 0x520   : > { %2412 = vmatpush1.bf16.msra.mxu0 %v6221_v47  ;;  %2453 = vmatpush1.bf16.msra.mxu1 %v8064_v24  ;;  %v8072_v47 = vld [vmem:[#allocation35_spill] sm:$0xff] }
 0x521   : > { %2413 = vmatprep.subr.bf16.mxu0 %v8065_v10  ;;  %2454 = vmatprep.subr.bf16.mxu1 %v8066_v23  ;;  %v8085_v24 = vld [vmem:[#allocation47_spill] sm:$0xff]  ;;  %v8086_v10 = vld [vmem:[#allocation48_spill] sm:$0xff] }
 0x522   : > { %2443 = vmatprep.mubr.bf16.mxu0 %v7898_v39  ;;  %2484 = vmatprep.mubr.bf16.mxu1 %v7898_v39  ;;  %v8087_v23 = vld [vmem:[#allocation24_spill] sm:$0xff] }
 0x524   : > { %2414 = vmatpush1.bf16.msra.mxu0 %v8067_v7  ;;  %2455 = vmatpush1.bf16.msra.mxu1 %v8068_v1  ;;  %v8088_v7 = vld [vmem:[#allocation44_spill] sm:$0xff]  ;;  %v8089_v1 = vld [vmem:[#allocation49_spill] sm:$0xff] }
 0x525   : > { %2415 = vmatprep.subr.bf16.mxu0 %v8069_v43  ;;  %2456 = vmatprep.subr.bf16.mxu1 %v8070_v46  ;;  %v8090_v43 = vld [vmem:[#allocation51_spill] sm:$0xff]  ;;  %v8091_v46 = vld [vmem:[#allocation50_spill] sm:$0xff] }
 0x528   : > { %2416 = vmatpush1.bf16.msra.mxu0 %v8071_v33  ;;  %2457 = vmatpush1.bf16.msra.mxu1 %v8072_v47  ;;  %v8092_v33 = vld [vmem:[#allocation52_spill] sm:$0xff]  ;;  %v8093_v47 = vld [vmem:[#allocation53_spill] sm:$0xff] }
 0x529   : > { %2417 = vmatprep.subr.bf16.mxu0 %v8073_v58  ;;  %2458 = vmatprep.subr.bf16.mxu1 %v8074_v35  ;;  %v8094_v58 = vld [vmem:[#allocation57_spill] sm:$0xff]  ;;  %v8095_v35 = vld [vmem:[#allocation55_spill] sm:$0xff] }
 0x52c   : > { %2418 = vmatpush1.bf16.msra.mxu0 %v8075_v11  ;;  %2459 = vmatpush1.bf16.msra.mxu1 %v8076_v0  ;;  %v8096_v11 = vld [vmem:[#allocation58_spill] sm:$0xff]  ;;  %v8097_v0 = vld [vmem:[#allocation59_spill] sm:$0xff] }
 0x52d   : > { %2419 = vmatprep.subr.bf16.mxu0 %v8077_v57  ;;  %2460 = vmatprep.subr.bf16.mxu1 %v8078_v6  ;;  %v8098_v57 = vld [vmem:[#allocation60_spill] sm:$0xff]  ;;  %v8099_v6 = vld [vmem:[#allocation61_spill] sm:$0xff] }
 0x530   : > { %2420 = vmatpush1.bf16.msra.mxu0 %v8079_v26  ;;  %2461 = vmatpush1.bf16.msra.mxu1 %v8080_v50  ;;  %v8100_v26 = vld [vmem:[#allocation62_spill] sm:$0xff]  ;;  %v8101_v50 = vld [vmem:[#allocation63_spill] sm:$0xff] }
 0x531   : > { %2421 = vmatprep.subr.bf16.mxu0 %v8081_v8  ;;  %2462 = vmatprep.subr.bf16.mxu1 %v8082_v34  ;;  %v8102_v8 = vld [vmem:[#allocation64_spill] sm:$0xff]  ;;  %v8104_v34 = vld [vmem:[#allocation66_spill] sm:$0xff] }
 0x534   : > { %2422 = vmatpush1.bf16.msra.mxu0 %v8083_v32  ;;  %2463 = vmatpush1.bf16.msra.mxu1 %v8084_v55  ;;  %v8105_v32 = vld [vmem:[#allocation67_spill] sm:$0xff]  ;;  %v8106_v55 = vld [vmem:[#allocation68_spill] sm:$0xff] }
 0x535   : > { %2423 = vmatprep.subr.bf16.mxu0 %v8085_v24  ;;  %2464 = vmatprep.subr.bf16.mxu1 %v8086_v10  ;;  %v8107_v24 = vld [vmem:[#allocation69_spill] sm:$0xff]  ;;  %v8108_v10 = vld [vmem:[#allocation70_spill] sm:$0xff] }
 0x538   : > { %2424 = vmatpush1.bf16.msra.mxu0 %v8087_v23  ;;  %2465 = vmatpush1.bf16.msra.mxu1 %v8088_v7  ;;  %v8109_v23 = vld [vmem:[#allocation71_spill] sm:$0xff]  ;;  %v8110_v7 = vld [vmem:[#allocation72_spill] sm:$0xff] }
 0x539   : > { %2425 = vmatprep.subr.bf16.mxu0 %v8089_v1  ;;  %2466 = vmatprep.subr.bf16.mxu1 %v8090_v43  ;;  %v8111_v1 = vld [vmem:[#allocation73_spill] sm:$0xff]  ;;  %v8112_v43 = vld [vmem:[#allocation74_spill] sm:$0xff] }
 0x53c   : > { %2426 = vmatpush1.bf16.msra.mxu0 %v8091_v46  ;;  %2467 = vmatpush1.bf16.msra.mxu1 %v8092_v33  ;;  %v8113_v46 = vld [vmem:[#allocation75_spill] sm:$0xff]  ;;  %v8114_v33 = vld [vmem:[#allocation76_spill] sm:$0xff] }
 0x53d   : > { %2534 = vmatprep.subr.bf16.mxu0 %v8093_v47  ;;  %2575 = vmatprep.subr.bf16.mxu1 %v8094_v58  ;;  %v8115_v47 = vld [vmem:[#allocation77_spill] sm:$0xff] }
 0x53f   : > { %2444 = vmatmul.mubr.bf16.vlgmr.msra.gmra.mxu0 %v2198_v53  ;;  %2485 = vmatmul.mubr.bf16.vlgmr.msra.gmra.mxu1 %v2198_v53  ;;  %v8103_v53 = vld [vmem:[#allocation65_spill] sm:$0xff] }
 0x540   : > { %2535 = vmatpush1.bf16.msra.mxu0 %v8095_v35  ;;  %2576 = vmatpush1.bf16.msra.mxu1 %v8096_v11  ;;  %v8116_v35 = vld [vmem:[#allocation78_spill] sm:$0xff] }
 0x541   : > { %2536 = vmatprep.subr.bf16.mxu0 %v8097_v0  ;;  %2577 = vmatprep.subr.bf16.mxu1 %v8098_v57 }
 0x542   : > { %2566 = vmatprep.mubr.bf16.mxu0 %v7898_v39  ;;  %2607 = vmatprep.mubr.bf16.mxu1 %v7898_v39 }
 0x544   : > { %2537 = vmatpush1.bf16.msra.mxu0 %v8099_v6  ;;  %2578 = vmatpush1.bf16.msra.mxu1 %v8100_v26 }
 0x545   : > { %2538 = vmatprep.subr.bf16.mxu0 %v8101_v50  ;;  %2579 = vmatprep.subr.bf16.mxu1 %v8102_v8 }
 0x548   : > { %2539 = vmatpush1.bf16.msra.mxu0 %v8103_v53  ;;  %2580 = vmatpush1.bf16.msra.mxu1 %v8104_v34 }
 0x549   : > { %2540 = vmatprep.subr.bf16.mxu0 %v8105_v32  ;;  %2581 = vmatprep.subr.bf16.mxu1 %v8106_v55  ;;  %v8117_v55 = vld [vmem:[#allocation79_spill] sm:$0xff] }
 0x54c   : > { %2541 = vmatpush1.bf16.msra.mxu0 %v8107_v24  ;;  %2582 = vmatpush1.bf16.msra.mxu1 %v8108_v10  ;;  %v8118_v24 = vld [vmem:[#allocation80_spill] sm:$0xff]  ;;  %v8119_v10 = vld [vmem:[#allocation81_spill] sm:$0xff] }
 0x54d   : > { %2542 = vmatprep.subr.bf16.mxu0 %v8109_v23  ;;  %2583 = vmatprep.subr.bf16.mxu1 %v8110_v7  ;;  %v8120_v23 = vld [vmem:[#allocation82_spill] sm:$0xff]  ;;  %v8121_v7 = vld [vmem:[#allocation83_spill] sm:$0xff] }
 0x550   : > { %2543 = vmatpush1.bf16.msra.mxu0 %v8111_v1  ;;  %2584 = vmatpush1.bf16.msra.mxu1 %v8112_v43  ;;  %v8122_v1 = vld [vmem:[#allocation84_spill] sm:$0xff]  ;;  %v8123_v43 = vld [vmem:[#allocation85_spill] sm:$0xff] }
 0x551   : > { %2544 = vmatprep.subr.bf16.mxu0 %v8113_v46  ;;  %2585 = vmatprep.subr.bf16.mxu1 %v8114_v33  ;;  %v8124_v46 = vld [vmem:[#allocation86_spill] sm:$0xff]  ;;  %v8125_v33 = vld [vmem:[#allocation87_spill] sm:$0xff] }
 0x554   : > { %2545 = vmatpush1.bf16.msra.mxu0 %v8115_v47  ;;  %2586 = vmatpush1.bf16.msra.mxu1 %v8116_v35  ;;  %v8126_v47 = vld [vmem:[#allocation88_spill] sm:$0xff] }
 0x555   : > { %2546 = vmatprep.subr.bf16.mxu0 %v8117_v55  ;;  %2587 = vmatprep.subr.bf16.mxu1 %v8118_v24 }
 0x558   : > { %2547 = vmatpush1.bf16.msra.mxu0 %v8119_v10  ;;  %2588 = vmatpush1.bf16.msra.mxu1 %v8120_v23 }
 0x559   : > { %2548 = vmatprep.subr.bf16.mxu0 %v8121_v7  ;;  %2589 = vmatprep.subr.bf16.mxu1 %v8122_v1 }
 0x55c   : > { %2549 = vmatpush1.bf16.msra.mxu0 %v8123_v43  ;;  %2590 = vmatpush1.bf16.msra.mxu1 %v8124_v46 }
 0x55d   : > { %2616 = vmatprep.subr.bf16.mxu0 %v8125_v33  ;;  %2657 = vmatprep.subr.bf16.mxu1 %v8126_v47 }
 0x5bf   : > { %v2234_v35 = vpop.f32.mrf.mxu0  ;;  %v2275_v55 = vpop.f32.mrf.mxu1 }
 0x5c1   : > { %v2236_v32 = vpop.f32.mrf.mxu0  ;;  %v2277_v24 = vpop.f32.mrf.mxu1 }
 0x5c3   : > { %v2238_v34 = vpop.f32.mrf.mxu0  ;;  %v2279_v10 = vpop.f32.mrf.mxu1 }
 0x5c5   : > { %v2239_v53 = vpop.f32.mrf.mxu0  ;;  %v2280_v23 = vpop.f32.mrf.mxu1 }
 0x5df   : > { %v2316_v8 = vpop.f32.mrf.mxu0  ;;  %v2357_v7 = vpop.f32.mrf.mxu1 }
 0x5e0   : > { %v2317_v50 = vadd.f32 %v2316_v8, %v2234_v35  ;;  %v2358_v10 = vadd.f32 %v2357_v7, %v2275_v55 }
 0x5e1   : > { %v2318_v1 = vpop.f32.mrf.mxu0  ;;  %v2359_v26 = vpop.f32.mrf.mxu1 }
 0x5e2   : > { %v2364_v43 = vadd.f32 %v2317_v50, %v6117_v28  ;;  %v2319_v46 = vadd.f32 %v2318_v1, %v2236_v32  ;;  %v2360_v53 = vadd.f32 %v2359_v26, %v2277_v24  ;;  %v2366_v50 = vadd.f32 %v2358_v10, %v6138_v61 }
 0x5e3   : > { %v2320_v6 = vpop.f32.mrf.mxu0  ;;  %v2361_v33 = vpop.f32.mrf.mxu1 }
 0x5e4   : > { %v4335_v57 = vmul.f32 -1.442695, %v2364_v43  ;;  %v2365_v47 = vadd.f32 %v2319_v46, %v6119_v44  ;;  %v2367_v8 = vadd.f32 %v2360_v53, %v6131_v3  ;;  %v4340_v43 = vld [vmem:[%s5674_s24 + $0x88] sm:$0xff] }
 0x5e5   : > { %v2321_v0 = vpop.f32.mrf.mxu0  ;;  %v2362_v11 = vpop.f32.mrf.mxu1 }
 0x5e6   : > { %4862 = vpow2.f32 %v4335_v57  ;;  %v4336_v34 = vmul.f32 -1.442695, %v2365_v47  ;;  %v4337_v23 = vmul.f32 -1.442695, %v2367_v8  ;;  %v4339_v11 = vld [vmem:[%s5674_s24 + $0x80] sm:$0xff] }
 0x5e8   : > { %4864 = vpow2.f32 %v4336_v34 }
 0x5e9   : > { %4866 = vpow2.f32 %v4337_v23 }
 0x5f3   : > { %v4863_v35 = vpop.eup %4862 }
 0x5f4   : > { %v2371_v6 = vadd.f32 1.0, %v4863_v35 }
 0x5f5   : > { %v4865_v32 = vpop.eup %4864 }
 0x5f6   : > { %4868 = vrcp.f32 %v2371_v6  ;;  %v2377_v1 = vadd.f32 1.0, %v4865_v32  ;;  %v4867_v33 = vpop.eup %4866 }
 0x5f7   : > { %4870 = vtanh.f32 %v2366_v50  ;;  %v2384_v35 = vadd.f32 1.0, %v4867_v33 }
 0x5f8   : > { %4872 = vrcp.f32 %v2377_v1 }
 0x5ff   : > { %v2445_v0 = vpop.f32.mrf.mxu0  ;;  %v2486_v57 = vpop.f32.mrf.mxu1 }
 0x600   : > { %v2493_v26 = vadd.f32 %v4339_v11, %v2445_v0  ;;  %v4342_v0 = vld [vmem:[%s5674_s24 + $0x98] sm:$0xff] }
 0x601   : > { %v2447_v24 = vpop.f32.mrf.mxu0  ;;  %v2488_v46 = vpop.f32.mrf.mxu1 }
 0x602   : > { %v4343_v55 = vmul.f32 -1.442695, %v2493_v26  ;;  %v2494_v7 = vadd.f32 %v4340_v43, %v2447_v24  ;;  %v2496_v26 = vadd.f32 %v4342_v0, %v2488_v46 }
 0x603   : > { %v4869_v47 = vpop.eup %4868  ;;  %v2449_v34 = vpop.f32.mrf.mxu0 }
 0x604   : > { %v2490_v53 = vpop.f32.mrf.mxu1  ;;  %v4871_v8 = vpop.eup %4870  ;;  %4874 = vpow2.f32 %v4343_v55  ;;  %v4344_v10 = vmul.f32 -1.442695, %v2494_v7  ;;  %v4341_v55 = vld [vmem:[%s5674_s24 + $0x90] sm:$0xff]  ;;  %v4345_v33 = vmul.f32 -1.442695, %v2496_v26 }
 0x605   : > { %v4873_v23 = vpop.eup %4872  ;;  %v2450_v50 = vpop.f32.mrf.mxu0  ;;  %v2388_v32 = vmul.f32 %v4871_v8, %v4869_v47  ;;  %v2495_v53 = vadd.f32 %v4341_v55, %v2486_v57  ;;  %v6914_v55 = vld [vmem:[#allocation10 + $0x4c] ss:$16 sps:$4 sm:$0xff]  }
 0x606   : > { %v2491_v6 = vpop.f32.mrf.mxu1  ;;  %v2387_v1 = vmul.f32 %v4873_v23, %v6639_v4  ;;  %4876 = vpow2.f32 %v4344_v10  ;;  %8135 = vst [vmem:[#allocation35_spill] sm:$0xff] %v6914_v55 }
 0x607   : > { %4878 = vrcp.f32 %v2384_v35  ;;  %v6785_v6 = vmul.f32 %v6641_v45, %v6407_v22 }
 0x608   : > { %v2389_v11 = vadd.f32 %v2388_v32, %v2387_v1 }
 0x609   : > { %8127 = vst [vmem:[#allocation27_spill] sm:$0xff] %v6785_v6 }
 0x60a   : > { %4880 = vtanh.f32 %v2389_v11  ;;  %v2392_v43 = vsub.f32 %v2389_v11, %v6639_v4 }
 0x60b   : > { %4882 = vpow2.f32 %v4345_v33  ;;  %v6917_v33 = vld [vmem:[#allocation10 + $0x40] ss:$16 sps:$4 sm:$0xff]  }
 0x60c   : > { %v2393_v24 = vmul.f32 %v2392_v43, %v6663_v54  ;;  %8136 = vst [vmem:[#allocation32_spill] sm:$0xff] %v6917_v33 }
 0x60e   : > { %v6780_v7 = vadd.f32 %v2393_v24, %v6639_v4 }
 0x611   : > { %v4875_v34 = vpop.eup %4874 }
 0x612   : > { %v2500_v47 = vadd.f32 1.0, %v4875_v34  ;;  %v6920_v34 = vld [vmem:[#allocation10 + $0x48] ss:$16 sps:$4 sm:$0xff]  }
 0x613   : > { %v4877_v8 = vpop.eup %4876  ;;  %8137 = vst [vmem:[#allocation37_spill] sm:$0xff] %v6920_v34 }
 0x614   : > { %4884 = vrcp.f32 %v2500_v47  ;;  %v2506_v10 = vadd.f32 1.0, %v4877_v8  ;;  %v4879_v23 = vpop.eup %4878  ;;  %v6926_v47 = vld [vmem:[#allocation10 + $0x2c] ss:$16 sps:$4 sm:$0xff]   ;;  %v6929_v8 = vld [vmem:[#allocation10 + $0x20] ss:$16 sps:$4 sm:$0xff]  }
 0x615   : > { %4886 = vtanh.f32 %v2495_v53  ;;  %v6923_v53 = vld [vmem:[#allocation10 + $0x24] ss:$16 sps:$4 sm:$0xff]   ;;  %8139 = vst [vmem:[#allocation39_spill] sm:$0xff] %v6926_v47  ;;  %8140 = vst [vmem:[#allocation36_spill] sm:$0xff] %v6929_v8 }
 0x616   : > { %4888 = vrcp.f32 %v2506_v10  ;;  %8138 = vst [vmem:[#allocation34_spill] sm:$0xff] %v6923_v53  ;;  %v6932_v10 = vld [vmem:[#allocation10 + $0x28] ss:$16 sps:$4 sm:$0xff]  }
 0x617   : > { %v4881_v35 = vpop.eup %4880  ;;  %8141 = vst [vmem:[#allocation41_spill] sm:$0xff] %v6932_v10 }
 0x618   : > { %v2391_v50 = vmul.f32 %v4881_v35, %v4879_v23  ;;  %v4883_v11 = vpop.eup %4882  ;;  %v6935_v23 = vld [vmem:[#allocation10 + $0x4] ss:$16 sps:$4 sm:$0xff]   ;;  %v6938_v35 = vld [vmem:[#allocation10 + $0xc] ss:$16 sps:$4 sm:$0xff]  }
 0x619   : > { %v2513_v45 = vadd.f32 1.0, %v4883_v11  ;;  %8142 = vst [vmem:[#allocation38_spill] sm:$0xff] %v6935_v23  ;;  %8143 = vst [vmem:[#allocation43_spill] sm:$0xff] %v6938_v35  ;;  %v6953_v11 = vld [vmem:[#allocation13 + $0xe0] ss:$16 sps:$4 sm:$0xff]  }
 0x61a   : > { %v2395_v46 = vsub.f32 %v2391_v50, %v6647_v9  ;;  %v6788_v4 = vmul.f32 %v2391_v50, %v6663_v54  ;;  %v6941_v50 = vld [vmem:[#allocation10] ss:$16 sps:$4 sm:$0xff]   ;;  %8147 = vst [vmem:[#allocation46_spill] sm:$0xff] %v6953_v11 }
 0x61b   : > { %4890 = vrcp.f32 %v2513_v45  ;;  %8144 = vst [vmem:[#allocation40_spill] sm:$0xff] %v6941_v50  ;;  %v8153_v45 = vld [vmem:[#allocation63_spill] sm:$0xff] }
 0x61c   : > { %8128 = vst [vmem:[#allocation25_spill] sm:$0xff] %v6788_v4  ;;  %v2396_v57 = vmul.f32 %v2395_v46, %v6663_v54  ;;  %v6944_v46 = vld [vmem:[#allocation10 + $0x8] ss:$16 sps:$4 sm:$0xff]  }
 0x61d   : > { %8145 = vst [vmem:[#allocation45_spill] sm:$0xff] %v6944_v46 }
 0x61e   : > { %v6794_v1 = vadd.f32 %v2396_v57, %v6647_v9  ;;  %v6947_v57 = vld [vmem:[#allocation13 + $0xe4] ss:$16 sps:$4 sm:$0xff]  }
 0x61f   : > { %8146 = vst [vmem:[#allocation42_spill] sm:$0xff] %v6947_v57 }
 0x620   : > { %v2533_v0 = vpack.c.bf16 %v6794_v1, %v6794_v1 }
 0x621   : > { %v4885_v43 = vpop.eup %4884 }
 0x622   : > { %v4887_v26 = vpop.eup %4886  ;;  %2567 = vmatmul.mubr.bf16.vlgmr.msra.gmra.mxu0 %v2533_v0  ;;  %2608 = vmatmul.mubr.bf16.vlgmr.msra.gmra.mxu1 %v2533_v0  ;;  %v8148_v0 = vld [vmem:[#allocation58_spill] sm:$0xff] }
 0x623   : > { %v4889_v22 = vpop.eup %4888  ;;  %2617 = vmatpush1.bf16.msra.mxu0 %v6386_v16  ;;  %2658 = vmatpush1.bf16.msra.mxu1 %v6389_v60  ;;  %v2517_v54 = vmul.f32 %v4887_v26, %v4885_v43  ;;  %v6810_v60 = vpop.permute.xlu0 %2524  ;;  %v8149_v43 = vld [vmem:[#allocation59_spill] sm:$0xff]  ;;  %v8150_v26 = vld [vmem:[#allocation60_spill] sm:$0xff] }
 0x624   : > { %v2516_v24 = vmul.f32 %v4889_v22, %v6671_v5  ;;  %2618 = vmatprep.subr.bf16.mxu0 %v6392_v42  ;;  %2659 = vmatprep.subr.bf16.mxu1 %v6395_v17  ;;  %v8151_v22 = vld [vmem:[#allocation61_spill] sm:$0xff] }
 0x625   : > { %2648 = vmatprep.mubr.bf16.mxu0 %v7898_v39  ;;  %2689 = vmatprep.mubr.bf16.mxu1 %v7898_v39 }
 0x626   : > { %v2518_v9 = vadd.f32 %v2517_v54, %v2516_v24  ;;  %v8154_v54 = vld [vmem:[#allocation64_spill] sm:$0xff]  ;;  %v8155_v24 = vld [vmem:[#allocation65_spill] sm:$0xff] }
 0x627   : > { %2619 = vmatpush1.bf16.msra.mxu0 %v6401_v20  ;;  %2660 = vmatpush1.bf16.msra.mxu1 %v6404_v21 }
 0x628   : > { %4892 = vtanh.f32 %v2518_v9  ;;  %v2521_v16 = vsub.f32 %v2518_v9, %v6671_v5  ;;  %2620 = vmatprep.subr.bf16.mxu0 %v6410_v25  ;;  %2661 = vmatprep.subr.bf16.mxu1 %v6413_v27  ;;  %v4891_v20 = vpop.eup %4890  ;;  %v8156_v9 = vld [vmem:[#allocation66_spill] sm:$0xff] }
 0x62a   : > { %v2527_v42 = vmul.f32 %v6810_v60, %v2521_v16  ;;  %v8157_v16 = vld [vmem:[#allocation67_spill] sm:$0xff] }
 0x62b   : > { %2621 = vmatpush1.bf16.msra.mxu0 %v6417_v30  ;;  %2662 = vmatpush1.bf16.msra.mxu1 %v6420_v31 }
 0x62c   : > { %2622 = vmatprep.subr.bf16.mxu0 %v6426_v36  ;;  %2663 = vmatprep.subr.bf16.mxu1 %v6429_v37  ;;  %v6818_v17 = vadd.f32 %v2527_v42, %v6671_v5  ;;  %v6847_v37 = vld [vmem:[#allocation10 + $0xe4] ss:$16 sps:$4 sm:$0xff]   ;;  %v6908_v5 = vld [vmem:[#allocation10 + $0x68] ss:$16 sps:$4 sm:$0xff]  }
 0x62d   : > { %8133 = vst [vmem:[#allocation33_spill] sm:$0xff] %v6908_v5  ;;  %v8158_v42 = vld [vmem:[#allocation68_spill] sm:$0xff] }
 0x62f   : > { %2623 = vmatpush1.bf16.msra.mxu0 %v6432_v38  ;;  %2664 = vmatpush1.bf16.msra.mxu1 %v6435_v40  ;;  %v6850_v38 = vld [vmem:[#allocation10 + $0xec] ss:$16 sps:$4 sm:$0xff]   ;;  %v6855_v40 = vld [vmem:[#allocation10 + $0xe0] ss:$16 sps:$4 sm:$0xff]  }
 0x630   : > { %2624 = vmatprep.subr.bf16.mxu0 %v6438_v41  ;;  %2665 = vmatprep.subr.bf16.mxu1 %v6441_v62  ;;  %v6858_v41 = vld [vmem:[#allocation10 + $0xe8] ss:$16 sps:$4 sm:$0xff]   ;;  %v6861_v62 = vld [vmem:[#allocation10 + $0xc4] ss:$16 sps:$4 sm:$0xff]  }
 0x633   : > { %2625 = vmatpush1.bf16.msra.mxu0 %v6444_v56  ;;  %2666 = vmatpush1.bf16.msra.mxu1 %v6447_v48  ;;  %v6864_v56 = vld [vmem:[#allocation10 + $0xcc] ss:$16 sps:$4 sm:$0xff]   ;;  %v6869_v48 = vld [vmem:[#allocation10 + $0xc0] ss:$16 sps:$4 sm:$0xff]  }
 0x634   : > { %2626 = vmatprep.subr.bf16.mxu0 %v6450_v49  ;;  %2667 = vmatprep.subr.bf16.mxu1 %v6453_v52  ;;  %v6872_v49 = vld [vmem:[#allocation10 + $0xc8] ss:$16 sps:$4 sm:$0xff]   ;;  %v6875_v52 = vld [vmem:[#allocation10 + $0xa4] ss:$16 sps:$4 sm:$0xff]  }
 0x635   : > { %v4893_v21 = vpop.eup %4892 }
 0x636   : > { %v2520_v25 = vmul.f32 %v4893_v21, %v4891_v20  ;;  %v8159_v20 = vld [vmem:[#allocation69_spill] sm:$0xff]  ;;  %v8160_v21 = vld [vmem:[#allocation70_spill] sm:$0xff] }
 0x637   : > { %2627 = vmatpush1.bf16.msra.mxu0 %v6456_v13  ;;  %2668 = vmatpush1.bf16.msra.mxu1 %v6459_v14  ;;  %v6878_v13 = vld [vmem:[#allocation10 + $0xac] ss:$16 sps:$4 sm:$0xff]   ;;  %v6881_v14 = vld [vmem:[#allocation10 + $0xa0] ss:$16 sps:$4 sm:$0xff]  }
 0x638   : > { %2628 = vmatprep.subr.bf16.mxu0 %v6463_v63  ;;  %2669 = vmatprep.subr.bf16.mxu1 %v6466_v59  ;;  %v2529_v27 = vsub.f32 %v2520_v25, %v6692_v2  ;;  %v6884_v63 = vld [vmem:[#allocation10 + $0xa8] ss:$16 sps:$4 sm:$0xff]   ;;  %v6887_v59 = vld [vmem:[#allocation10 + $0x84] ss:$16 sps:$4 sm:$0xff]  }
 0x639   : > { %v8161_v25 = vld [vmem:[#allocation71_spill] sm:$0xff] }
 0x63a   : > { %v2530_v30 = vmul.f32 %v2529_v27, %v6810_v60  ;;  %v8162_v27 = vld [vmem:[#allocation72_spill] sm:$0xff] }
 0x63b   : > { %2629 = vmatpush1.bf16.msra.mxu0 %v6470_v18  ;;  %2670 = vmatpush1.bf16.msra.mxu1 %v6473_v19  ;;  %v6890_v18 = vld [vmem:[#allocation10 + $0x8c] ss:$16 sps:$4 sm:$0xff]   ;;  %v6893_v19 = vld [vmem:[#allocation10 + $0x80] ss:$16 sps:$4 sm:$0xff]  }
 0x63c   : > { %2630 = vmatprep.subr.bf16.mxu0 %v6479_v29  ;;  %2671 = vmatprep.subr.bf16.mxu1 %v6482_v51  ;;  %v6839_v31 = vadd.f32 %v2530_v30, %v6692_v2  ;;  %v6896_v29 = vld [vmem:[#allocation10 + $0x88] ss:$16 sps:$4 sm:$0xff]   ;;  %v6899_v51 = vld [vmem:[#allocation10 + $0x64] ss:$16 sps:$4 sm:$0xff]  }
 0x63d   : > { %8129 = vst [vmem:[#allocation29_spill] sm:$0xff] %v6896_v29  ;;  %8130 = vst [vmem:[#allocation26_spill] sm:$0xff] %v6899_v51  ;;  %v6911_v2 = vld [vmem:[#allocation10 + $0x44] ss:$16 sps:$4 sm:$0xff]   ;;  %v8163_v30 = vld [vmem:[#allocation73_spill] sm:$0xff] }
 0x63e   : > { %v6843_v36 = vpack.c.bf16 %v6839_v31, %v6839_v31  ;;  %8134 = vst [vmem:[#allocation30_spill] sm:$0xff] %v6911_v2 }
 0x63f   : > { %2631 = vmatpush1.bf16.msra.mxu0 %v6487_v12  ;;  %2672 = vmatpush1.bf16.msra.mxu1 %v6490_v15  ;;  %v6902_v12 = vld [vmem:[#allocation10 + $0x6c] ss:$16 sps:$4 sm:$0xff]   ;;  %v6905_v15 = vld [vmem:[#allocation10 + $0x60] ss:$16 sps:$4 sm:$0xff]  }
 0x640   : > { %2745 = vmatprep.subr.bf16.mxu0 %v6847_v37  ;;  %2786 = vmatprep.subr.bf16.mxu1 %v6850_v38  ;;  %8131 = vst [vmem:[#allocation31_spill] sm:$0xff] %v6902_v12  ;;  %8132 = vst [vmem:[#allocation28_spill] sm:$0xff] %v6905_v15 }
 0x642   : > { %2649 = vmatmul.mubr.bf16.vlgmr.msra.gmra.mxu0 %v6843_v36  ;;  %2690 = vmatmul.mubr.bf16.vlgmr.msra.gmra.mxu1 %v6843_v36 }
 0x643   : > { %2746 = vmatpush1.bf16.msra.mxu0 %v6855_v40  ;;  %2787 = vmatpush1.bf16.msra.mxu1 %v6858_v41 }
 0x644   : > { %2747 = vmatprep.subr.bf16.mxu0 %v6861_v62  ;;  %2788 = vmatprep.subr.bf16.mxu1 %v6864_v56 }
 0x645   : > { %2777 = vmatprep.mubr.bf16.mxu0 %v7898_v39  ;;  %2818 = vmatprep.mubr.bf16.mxu1 %v7898_v39 }
 0x647   : > { %2748 = vmatpush1.bf16.msra.mxu0 %v6869_v48  ;;  %2789 = vmatpush1.bf16.msra.mxu1 %v6872_v49 }
 0x648   : > { %2749 = vmatprep.subr.bf16.mxu0 %v6875_v52  ;;  %2790 = vmatprep.subr.bf16.mxu1 %v6878_v13 }
 0x64b   : > { %2750 = vmatpush1.bf16.msra.mxu0 %v6881_v14  ;;  %2791 = vmatpush1.bf16.msra.mxu1 %v6884_v63 }
 0x64c   : > { %2751 = vmatprep.subr.bf16.mxu0 %v6887_v59  ;;  %2792 = vmatprep.subr.bf16.mxu1 %v6890_v18 }
 0x64f   : > { %2752 = vmatpush1.bf16.msra.mxu0 %v6893_v19  ;;  %2793 = vmatpush1.bf16.msra.mxu1 %v6896_v29 }
 0x650   : > { %2753 = vmatprep.subr.bf16.mxu0 %v6899_v51  ;;  %2794 = vmatprep.subr.bf16.mxu1 %v6902_v12 }
 0x653   : > { %2754 = vmatpush1.bf16.msra.mxu0 %v6905_v15  ;;  %2795 = vmatpush1.bf16.msra.mxu1 %v6908_v5 }
 0x654   : > { %2755 = vmatprep.subr.bf16.mxu0 %v6911_v2  ;;  %2796 = vmatprep.subr.bf16.mxu1 %v6914_v55 }
 0x657   : > { %2756 = vmatpush1.bf16.msra.mxu0 %v6917_v33  ;;  %2797 = vmatpush1.bf16.msra.mxu1 %v6920_v34 }
 0x658   : > { %2757 = vmatprep.subr.bf16.mxu0 %v6923_v53  ;;  %2798 = vmatprep.subr.bf16.mxu1 %v6926_v47 }
 0x65b   : > { %2758 = vmatpush1.bf16.msra.mxu0 %v6929_v8  ;;  %2799 = vmatpush1.bf16.msra.mxu1 %v6932_v10 }
 0x65c   : > { %2759 = vmatprep.subr.bf16.mxu0 %v6935_v23  ;;  %2800 = vmatprep.subr.bf16.mxu1 %v6938_v35 }
 0x65f   : > { %2760 = vmatpush1.bf16.msra.mxu0 %v6941_v50  ;;  %2801 = vmatpush1.bf16.msra.mxu1 %v6944_v46 }
 0x660   : > { %2868 = vmatprep.subr.bf16.mxu0 %v6947_v57  ;;  %2909 = vmatprep.subr.bf16.mxu1 %v8094_v58  ;;  %v8152_v58 = vld [vmem:[#allocation62_spill] sm:$0xff] }
 0x662   : > { %2778 = vmatmul.mubr.bf16.vlgmr.msra.gmra.mxu0 %v6843_v36  ;;  %2819 = vmatmul.mubr.bf16.vlgmr.msra.gmra.mxu1 %v6843_v36  ;;  %v8164_v36 = vld [vmem:[#allocation74_spill] sm:$0xff] }
 0x663   : > { %2869 = vmatpush1.bf16.msra.mxu0 %v6953_v11  ;;  %2910 = vmatpush1.bf16.msra.mxu1 %v8148_v0  ;;  %v8165_v0 = vld [vmem:[#allocation75_spill] sm:$0xff] }
 0x664   : > { %2870 = vmatprep.subr.bf16.mxu0 %v8149_v43  ;;  %2911 = vmatprep.subr.bf16.mxu1 %v8150_v26  ;;  %v8166_v43 = vld [vmem:[#allocation76_spill] sm:$0xff]  ;;  %v8167_v26 = vld [vmem:[#allocation77_spill] sm:$0xff] }
 0x665   : > { %2900 = vmatprep.mubr.bf16.mxu0 %v7898_v39  ;;  %2941 = vmatprep.mubr.bf16.mxu1 %v7898_v39 }
 0x667   : > { %2871 = vmatpush1.bf16.msra.mxu0 %v8151_v22  ;;  %2912 = vmatpush1.bf16.msra.mxu1 %v8152_v58  ;;  %v8168_v22 = vld [vmem:[#allocation78_spill] sm:$0xff]  ;;  %v8169_v58 = vld [vmem:[#allocation79_spill] sm:$0xff] }
 0x668   : > { %2872 = vmatprep.subr.bf16.mxu0 %v8153_v45  ;;  %2913 = vmatprep.subr.bf16.mxu1 %v8154_v54  ;;  %v8170_v45 = vld [vmem:[#allocation80_spill] sm:$0xff]  ;;  %v8171_v54 = vld [vmem:[#allocation81_spill] sm:$0xff] }
 0x66b   : > { %2873 = vmatpush1.bf16.msra.mxu0 %v8155_v24  ;;  %2914 = vmatpush1.bf16.msra.mxu1 %v8156_v9  ;;  %v8172_v24 = vld [vmem:[#allocation82_spill] sm:$0xff]  ;;  %v8173_v9 = vld [vmem:[#allocation83_spill] sm:$0xff] }
 0x66c   : > { %2874 = vmatprep.subr.bf16.mxu0 %v8157_v16  ;;  %2915 = vmatprep.subr.bf16.mxu1 %v8158_v42  ;;  %v8174_v16 = vld [vmem:[#allocation84_spill] sm:$0xff]  ;;  %v8175_v42 = vld [vmem:[#allocation85_spill] sm:$0xff] }
 0x66f   : > { %2875 = vmatpush1.bf16.msra.mxu0 %v8159_v20  ;;  %2916 = vmatpush1.bf16.msra.mxu1 %v8160_v21  ;;  %v8176_v20 = vld [vmem:[#allocation86_spill] sm:$0xff]  ;;  %v8177_v21 = vld [vmem:[#allocation87_spill] sm:$0xff] }
 0x670   : > { %2876 = vmatprep.subr.bf16.mxu0 %v8161_v25  ;;  %2917 = vmatprep.subr.bf16.mxu1 %v8162_v27  ;;  %v8178_v25 = vld [vmem:[#allocation88_spill] sm:$0xff] }
 0x673   : > { %2877 = vmatpush1.bf16.msra.mxu0 %v8163_v30  ;;  %2918 = vmatpush1.bf16.msra.mxu1 %v8164_v36 }
 0x674   : > { %2878 = vmatprep.subr.bf16.mxu0 %v8165_v0  ;;  %2919 = vmatprep.subr.bf16.mxu1 %v8166_v43 }
 0x677   : > { %2879 = vmatpush1.bf16.msra.mxu0 %v8167_v26  ;;  %2920 = vmatpush1.bf16.msra.mxu1 %v8168_v22 }
 0x678   : > { %2880 = vmatprep.subr.bf16.mxu0 %v8169_v58  ;;  %2921 = vmatprep.subr.bf16.mxu1 %v8170_v45 }
 0x67b   : > { %2881 = vmatpush1.bf16.msra.mxu0 %v8171_v54  ;;  %2922 = vmatpush1.bf16.msra.mxu1 %v8172_v24 }
 0x67c   : > { %2882 = vmatprep.subr.bf16.mxu0 %v8173_v9  ;;  %2923 = vmatprep.subr.bf16.mxu1 %v8174_v16 }
 0x67f   : > { %2883 = vmatpush1.bf16.msra.mxu0 %v8175_v42  ;;  %2924 = vmatpush1.bf16.msra.mxu1 %v8176_v20 }
 0x680   : > { %2950 = vmatprep.subr.bf16.mxu0 %v8177_v21  ;;  %2991 = vmatprep.subr.bf16.mxu1 %v8178_v25 }
 0x6e2   : > { %v2568_v27 = vpop.f32.mrf.mxu0  ;;  %v2609_v30 = vpop.f32.mrf.mxu1 }
 0x6e4   : > { %v2570_v36 = vpop.f32.mrf.mxu0  ;;  %v2611_v0 = vpop.f32.mrf.mxu1 }
 0x6e6   : > { %v2572_v43 = vpop.f32.mrf.mxu0  ;;  %v2613_v26 = vpop.f32.mrf.mxu1 }
 0x6e8   : > { %v2573_v22 = vpop.f32.mrf.mxu0  ;;  %v2614_v58 = vpop.f32.mrf.mxu1 }
 0x702   : > { %v2650_v45 = vpop.f32.mrf.mxu0  ;;  %v2691_v54 = vpop.f32.mrf.mxu1 }
 0x703   : > { %v2651_v24 = vadd.f32 %v2650_v45, %v2568_v27  ;;  %v2692_v22 = vadd.f32 %v2691_v54, %v2609_v30 }
 0x704   : > { %v2652_v9 = vpop.f32.mrf.mxu0  ;;  %v2693_v16 = vpop.f32.mrf.mxu1 }
 0x705   : > { %v2698_v42 = vadd.f32 %v2651_v24, %v6117_v28  ;;  %v2653_v20 = vadd.f32 %v2652_v9, %v2570_v36  ;;  %v2694_v26 = vadd.f32 %v2693_v16, %v2611_v0  ;;  %v2700_v36 = vadd.f32 %v2692_v22, %v6138_v61 }
 0x706   : > { %v2654_v32 = vpop.f32.mrf.mxu0  ;;  %v2695_v21 = vpop.f32.mrf.mxu1 }
 0x707   : > { %v4346_v6 = vmul.f32 -1.442695, %v2698_v42  ;;  %v2699_v25 = vadd.f32 %v2653_v20, %v6119_v44  ;;  %v2701_v27 = vadd.f32 %v2694_v26, %v6131_v3  ;;  %v4351_v42 = vld [vmem:[%s5674_s24 + $0xa8] sm:$0xff] }
 0x708   : > { %v2655_v4 = vpop.f32.mrf.mxu0  ;;  %v2696_v11 = vpop.f32.mrf.mxu1 }
 0x709   : > { %4894 = vpow2.f32 %v4346_v6  ;;  %v4347_v43 = vmul.f32 -1.442695, %v2699_v25  ;;  %v4348_v58 = vmul.f32 -1.442695, %v2701_v27  ;;  %v4350_v6 = vld [vmem:[%s5674_s24 + $0xa0] sm:$0xff] }
 0x70b   : > { %4896 = vpow2.f32 %v4347_v43 }
 0x70c   : > { %4898 = vpow2.f32 %v4348_v58 }
 0x716   : > { %v4895_v45 = vpop.eup %4894 }
 0x717   : > { %v2705_v32 = vadd.f32 1.0, %v4895_v45 }
 0x718   : > { %v4897_v24 = vpop.eup %4896 }
 0x719   : > { %4900 = vrcp.f32 %v2705_v32  ;;  %v2711_v9 = vadd.f32 1.0, %v4897_v24  ;;  %v4899_v21 = vpop.eup %4898 }
 0x71a   : > { %4902 = vtanh.f32 %v2700_v36  ;;  %v2718_v45 = vadd.f32 1.0, %v4899_v21 }
 0x71b   : > { %4904 = vrcp.f32 %v2711_v9 }
 0x722   : > { %v2779_v4 = vpop.f32.mrf.mxu0  ;;  %v2820_v11 = vpop.f32.mrf.mxu1 }
 0x723   : > { %v2827_v0 = vadd.f32 %v4350_v6, %v2779_v4  ;;  %v4353_v4 = vld [vmem:[%s5674_s24 + $0xb8] sm:$0xff] }
 0x724   : > { %v2781_v16 = vpop.f32.mrf.mxu0  ;;  %v2822_v20 = vpop.f32.mrf.mxu1 }
 0x725   : > { %v4354_v30 = vmul.f32 -1.442695, %v2827_v0  ;;  %v2828_v54 = vadd.f32 %v4351_v42, %v2781_v16  ;;  %v2830_v0 = vadd.f32 %v4353_v4, %v2822_v20 }
 0x726   : > { %v4901_v25 = vpop.eup %4900  ;;  %v2783_v43 = vpop.f32.mrf.mxu0 }
 0x727   : > { %v2824_v26 = vpop.f32.mrf.mxu1  ;;  %v4903_v27 = vpop.eup %4902  ;;  %4906 = vpow2.f32 %v4354_v30  ;;  %v4355_v22 = vmul.f32 -1.442695, %v2828_v54  ;;  %v4352_v30 = vld [vmem:[%s5674_s24 + $0xb0] sm:$0xff]  ;;  %v4356_v21 = vmul.f32 -1.442695, %v2830_v0 }
 0x728   : > { %v4905_v58 = vpop.eup %4904  ;;  %v2784_v36 = vpop.f32.mrf.mxu0  ;;  %v2722_v24 = vmul.f32 %v4903_v27, %v4901_v25  ;;  %v2829_v26 = vadd.f32 %v4352_v30, %v2820_v11  ;;  %v7013_v0 = vld [vmem:[#allocation12 + $0xe0] ss:$16 sps:$4 sm:$0xff]  }
 0x729   : > { %v2825_v32 = vpop.f32.mrf.mxu1  ;;  %v2721_v9 = vmul.f32 %v4905_v58, %v6780_v7  ;;  %4908 = vpow2.f32 %v4355_v22 }
 0x72a   : > { %4910 = vrcp.f32 %v2718_v45 }
 0x72b   : > { %v2723_v6 = vadd.f32 %v2722_v24, %v2721_v9 }
 0x72d   : > { %4912 = vtanh.f32 %v2723_v6  ;;  %v2726_v42 = vsub.f32 %v2723_v6, %v6780_v7 }
 0x72e   : > { %4914 = vpow2.f32 %v4356_v21  ;;  %v7020_v21 = vld [vmem:[#allocation12 + $0xc4] ss:$16 sps:$4 sm:$0xff]  }
 0x72f   : > { %v2727_v16 = vmul.f32 %v2726_v42, %v6810_v60 }
 0x731   : > { %v7001_v54 = vadd.f32 %v2727_v16, %v6780_v7  ;;  %v7016_v16 = vld [vmem:[#allocation12 + $0xe8] ss:$16 sps:$4 sm:$0xff]  }
 0x734   : > { %v4907_v43 = vpop.eup %4906 }
 0x735   : > { %v2834_v25 = vadd.f32 1.0, %v4907_v43  ;;  %v7023_v43 = vld [vmem:[#allocation12 + $0xcc] ss:$16 sps:$4 sm:$0xff]  }
 0x736   : > { %v4909_v27 = vpop.eup %4908 }
 0x737   : > { %4916 = vrcp.f32 %v2834_v25  ;;  %v2840_v22 = vadd.f32 1.0, %v4909_v27  ;;  %v4911_v58 = vpop.eup %4910  ;;  %v7028_v25 = vld [vmem:[#allocation12 + $0xc0] ss:$16 sps:$4 sm:$0xff]   ;;  %v7031_v27 = vld [vmem:[#allocation12 + $0xc8] ss:$16 sps:$4 sm:$0xff]  }
 0x738   : > { %4918 = vtanh.f32 %v2829_v26 }
 0x739   : > { %4920 = vrcp.f32 %v2840_v22 }
 0x73a   : > { %v4913_v45 = vpop.eup %4912 }
 0x73b   : > { %v7003_v36 = vmul.f32 %v4913_v45, %v4911_v58  ;;  %v4915_v11 = vpop.eup %4914  ;;  %v7035_v58 = vld [vmem:[#allocation12 + $0xa4] ss:$16 sps:$4 sm:$0xff]   ;;  %v7038_v45 = vld [vmem:[#allocation12 + $0xac] ss:$16 sps:$4 sm:$0xff]  }
 0x73c   : > { %v2847_v42 = vadd.f32 1.0, %v4915_v11  ;;  %v7044_v11 = vld [vmem:[#allocation12 + $0xa0] ss:$16 sps:$4 sm:$0xff]  }
 0x73d   : > { %v2729_v20 = vsub.f32 %v7003_v36, %v6794_v1 }
 0x73e   : > { %4922 = vrcp.f32 %v2847_v42  ;;  %v7059_v42 = vld [vmem:[#allocation12 + $0x80] ss:$16 sps:$4 sm:$0xff]  }
 0x73f   : > { %v2730_v7 = vmul.f32 %v2729_v20, %v6810_v60  ;;  %v7041_v20 = vpop.permute.xlu1 %2858  ;;  %8181 = vst [vmem:[#allocation24_spill] sm:$0xff] %v7059_v42 }
 0x741   : > { %v7009_v32 = vadd.f32 %v2730_v7, %v6794_v1 }
 0x743   : > { %v2867_v24 = vpack.c.bf16 %v7009_v32, %v7009_v32 }
 0x744   : > { %v4917_v9 = vpop.eup %4916 }
 0x745   : > { %v4919_v6 = vpop.eup %4918  ;;  %2901 = vmatmul.mubr.bf16.vlgmr.msra.gmra.mxu0 %v2867_v24  ;;  %2942 = vmatmul.mubr.bf16.vlgmr.msra.gmra.mxu1 %v2867_v24  ;;  %v7047_v24 = vld [vmem:[#allocation12 + $0xa8] ss:$16 sps:$4 sm:$0xff]  }
 0x746   : > { %v4921_v4 = vpop.eup %4920  ;;  %2951 = vmatpush1.bf16.msra.mxu0 %v7013_v0  ;;  %2992 = vmatpush1.bf16.msra.mxu1 %v7016_v16  ;;  %v2851_v1 = vmul.f32 %v4919_v6, %v4917_v9  ;;  %v7050_v9 = vld [vmem:[#allocation12 + $0x84] ss:$16 sps:$4 sm:$0xff]   ;;  %v7053_v6 = vld [vmem:[#allocation12 + $0x8c] ss:$16 sps:$4 sm:$0xff]  }
 0x747   : > { %v2850_v30 = vmul.f32 %v4921_v4, %v6818_v17  ;;  %2952 = vmatprep.subr.bf16.mxu0 %v7020_v21  ;;  %2993 = vmatprep.subr.bf16.mxu1 %v7023_v43  ;;  %8179 = vst [vmem:[#allocation47_spill] sm:$0xff] %v7050_v9  ;;  %8180 = vst [vmem:[#allocation48_spill] sm:$0xff] %v7053_v6 }
 0x748   : > { %2982 = vmatprep.mubr.bf16.mxu0 %v7898_v39  ;;  %3023 = vmatprep.mubr.bf16.mxu1 %v7898_v39 }
 0x749   : > { %v2852_v26 = vadd.f32 %v2851_v1, %v2850_v30  ;;  %v7062_v1 = vld [vmem:[#allocation12 + $0x88] ss:$16 sps:$4 sm:$0xff]   ;;  %v7065_v30 = vld [vmem:[#allocation12 + $0x64] ss:$16 sps:$4 sm:$0xff]  }
 0x74a   : > { %2953 = vmatpush1.bf16.msra.mxu0 %v7028_v25  ;;  %2994 = vmatpush1.bf16.msra.mxu1 %v7031_v27  ;;  %8182 = vst [vmem:[#allocation44_spill] sm:$0xff] %v7062_v1  ;;  %8183 = vst [vmem:[#allocation49_spill] sm:$0xff] %v7065_v30 }
 0x74b   : > { %4924 = vtanh.f32 %v2852_v26  ;;  %v2855_v22 = vsub.f32 %v2852_v26, %v6818_v17  ;;  %2954 = vmatprep.subr.bf16.mxu0 %v7035_v58  ;;  %2995 = vmatprep.subr.bf16.mxu1 %v7038_v45  ;;  %v7068_v26 = vld [vmem:[#allocation12 + $0x6c] ss:$16 sps:$4 sm:$0xff]  }
 0x74c   : > { %8184 = vst [vmem:[#allocation51_spill] sm:$0xff] %v7068_v26 }
 0x74d   : > { %v2861_v7 = vmul.f32 %v7041_v20, %v2855_v22  ;;  %v7071_v22 = vld [vmem:[#allocation12 + $0x60] ss:$16 sps:$4 sm:$0xff]  }
 0x74e   : > { %2955 = vmatpush1.bf16.msra.mxu0 %v7044_v11  ;;  %2996 = vmatpush1.bf16.msra.mxu1 %v7047_v24  ;;  %8185 = vst [vmem:[#allocation50_spill] sm:$0xff] %v7071_v22 }
 0x74f   : > { %2956 = vmatprep.subr.bf16.mxu0 %v7050_v9  ;;  %2997 = vmatprep.subr.bf16.mxu1 %v7053_v6  ;;  %v7057_v4 = vadd.f32 %v2861_v7, %v6818_v17  ;;  %v7074_v17 = vld [vmem:[#allocation12 + $0x68] ss:$16 sps:$4 sm:$0xff]   ;;  %v4923_v7 = vpop.eup %4922  ;;  %v7092_v9 = vld [vmem:[#allocation12 + $0x2c] ss:$16 sps:$4 sm:$0xff]  }
 0x750   : > { %8186 = vst [vmem:[#allocation52_spill] sm:$0xff] %v7074_v17  ;;  %8191 = vst [vmem:[#allocation59_spill] sm:$0xff] %v7092_v9 }
 0x752   : > { %2957 = vmatpush1.bf16.msra.mxu0 %v7059_v42  ;;  %2998 = vmatpush1.bf16.msra.mxu1 %v7062_v1  ;;  %v7077_v42 = vld [vmem:[#allocation12 + $0x44] ss:$16 sps:$4 sm:$0xff]   ;;  %v7080_v1 = vld [vmem:[#allocation12 + $0x4c] ss:$16 sps:$4 sm:$0xff]  }
 0x753   : > { %2958 = vmatprep.subr.bf16.mxu0 %v7065_v30  ;;  %2999 = vmatprep.subr.bf16.mxu1 %v7068_v26  ;;  %8187 = vst [vmem:[#allocation53_spill] sm:$0xff] %v7080_v1  ;;  %v7083_v26 = vld [vmem:[#allocation12 + $0x40] ss:$16 sps:$4 sm:$0xff]  }
 0x754   : > { %8188 = vst [vmem:[#allocation57_spill] sm:$0xff] %v7083_v26 }
 0x756   : > { %2959 = vmatpush1.bf16.msra.mxu0 %v7071_v22  ;;  %3000 = vmatpush1.bf16.msra.mxu1 %v7074_v17  ;;  %v7086_v22 = vld [vmem:[#allocation12 + $0x48] ss:$16 sps:$4 sm:$0xff]   ;;  %v7089_v17 = vld [vmem:[#allocation12 + $0x24] ss:$16 sps:$4 sm:$0xff]  }
 0x757   : > { %2960 = vmatprep.subr.bf16.mxu0 %v7077_v42  ;;  %3001 = vmatprep.subr.bf16.mxu1 %v7080_v1  ;;  %8189 = vst [vmem:[#allocation55_spill] sm:$0xff] %v7086_v22  ;;  %8190 = vst [vmem:[#allocation58_spill] sm:$0xff] %v7089_v17 }
 0x758   : > { %v4925_v30 = vpop.eup %4924 }
 0x759   : > { %v2854_v6 = vmul.f32 %v4925_v30, %v4923_v7  ;;  %v7097_v7 = vld [vmem:[#allocation12 + $0x20] ss:$16 sps:$4 sm:$0xff]  }
 0x75a   : > { %2961 = vmatpush1.bf16.msra.mxu0 %v7083_v26  ;;  %3002 = vmatpush1.bf16.msra.mxu1 %v7086_v22  ;;  %8192 = vst [vmem:[#allocation60_spill] sm:$0xff] %v7097_v7  ;;  %v7100_v26 = vld [vmem:[#allocation12 + $0x28] ss:$16 sps:$4 sm:$0xff]   ;;  %v7103_v22 = vld [vmem:[#allocation12 + $0x4] ss:$16 sps:$4 sm:$0xff]  }
 0x75b   : > { %2962 = vmatprep.subr.bf16.mxu0 %v7089_v17  ;;  %3003 = vmatprep.subr.bf16.mxu1 %v7092_v9  ;;  %v2863_v1 = vsub.f32 %v2854_v6, %v6839_v31  ;;  %v7106_v17 = vld [vmem:[#allocation12 + $0xc] ss:$16 sps:$4 sm:$0xff]   ;;  %v7114_v9 = vld [vmem:[#allocation12] ss:$16 sps:$4 sm:$0xff]  }
 0x75d   : > { %v2864_v30 = vmul.f32 %v2863_v1, %v7041_v20 }
 0x75e   : > { %2963 = vmatpush1.bf16.msra.mxu0 %v7097_v7  ;;  %3004 = vmatpush1.bf16.msra.mxu1 %v7100_v26  ;;  %v7117_v7 = vld [vmem:[#allocation12 + $0x8] ss:$16 sps:$4 sm:$0xff]  }
 0x75f   : > { %2964 = vmatprep.subr.bf16.mxu0 %v7103_v22  ;;  %3005 = vmatprep.subr.bf16.mxu1 %v7106_v17  ;;  %v7110_v6 = vadd.f32 %v2864_v30, %v6839_v31  ;;  %v7155_v31 = vld [vmem:[#allocation13 + $0xec] ss:$16 sps:$4 sm:$0xff]   ;;  %v8194_v30 = vld [vmem:[#allocation46_spill] sm:$0xff] }
 0x760   : > { %8193 = vst [vmem:[#allocation61_spill] sm:$0xff] %v7155_v31 }
 0x761   : > { %v2866_v1 = vpack.c.bf16 %v7110_v6, %v7110_v6 }
 0x762   : > { %2965 = vmatpush1.bf16.msra.mxu0 %v7114_v9  ;;  %3006 = vmatpush1.bf16.msra.mxu1 %v7117_v7 }
 0x763   : > { %3079 = vmatprep.subr.bf16.mxu0 %v6847_v37  ;;  %3120 = vmatprep.subr.bf16.mxu1 %v6850_v38 }
 0x765   : > { %2983 = vmatmul.mubr.bf16.vlgmr.msra.gmra.mxu0 %v2866_v1  ;;  %3024 = vmatmul.mubr.bf16.vlgmr.msra.gmra.mxu1 %v2866_v1 }
 0x766   : > { %3080 = vmatpush1.bf16.msra.mxu0 %v6855_v40  ;;  %3121 = vmatpush1.bf16.msra.mxu1 %v6858_v41 }
 0x767   : > { %3081 = vmatprep.subr.bf16.mxu0 %v6861_v62  ;;  %3122 = vmatprep.subr.bf16.mxu1 %v6864_v56 }
 0x768   : > { %3111 = vmatprep.mubr.bf16.mxu0 %v7898_v39  ;;  %3152 = vmatprep.mubr.bf16.mxu1 %v7898_v39 }
 0x76a   : > { %3082 = vmatpush1.bf16.msra.mxu0 %v6869_v48  ;;  %3123 = vmatpush1.bf16.msra.mxu1 %v6872_v49 }
 0x76b   : > { %3083 = vmatprep.subr.bf16.mxu0 %v6875_v52  ;;  %3124 = vmatprep.subr.bf16.mxu1 %v6878_v13 }
 0x76e   : > { %3084 = vmatpush1.bf16.msra.mxu0 %v6881_v14  ;;  %3125 = vmatpush1.bf16.msra.mxu1 %v6884_v63 }
 0x76f   : > { %3085 = vmatprep.subr.bf16.mxu0 %v6887_v59  ;;  %3126 = vmatprep.subr.bf16.mxu1 %v6890_v18 }
 0x772   : > { %3086 = vmatpush1.bf16.msra.mxu0 %v6893_v19  ;;  %3127 = vmatpush1.bf16.msra.mxu1 %v6896_v29 }
 0x773   : > { %3087 = vmatprep.subr.bf16.mxu0 %v6899_v51  ;;  %3128 = vmatprep.subr.bf16.mxu1 %v6902_v12 }
 0x776   : > { %3088 = vmatpush1.bf16.msra.mxu0 %v6905_v15  ;;  %3129 = vmatpush1.bf16.msra.mxu1 %v6908_v5 }
 0x777   : > { %3089 = vmatprep.subr.bf16.mxu0 %v6911_v2  ;;  %3130 = vmatprep.subr.bf16.mxu1 %v6914_v55 }
 0x77a   : > { %3090 = vmatpush1.bf16.msra.mxu0 %v6917_v33  ;;  %3131 = vmatpush1.bf16.msra.mxu1 %v6920_v34 }
 0x77b   : > { %3091 = vmatprep.subr.bf16.mxu0 %v6923_v53  ;;  %3132 = vmatprep.subr.bf16.mxu1 %v6926_v47 }
 0x77e   : > { %3092 = vmatpush1.bf16.msra.mxu0 %v6929_v8  ;;  %3133 = vmatpush1.bf16.msra.mxu1 %v6932_v10  ;;  %v7159_v8 = vld [vmem:[#allocation13 + $0xe8] ss:$16 sps:$4 sm:$0xff]  }
 0x77f   : > { %3093 = vmatprep.subr.bf16.mxu0 %v6935_v23  ;;  %3134 = vmatprep.subr.bf16.mxu1 %v6938_v35  ;;  %8195 = vst [vmem:[#allocation62_spill] sm:$0xff] %v7159_v8  ;;  %v7162_v23 = vld [vmem:[#allocation13 + $0xc4] ss:$16 sps:$4 sm:$0xff]  }
 0x780   : > { %8196 = vst [vmem:[#allocation63_spill] sm:$0xff] %v7162_v23 }
 0x782   : > { %3094 = vmatpush1.bf16.msra.mxu0 %v6941_v50  ;;  %3135 = vmatpush1.bf16.msra.mxu1 %v6944_v46  ;;  %v7165_v50 = vld [vmem:[#allocation13 + $0xcc] ss:$16 sps:$4 sm:$0xff]  }
 0x783   : > { %3202 = vmatprep.subr.bf16.mxu0 %v6947_v57  ;;  %3243 = vmatprep.subr.bf16.mxu1 %v7155_v31  ;;  %8197 = vst [vmem:[#allocation64_spill] sm:$0xff] %v7165_v50  ;;  %v7170_v31 = vld [vmem:[#allocation13 + $0xc0] ss:$16 sps:$4 sm:$0xff]  }
 0x784   : > { %8198 = vst [vmem:[#allocation65_spill] sm:$0xff] %v7170_v31 }
 0x785   : > { %3112 = vmatmul.mubr.bf16.vlgmr.msra.gmra.mxu0 %v2866_v1  ;;  %3153 = vmatmul.mubr.bf16.vlgmr.msra.gmra.mxu1 %v2866_v1  ;;  %v7173_v1 = vld [vmem:[#allocation13 + $0xc8] ss:$16 sps:$4 sm:$0xff]  }
 0x786   : > { %3203 = vmatpush1.bf16.msra.mxu0 %v8194_v30  ;;  %3244 = vmatpush1.bf16.msra.mxu1 %v7159_v8  ;;  %8199 = vst [vmem:[#allocation66_spill] sm:$0xff] %v7173_v1  ;;  %v7176_v8 = vld [vmem:[#allocation13 + $0xa4] ss:$16 sps:$4 sm:$0xff]   ;;  %v7185_v30 = vld [vmem:[#allocation13 + $0xa8] ss:$16 sps:$4 sm:$0xff]  }
 0x787   : > { %3204 = vmatprep.subr.bf16.mxu0 %v7162_v23  ;;  %3245 = vmatprep.subr.bf16.mxu1 %v7165_v50  ;;  %8200 = vst [vmem:[#allocation67_spill] sm:$0xff] %v7176_v8  ;;  %v7179_v23 = vld [vmem:[#allocation13 + $0xac] ss:$16 sps:$4 sm:$0xff]   ;;  %v7182_v50 = vld [vmem:[#allocation13 + $0xa0] ss:$16 sps:$4 sm:$0xff]   ;;  %8203 = vst [vmem:[#allocation70_spill] sm:$0xff] %v7185_v30 }
 0x788   : > { %3234 = vmatprep.mubr.bf16.mxu0 %v7898_v39  ;;  %3275 = vmatprep.mubr.bf16.mxu1 %v7898_v39  ;;  %8201 = vst [vmem:[#allocation68_spill] sm:$0xff] %v7179_v23  ;;  %8202 = vst [vmem:[#allocation69_spill] sm:$0xff] %v7182_v50 }
 0x78a   : > { %3205 = vmatpush1.bf16.msra.mxu0 %v7170_v31  ;;  %3246 = vmatpush1.bf16.msra.mxu1 %v7173_v1  ;;  %v7188_v31 = vld [vmem:[#allocation13 + $0x84] ss:$16 sps:$4 sm:$0xff]   ;;  %v7191_v1 = vld [vmem:[#allocation13 + $0x8c] ss:$16 sps:$4 sm:$0xff]  }
 0x78b   : > { %3206 = vmatprep.subr.bf16.mxu0 %v7176_v8  ;;  %3247 = vmatprep.subr.bf16.mxu1 %v7179_v23  ;;  %8204 = vst [vmem:[#allocation71_spill] sm:$0xff] %v7188_v31  ;;  %8205 = vst [vmem:[#allocation72_spill] sm:$0xff] %v7191_v1  ;;  %v7194_v8 = vld [vmem:[#allocation13 + $0x80] ss:$16 sps:$4 sm:$0xff]   ;;  %v7197_v23 = vld [vmem:[#allocation13 + $0x88] ss:$16 sps:$4 sm:$0xff]  }
 0x78c   : > { %8206 = vst [vmem:[#allocation73_spill] sm:$0xff] %v7194_v8  ;;  %8207 = vst [vmem:[#allocation74_spill] sm:$0xff] %v7197_v23 }
 0x78e   : > { %3207 = vmatpush1.bf16.msra.mxu0 %v7182_v50  ;;  %3248 = vmatpush1.bf16.msra.mxu1 %v7185_v30  ;;  %v7200_v50 = vld [vmem:[#allocation13 + $0x64] ss:$16 sps:$4 sm:$0xff]   ;;  %v7203_v30 = vld [vmem:[#allocation13 + $0x6c] ss:$16 sps:$4 sm:$0xff]  }
 0x78f   : > { %3208 = vmatprep.subr.bf16.mxu0 %v7188_v31  ;;  %3249 = vmatprep.subr.bf16.mxu1 %v7191_v1  ;;  %8208 = vst [vmem:[#allocation75_spill] sm:$0xff] %v7200_v50  ;;  %8209 = vst [vmem:[#allocation76_spill] sm:$0xff] %v7203_v30  ;;  %v7206_v31 = vld [vmem:[#allocation13 + $0x60] ss:$16 sps:$4 sm:$0xff]   ;;  %v7209_v1 = vld [vmem:[#allocation13 + $0x68] ss:$16 sps:$4 sm:$0xff]  }
 0x790   : > { %8210 = vst [vmem:[#allocation77_spill] sm:$0xff] %v7206_v31  ;;  %8211 = vst [vmem:[#allocation78_spill] sm:$0xff] %v7209_v1 }
 0x792   : > { %3209 = vmatpush1.bf16.msra.mxu0 %v7194_v8  ;;  %3250 = vmatpush1.bf16.msra.mxu1 %v7197_v23  ;;  %v7212_v8 = vld [vmem:[#allocation13 + $0x44] ss:$16 sps:$4 sm:$0xff]   ;;  %v7215_v23 = vld [vmem:[#allocation13 + $0x4c] ss:$16 sps:$4 sm:$0xff]  }
 0x793   : > { %3210 = vmatprep.subr.bf16.mxu0 %v7200_v50  ;;  %3251 = vmatprep.subr.bf16.mxu1 %v7203_v30  ;;  %8212 = vst [vmem:[#allocation79_spill] sm:$0xff] %v7212_v8  ;;  %8213 = vst [vmem:[#allocation80_spill] sm:$0xff] %v7215_v23  ;;  %v7218_v50 = vld [vmem:[#allocation13 + $0x40] ss:$16 sps:$4 sm:$0xff]   ;;  %v7221_v30 = vld [vmem:[#allocation13 + $0x48] ss:$16 sps:$4 sm:$0xff]  }
 0x794   : > { %8214 = vst [vmem:[#allocation81_spill] sm:$0xff] %v7218_v50  ;;  %8215 = vst [vmem:[#allocation82_spill] sm:$0xff] %v7221_v30 }
 0x796   : > { %3211 = vmatpush1.bf16.msra.mxu0 %v7206_v31  ;;  %3252 = vmatpush1.bf16.msra.mxu1 %v7209_v1  ;;  %v7224_v31 = vld [vmem:[#allocation13 + $0x24] ss:$16 sps:$4 sm:$0xff]   ;;  %v7227_v1 = vld [vmem:[#allocation13 + $0x2c] ss:$16 sps:$4 sm:$0xff]  }
 0x797   : > { %3212 = vmatprep.subr.bf16.mxu0 %v7212_v8  ;;  %3253 = vmatprep.subr.bf16.mxu1 %v7215_v23  ;;  %8216 = vst [vmem:[#allocation83_spill] sm:$0xff] %v7224_v31  ;;  %8217 = vst [vmem:[#allocation84_spill] sm:$0xff] %v7227_v1  ;;  %v7230_v8 = vld [vmem:[#allocation13 + $0x20] ss:$16 sps:$4 sm:$0xff]   ;;  %v7233_v23 = vld [vmem:[#allocation13 + $0x28] ss:$16 sps:$4 sm:$0xff]  }
 0x798   : > { %8218 = vst [vmem:[#allocation85_spill] sm:$0xff] %v7230_v8  ;;  %8219 = vst [vmem:[#allocation86_spill] sm:$0xff] %v7233_v23 }
 0x79a   : > { %3213 = vmatpush1.bf16.msra.mxu0 %v7218_v50  ;;  %3254 = vmatpush1.bf16.msra.mxu1 %v7221_v30  ;;  %v7236_v50 = vld [vmem:[#allocation13 + $0x4] ss:$16 sps:$4 sm:$0xff]   ;;  %v7239_v30 = vld [vmem:[#allocation13 + $0xc] ss:$16 sps:$4 sm:$0xff]  }
 0x79b   : > { %3214 = vmatprep.subr.bf16.mxu0 %v7224_v31  ;;  %3255 = vmatprep.subr.bf16.mxu1 %v7227_v1  ;;  %8220 = vst [vmem:[#allocation87_spill] sm:$0xff] %v7236_v50  ;;  %8221 = vst [vmem:[#allocation88_spill] sm:$0xff] %v7239_v30  ;;  %v7242_v31 = vld [vmem:[#allocation13] ss:$16 sps:$4 sm:$0xff]   ;;  %v7245_v1 = vld [vmem:[#allocation13 + $0x8] ss:$16 sps:$4 sm:$0xff]  }
 0x79c   : > { %8222 = vst [vmem:[#allocation89_spill] sm:$0xff] %v7242_v31  ;;  %8223 = vst [vmem:[#allocation90_spill] sm:$0xff] %v7245_v1 }
 0x79e   : > { %3215 = vmatpush1.bf16.msra.mxu0 %v7230_v8  ;;  %3256 = vmatpush1.bf16.msra.mxu1 %v7233_v23  ;;  %v7248_v8 = vld [vmem:[#allocation12 + $0xe4] ss:$16 sps:$4 sm:$0xff]   ;;  %v7251_v23 = vld [vmem:[#allocation12 + $0xec] ss:$16 sps:$4 sm:$0xff]  }
 0x79f   : > { %3216 = vmatprep.subr.bf16.mxu0 %v7236_v50  ;;  %3257 = vmatprep.subr.bf16.mxu1 %v7239_v30  ;;  %8224 = vst [vmem:[#allocation91_spill] sm:$0xff] %v7248_v8  ;;  %8225 = vst [vmem:[#allocation92_spill] sm:$0xff] %v7251_v23 }
 0x7a2   : > { %3217 = vmatpush1.bf16.msra.mxu0 %v7242_v31  ;;  %3258 = vmatpush1.bf16.msra.mxu1 %v7245_v1 }
 0x7a3   : > { %3284 = vmatprep.subr.bf16.mxu0 %v7248_v8  ;;  %3325 = vmatprep.subr.bf16.mxu1 %v7251_v23 }
 0x805   : > { %v2902_v50 = vpop.f32.mrf.mxu0  ;;  %v2943_v57 = vpop.f32.mrf.mxu1 }
 0x807   : > { %v2904_v46 = vpop.f32.mrf.mxu0  ;;  %v2945_v30 = vpop.f32.mrf.mxu1 }
 0x809   : > { %v2906_v35 = vpop.f32.mrf.mxu0  ;;  %v2947_v10 = vpop.f32.mrf.mxu1 }
 0x80b   : > { %v2907_v47 = vpop.f32.mrf.mxu0  ;;  %v2948_v31 = vpop.f32.mrf.mxu1 }
 0x825   : > { %v2984_v53 = vpop.f32.mrf.mxu0  ;;  %v3025_v34 = vpop.f32.mrf.mxu1 }
 0x826   : > { %v2985_v33 = vadd.f32 %v2984_v53, %v2902_v50  ;;  %v3026_v35 = vadd.f32 %v3025_v34, %v2943_v57 }
 0x827   : > { %v2986_v1 = vpop.f32.mrf.mxu0  ;;  %v3027_v55 = vpop.f32.mrf.mxu1 }
 0x828   : > { %v3032_v2 = vadd.f32 %v2985_v33, %v6117_v28  ;;  %v2987_v8 = vadd.f32 %v2986_v1, %v2904_v46  ;;  %v3028_v47 = vadd.f32 %v3027_v55, %v2945_v30  ;;  %v3034_v33 = vadd.f32 %v3026_v35, %v6138_v61 }
 0x829   : > { %v2988_v5 = vpop.f32.mrf.mxu0  ;;  %v3029_v15 = vpop.f32.mrf.mxu1 }
 0x82a   : > { %v4357_v12 = vmul.f32 -1.442695, %v3032_v2  ;;  %v3033_v23 = vadd.f32 %v2987_v8, %v6119_v44  ;;  %v3035_v53 = vadd.f32 %v3028_v47, %v6131_v3  ;;  %v4362_v8 = vld [vmem:[%s5674_s24 + $0xc8] sm:$0xff] }
 0x82b   : > { %v2989_v51 = vpop.f32.mrf.mxu0  ;;  %v3030_v29 = vpop.f32.mrf.mxu1 }
 0x82c   : > { %4926 = vpow2.f32 %v4357_v12  ;;  %v4358_v10 = vmul.f32 -1.442695, %v3033_v23  ;;  %v4359_v50 = vmul.f32 -1.442695, %v3035_v53  ;;  %v4361_v29 = vld [vmem:[%s5674_s24 + $0xc0] sm:$0xff] }
 0x82e   : > { %4928 = vpow2.f32 %v4358_v10 }
 0x82f   : > { %4930 = vpow2.f32 %v4359_v50 }
 0x839   : > { %v4927_v31 = vpop.eup %4926 }
 0x83a   : > { %v3039_v5 = vadd.f32 1.0, %v4927_v31 }
 0x83b   : > { %v4929_v15 = vpop.eup %4928 }
 0x83c   : > { %4932 = vrcp.f32 %v3039_v5  ;;  %v3045_v2 = vadd.f32 1.0, %v4929_v15  ;;  %v4931_v30 = vpop.eup %4930 }
 0x83d   : > { %4934 = vtanh.f32 %v3034_v33  ;;  %v3052_v31 = vadd.f32 1.0, %v4931_v30 }
 0x83e   : > { %4936 = vrcp.f32 %v3045_v2 }
 0x845   : > { %v3113_v51 = vpop.f32.mrf.mxu0  ;;  %v3154_v12 = vpop.f32.mrf.mxu1 }
 0x846   : > { %v3161_v55 = vadd.f32 %v4361_v29, %v3113_v51  ;;  %v4364_v51 = vld [vmem:[%s5674_s24 + $0xd8] sm:$0xff] }
 0x847   : > { %v3115_v23 = vpop.f32.mrf.mxu0  ;;  %v3156_v46 = vpop.f32.mrf.mxu1 }
 0x848   : > { %v4365_v34 = vmul.f32 -1.442695, %v3161_v55  ;;  %v3162_v57 = vadd.f32 %v4362_v8, %v3115_v23  ;;  %v3164_v55 = vadd.f32 %v4364_v51, %v3156_v46 }
 0x849   : > { %v4933_v1 = vpop.eup %4932  ;;  %v3117_v10 = vpop.f32.mrf.mxu0 }
 0x84a   : > { %v3158_v47 = vpop.f32.mrf.mxu1  ;;  %v4935_v53 = vpop.eup %4934  ;;  %4938 = vpow2.f32 %v4365_v34  ;;  %v4366_v35 = vmul.f32 -1.442695, %v3162_v57  ;;  %v4363_v34 = vld [vmem:[%s5674_s24 + $0xd0] sm:$0xff]  ;;  %v4367_v30 = vmul.f32 -1.442695, %v3164_v55 }
 0x84b   : > { %v4937_v50 = vpop.eup %4936  ;;  %v3118_v33 = vpop.f32.mrf.mxu0  ;;  %v3056_v15 = vmul.f32 %v4935_v53, %v4933_v1  ;;  %v3163_v47 = vadd.f32 %v4363_v34, %v3154_v12 }
 0x84c   : > { %v3159_v5 = vpop.f32.mrf.mxu1  ;;  %v3055_v2 = vmul.f32 %v4937_v50, %v7001_v54  ;;  %4940 = vpow2.f32 %v4366_v35 }
 0x84d   : > { %4942 = vrcp.f32 %v3052_v31  ;;  %v7271_v5 = vmul.f32 %v7003_v36, %v6810_v60 }
 0x84e   : > { %v3057_v29 = vadd.f32 %v3056_v15, %v3055_v2 }
 0x850   : > { %4944 = vtanh.f32 %v3057_v29  ;;  %v3060_v8 = vsub.f32 %v3057_v29, %v7001_v54 }
 0x851   : > { %4946 = vpow2.f32 %v4367_v30  ;;  %v7296_v30 = vpop.permute.xlu0 %3192 }
 0x852   : > { %v3061_v23 = vmul.f32 %v3060_v8, %v7041_v20 }
 0x854   : > { %v7266_v57 = vadd.f32 %v3061_v23, %v7001_v54 }
 0x857   : > { %v4939_v10 = vpop.eup %4938 }
 0x858   : > { %v3168_v1 = vadd.f32 1.0, %v4939_v10 }
 0x859   : > { %v4941_v53 = vpop.eup %4940 }
 0x85a   : > { %4948 = vrcp.f32 %v3168_v1  ;;  %v3174_v35 = vadd.f32 1.0, %v4941_v53  ;;  %v4943_v50 = vpop.eup %4942  ;;  %v8227_v1 = vld [vmem:[#allocation48_spill] sm:$0xff] }
 0x85b   : > { %4950 = vtanh.f32 %v3163_v47  ;;  %v8226_v47 = vld [vmem:[#allocation47_spill] sm:$0xff] }
 0x85c   : > { %4952 = vrcp.f32 %v3174_v35  ;;  %v8228_v35 = vld [vmem:[#allocation24_spill] sm:$0xff] }
 0x85d   : > { %v4945_v31 = vpop.eup %4944 }
 0x85e   : > { %v3059_v33 = vmul.f32 %v4945_v31, %v4943_v50  ;;  %v4947_v29 = vpop.eup %4946  ;;  %v8229_v50 = vld [vmem:[#allocation44_spill] sm:$0xff]  ;;  %v8230_v31 = vld [vmem:[#allocation49_spill] sm:$0xff] }
 0x85f   : > { %v3181_v36 = vadd.f32 1.0, %v4947_v29 }
 0x860   : > { %v3063_v46 = vsub.f32 %v3059_v33, %v7009_v32  ;;  %v7274_v54 = vmul.f32 %v3059_v33, %v7041_v20  ;;  %v8231_v33 = vld [vmem:[#allocation51_spill] sm:$0xff] }
 0x861   : > { %4954 = vrcp.f32 %v3181_v36  ;;  %v8237_v36 = vld [vmem:[#allocation58_spill] sm:$0xff] }
 0x862   : > { %v3064_v12 = vmul.f32 %v3063_v46, %v7041_v20  ;;  %v3751_v15 = vpack.c.bf16 %v7274_v54, %v7271_v5  ;;  %v8232_v46 = vld [vmem:[#allocation50_spill] sm:$0xff]  ;;  %v4748_v5 = vld [vmem:[#allocation16 + $0x8] sm:$0xff]   ;;  %v4749_v54 = vld [vmem:[#allocation16] sm:$0xff]  }
 0x864   : > { %v7280_v2 = vadd.f32 %v3064_v12, %v7009_v32  ;;  %v8233_v12 = vld [vmem:[#allocation52_spill] sm:$0xff] }
 0x866   : > { %v3201_v51 = vpack.c.bf16 %v7280_v2, %v7280_v2 }
 0x867   : > { %v4949_v8 = vpop.eup %4948 }
 0x868   : > { %v4951_v55 = vpop.eup %4950  ;;  %3235 = vmatmul.mubr.bf16.vlgmr.msra.gmra.mxu0 %v3201_v51  ;;  %3276 = vmatmul.mubr.bf16.vlgmr.msra.gmra.mxu1 %v3201_v51  ;;  %v8234_v51 = vld [vmem:[#allocation53_spill] sm:$0xff] }
 0x869   : > { %v4953_v60 = vpop.eup %4952  ;;  %3285 = vmatpush1.bf16.msra.mxu0 %v7013_v0  ;;  %3326 = vmatpush1.bf16.msra.mxu1 %v7016_v16  ;;  %v3185_v20 = vmul.f32 %v4951_v55, %v4949_v8  ;;  %v8235_v55 = vld [vmem:[#allocation57_spill] sm:$0xff] }
 0x86a   : > { %v3184_v23 = vmul.f32 %v4953_v60, %v7057_v4  ;;  %3286 = vmatprep.subr.bf16.mxu0 %v7020_v21  ;;  %3327 = vmatprep.subr.bf16.mxu1 %v7023_v43  ;;  %v8236_v60 = vld [vmem:[#allocation55_spill] sm:$0xff] }
 0x86b   : > { %3316 = vmatprep.mubr.bf16.mxu0 %v7898_v39  ;;  %3357 = vmatprep.mubr.bf16.mxu1 %v7898_v39 }
 0x86c   : > { %v3186_v32 = vadd.f32 %v3185_v20, %v3184_v23  ;;  %v8238_v20 = vld [vmem:[#allocation59_spill] sm:$0xff] }
 0x86d   : > { %3287 = vmatpush1.bf16.msra.mxu0 %v7028_v25  ;;  %3328 = vmatpush1.bf16.msra.mxu1 %v7031_v27 }
 0x86e   : > { %4956 = vtanh.f32 %v3186_v32  ;;  %v3189_v34 = vsub.f32 %v3186_v32, %v7057_v4  ;;  %3288 = vmatprep.subr.bf16.mxu0 %v7035_v58  ;;  %3329 = vmatprep.subr.bf16.mxu1 %v7038_v45  ;;  %v4955_v29 = vpop.eup %4954 }
 0x870   : > { %v3195_v10 = vmul.f32 %v7296_v30, %v3189_v34  ;;  %v8239_v34 = vld [vmem:[#allocation60_spill] sm:$0xff] }
 0x871   : > { %3289 = vmatpush1.bf16.msra.mxu0 %v7044_v11  ;;  %3330 = vmatpush1.bf16.msra.mxu1 %v7047_v24 }
 0x872   : > { %3290 = vmatprep.subr.bf16.mxu0 %v8226_v47  ;;  %3331 = vmatprep.subr.bf16.mxu1 %v8227_v1  ;;  %v7304_v53 = vadd.f32 %v3195_v10, %v7057_v4 }
 0x875   : > { %3291 = vmatpush1.bf16.msra.mxu0 %v8228_v35  ;;  %3332 = vmatpush1.bf16.msra.mxu1 %v8229_v50 }
 0x876   : > { %3292 = vmatprep.subr.bf16.mxu0 %v8230_v31  ;;  %3333 = vmatprep.subr.bf16.mxu1 %v8231_v33 }
 0x879   : > { %3293 = vmatpush1.bf16.msra.mxu0 %v8232_v46  ;;  %3334 = vmatpush1.bf16.msra.mxu1 %v8233_v12 }
 0x87a   : > { %3294 = vmatprep.subr.bf16.mxu0 %v7077_v42  ;;  %3335 = vmatprep.subr.bf16.mxu1 %v8234_v51 }
 0x87b   : > { %v4957_v8 = vpop.eup %4956 }
 0x87c   : > { %v3188_v4 = vmul.f32 %v4957_v8, %v4955_v29  ;;  %v8256_v8 = vld [vmem:[#allocation45_spill] sm:$0xff] }
 0x87d   : > { %3295 = vmatpush1.bf16.msra.mxu0 %v8235_v55  ;;  %3336 = vmatpush1.bf16.msra.mxu1 %v8236_v60 }
 0x87e   : > { %3296 = vmatprep.subr.bf16.mxu0 %v8237_v36  ;;  %3337 = vmatprep.subr.bf16.mxu1 %v8238_v20  ;;  %v3197_v23 = vsub.f32 %v3188_v4, %v7110_v6  ;;  %v8257_v4 = vld [vmem:[#allocation42_spill] sm:$0xff] }
 0x880   : > { %v3198_v32 = vmul.f32 %v3197_v23, %v7296_v30  ;;  %v8258_v23 = vld [vmem:[#allocation61_spill] sm:$0xff] }
 0x881   : > { %3297 = vmatpush1.bf16.msra.mxu0 %v8239_v34  ;;  %3338 = vmatpush1.bf16.msra.mxu1 %v7100_v26 }
 0x882   : > { %3298 = vmatprep.subr.bf16.mxu0 %v7103_v22  ;;  %3339 = vmatprep.subr.bf16.mxu1 %v7106_v17  ;;  %v7325_v10 = vadd.f32 %v3198_v32, %v7110_v6  ;;  %v8255_v6 = vld [vmem:[#allocation40_spill] sm:$0xff]  ;;  %v8259_v32 = vld [vmem:[#allocation46_spill] sm:$0xff] }
 0x884   : > { %v3200_v29 = vpack.c.bf16 %v7325_v10, %v7325_v10 }
 0x885   : > { %3299 = vmatpush1.bf16.msra.mxu0 %v7114_v9  ;;  %3340 = vmatpush1.bf16.msra.mxu1 %v7117_v7 }
 0x886   : > { %3413 = vmatprep.subr.bf16.mxu0 %v6847_v37  ;;  %3454 = vmatprep.subr.bf16.mxu1 %v6850_v38  ;;  %v8240_v37 = vld [vmem:[#allocation29_spill] sm:$0xff]  ;;  %v8241_v38 = vld [vmem:[#allocation26_spill] sm:$0xff] }
 0x888   : > { %3317 = vmatmul.mubr.bf16.vlgmr.msra.gmra.mxu0 %v3200_v29  ;;  %3358 = vmatmul.mubr.bf16.vlgmr.msra.gmra.mxu1 %v3200_v29 }
 0x889   : > { %3414 = vmatpush1.bf16.msra.mxu0 %v6855_v40  ;;  %3455 = vmatpush1.bf16.msra.mxu1 %v6858_v41  ;;  %v8242_v40 = vld [vmem:[#allocation31_spill] sm:$0xff]  ;;  %v8243_v41 = vld [vmem:[#allocation28_spill] sm:$0xff] }
 0x88a   : > { %3415 = vmatprep.subr.bf16.mxu0 %v6861_v62  ;;  %3456 = vmatprep.subr.bf16.mxu1 %v6864_v56  ;;  %v8244_v62 = vld [vmem:[#allocation33_spill] sm:$0xff]  ;;  %v8245_v56 = vld [vmem:[#allocation30_spill] sm:$0xff] }
 0x88b   : > { %3445 = vmatprep.mubr.bf16.mxu0 %v7898_v39  ;;  %3486 = vmatprep.mubr.bf16.mxu1 %v7898_v39 }
 0x88d   : > { %3416 = vmatpush1.bf16.msra.mxu0 %v6869_v48  ;;  %3457 = vmatpush1.bf16.msra.mxu1 %v6872_v49  ;;  %v8246_v48 = vld [vmem:[#allocation35_spill] sm:$0xff]  ;;  %v8247_v49 = vld [vmem:[#allocation32_spill] sm:$0xff] }
 0x88e   : > { %3417 = vmatprep.subr.bf16.mxu0 %v6875_v52  ;;  %3458 = vmatprep.subr.bf16.mxu1 %v6878_v13  ;;  %v8248_v52 = vld [vmem:[#allocation37_spill] sm:$0xff]  ;;  %v8249_v13 = vld [vmem:[#allocation34_spill] sm:$0xff] }
 0x891   : > { %3418 = vmatpush1.bf16.msra.mxu0 %v6881_v14  ;;  %3459 = vmatpush1.bf16.msra.mxu1 %v6884_v63  ;;  %v8250_v14 = vld [vmem:[#allocation39_spill] sm:$0xff]  ;;  %v8251_v63 = vld [vmem:[#allocation36_spill] sm:$0xff] }
 0x892   : > { %3419 = vmatprep.subr.bf16.mxu0 %v6887_v59  ;;  %3460 = vmatprep.subr.bf16.mxu1 %v6890_v18  ;;  %v8252_v59 = vld [vmem:[#allocation41_spill] sm:$0xff]  ;;  %v8253_v18 = vld [vmem:[#allocation38_spill] sm:$0xff] }
 0x895   : > { %3420 = vmatpush1.bf16.msra.mxu0 %v6893_v19  ;;  %3461 = vmatpush1.bf16.msra.mxu1 %v8240_v37  ;;  %v8254_v19 = vld [vmem:[#allocation43_spill] sm:$0xff]  ;;  %v8260_v37 = vld [vmem:[#allocation62_spill] sm:$0xff] }
 0x896   : > { %3421 = vmatprep.subr.bf16.mxu0 %v8241_v38  ;;  %3462 = vmatprep.subr.bf16.mxu1 %v8242_v40  ;;  %v8261_v38 = vld [vmem:[#allocation63_spill] sm:$0xff]  ;;  %v8262_v40 = vld [vmem:[#allocation64_spill] sm:$0xff] }
 0x899   : > { %3422 = vmatpush1.bf16.msra.mxu0 %v8243_v41  ;;  %3463 = vmatpush1.bf16.msra.mxu1 %v8244_v62  ;;  %v8263_v41 = vld [vmem:[#allocation65_spill] sm:$0xff]  ;;  %v8264_v62 = vld [vmem:[#allocation66_spill] sm:$0xff] }
 0x89a   : > { %3423 = vmatprep.subr.bf16.mxu0 %v8245_v56  ;;  %3464 = vmatprep.subr.bf16.mxu1 %v8246_v48  ;;  %v8265_v56 = vld [vmem:[#allocation67_spill] sm:$0xff]  ;;  %v8266_v48 = vld [vmem:[#allocation68_spill] sm:$0xff] }
 0x89d   : > { %3424 = vmatpush1.bf16.msra.mxu0 %v8247_v49  ;;  %3465 = vmatpush1.bf16.msra.mxu1 %v8248_v52  ;;  %v8268_v49 = vld [vmem:[#allocation70_spill] sm:$0xff]  ;;  %v8269_v52 = vld [vmem:[#allocation71_spill] sm:$0xff] }
 0x89e   : > { %3425 = vmatprep.subr.bf16.mxu0 %v8249_v13  ;;  %3466 = vmatprep.subr.bf16.mxu1 %v8250_v14  ;;  %v8270_v13 = vld [vmem:[#allocation72_spill] sm:$0xff]  ;;  %v8271_v14 = vld [vmem:[#allocation73_spill] sm:$0xff] }
 0x8a1   : > { %3426 = vmatpush1.bf16.msra.mxu0 %v8251_v63  ;;  %3467 = vmatpush1.bf16.msra.mxu1 %v8252_v59  ;;  %v8272_v63 = vld [vmem:[#allocation74_spill] sm:$0xff]  ;;  %v8273_v59 = vld [vmem:[#allocation75_spill] sm:$0xff] }
 0x8a2   : > { %3427 = vmatprep.subr.bf16.mxu0 %v8253_v18  ;;  %3468 = vmatprep.subr.bf16.mxu1 %v8254_v19  ;;  %v8274_v18 = vld [vmem:[#allocation76_spill] sm:$0xff]  ;;  %v8275_v19 = vld [vmem:[#allocation77_spill] sm:$0xff] }
 0x8a5   : > { %3428 = vmatpush1.bf16.msra.mxu0 %v8255_v6  ;;  %3469 = vmatpush1.bf16.msra.mxu1 %v8256_v8  ;;  %v8276_v6 = vld [vmem:[#allocation78_spill] sm:$0xff]  ;;  %v8277_v8 = vld [vmem:[#allocation79_spill] sm:$0xff] }
 0x8a6   : > { %3536 = vmatprep.subr.bf16.mxu0 %v8257_v4  ;;  %3577 = vmatprep.subr.bf16.mxu1 %v8258_v23  ;;  %v8278_v4 = vld [vmem:[#allocation80_spill] sm:$0xff]  ;;  %v8279_v23 = vld [vmem:[#allocation81_spill] sm:$0xff] }
 0x8a8   : > { %3446 = vmatmul.mubr.bf16.vlgmr.msra.gmra.mxu0 %v3200_v29  ;;  %3487 = vmatmul.mubr.bf16.vlgmr.msra.gmra.mxu1 %v3200_v29  ;;  %v8267_v29 = vld [vmem:[#allocation69_spill] sm:$0xff] }
 0x8a9   : > { %3537 = vmatpush1.bf16.msra.mxu0 %v8259_v32  ;;  %3578 = vmatpush1.bf16.msra.mxu1 %v8260_v37  ;;  %v8280_v32 = vld [vmem:[#allocation82_spill] sm:$0xff]  ;;  %v8281_v37 = vld [vmem:[#allocation83_spill] sm:$0xff] }
 0x8aa   : > { %3538 = vmatprep.subr.bf16.mxu0 %v8261_v38  ;;  %3579 = vmatprep.subr.bf16.mxu1 %v8262_v40  ;;  %v8282_v38 = vld [vmem:[#allocation84_spill] sm:$0xff]  ;;  %v8283_v40 = vld [vmem:[#allocation85_spill] sm:$0xff] }
 0x8ab   : > { %3568 = vmatprep.mubr.bf16.mxu0 %v7898_v39  ;;  %3609 = vmatprep.mubr.bf16.mxu1 %v7898_v39 }
 0x8ad   : > { %3539 = vmatpush1.bf16.msra.mxu0 %v8263_v41  ;;  %3580 = vmatpush1.bf16.msra.mxu1 %v8264_v62  ;;  %v8284_v41 = vld [vmem:[#allocation86_spill] sm:$0xff]  ;;  %v8285_v62 = vld [vmem:[#allocation87_spill] sm:$0xff] }
 0x8ae   : > { %3540 = vmatprep.subr.bf16.mxu0 %v8265_v56  ;;  %3581 = vmatprep.subr.bf16.mxu1 %v8266_v48  ;;  %v8286_v56 = vld [vmem:[#allocation88_spill] sm:$0xff]  ;;  %v8287_v48 = vld [vmem:[#allocation89_spill] sm:$0xff] }
 0x8b1   : > { %3541 = vmatpush1.bf16.msra.mxu0 %v8267_v29  ;;  %3582 = vmatpush1.bf16.msra.mxu1 %v8268_v49  ;;  %v8288_v29 = vld [vmem:[#allocation90_spill] sm:$0xff]  ;;  %v8289_v49 = vld [vmem:[#allocation91_spill] sm:$0xff] }
 0x8b2   : > { %3542 = vmatprep.subr.bf16.mxu0 %v8269_v52  ;;  %3583 = vmatprep.subr.bf16.mxu1 %v8270_v13  ;;  %v8290_v52 = vld [vmem:[#allocation92_spill] sm:$0xff] }
 0x8b5   : > { %3543 = vmatpush1.bf16.msra.mxu0 %v8271_v14  ;;  %3584 = vmatpush1.bf16.msra.mxu1 %v8272_v63 }
 0x8b6   : > { %3544 = vmatprep.subr.bf16.mxu0 %v8273_v59  ;;  %3585 = vmatprep.subr.bf16.mxu1 %v8274_v18 }
 0x8b9   : > { %3545 = vmatpush1.bf16.msra.mxu0 %v8275_v19  ;;  %3586 = vmatpush1.bf16.msra.mxu1 %v8276_v6 }
 0x8ba   : > { %3546 = vmatprep.subr.bf16.mxu0 %v8277_v8  ;;  %3587 = vmatprep.subr.bf16.mxu1 %v8278_v4 }
 0x8bd   : > { %3547 = vmatpush1.bf16.msra.mxu0 %v8279_v23  ;;  %3588 = vmatpush1.bf16.msra.mxu1 %v8280_v32 }
 0x8be   : > { %3548 = vmatprep.subr.bf16.mxu0 %v8281_v37  ;;  %3589 = vmatprep.subr.bf16.mxu1 %v8282_v38 }
 0x8c1   : > { %3549 = vmatpush1.bf16.msra.mxu0 %v8283_v40  ;;  %3590 = vmatpush1.bf16.msra.mxu1 %v8284_v41 }
 0x8c2   : > { %3550 = vmatprep.subr.bf16.mxu0 %v8285_v62  ;;  %3591 = vmatprep.subr.bf16.mxu1 %v8286_v56 }
 0x8c5   : > { %3551 = vmatpush1.bf16.msra.mxu0 %v8287_v48  ;;  %3592 = vmatpush1.bf16.msra.mxu1 %v8288_v29 }
 0x8c6   : > { %3618 = vmatprep.subr.bf16.mxu0 %v8289_v49  ;;  %3659 = vmatprep.subr.bf16.mxu1 %v8290_v52 }
 0x928   : > { %v3236_v13 = vpop.f32.mrf.mxu0  ;;  %v3277_v14 = vpop.f32.mrf.mxu1 }
 0x92a   : > { %v3238_v63 = vpop.f32.mrf.mxu0  ;;  %v3279_v59 = vpop.f32.mrf.mxu1 }
 0x92c   : > { %v3240_v18 = vpop.f32.mrf.mxu0  ;;  %v3281_v19 = vpop.f32.mrf.mxu1 }
 0x92e   : > { %v3241_v6 = vpop.f32.mrf.mxu0  ;;  %v3282_v8 = vpop.f32.mrf.mxu1 }
 0x948   : > { %v3318_v4 = vpop.f32.mrf.mxu0  ;;  %v3359_v23 = vpop.f32.mrf.mxu1 }
 0x949   : > { %v3319_v32 = vadd.f32 %v3318_v4, %v3236_v13  ;;  %v3360_v6 = vadd.f32 %v3359_v23, %v3277_v14 }
 0x94a   : > { %v3320_v37 = vpop.f32.mrf.mxu0  ;;  %v3361_v38 = vpop.f32.mrf.mxu1 }
 0x94b   : > { %v3366_v40 = vadd.f32 %v3319_v32, %v6117_v28  ;;  %v3321_v41 = vadd.f32 %v3320_v37, %v3238_v63  ;;  %v3362_v19 = vadd.f32 %v3361_v38, %v3279_v59  ;;  %v3368_v63 = vadd.f32 %v3360_v6, %v6138_v61 }
 0x94c   : > { %v3322_v62 = vpop.f32.mrf.mxu0  ;;  %v3363_v56 = vpop.f32.mrf.mxu1 }
 0x94d   : > { %v4368_v48 = vmul.f32 -1.442695, %v3366_v40  ;;  %v3367_v29 = vadd.f32 %v3321_v41, %v6119_v44  ;;  %v3369_v13 = vadd.f32 %v3362_v19, %v6131_v3  ;;  %v4372_v41 = vld [vmem:[%s5674_s24 + $0xe0] sm:$0xff] }
 0x94e   : > { %v3323_v49 = vpop.f32.mrf.mxu0  ;;  %v3364_v52 = vpop.f32.mrf.mxu1 }
 0x94f   : > { %4958 = vpow2.f32 %v4368_v48  ;;  %v4369_v18 = vmul.f32 -1.442695, %v3367_v29  ;;  %v4370_v8 = vmul.f32 -1.442695, %v3369_v13  ;;  %v4373_v48 = vld [vmem:[%s5674_s24 + $0xe8] sm:$0xff] }
 0x951   : > { %4960 = vpow2.f32 %v4369_v18 }
 0x952   : > { %4962 = vpow2.f32 %v4370_v8 }
 0x95c   : > { %v4959_v4 = vpop.eup %4958 }
 0x95d   : > { %v3373_v32 = vadd.f32 1.0, %v4959_v4 }
 0x95e   : > { %v4961_v37 = vpop.eup %4960 }
 0x95f   : > { %4964 = vrcp.f32 %v3373_v32  ;;  %v3379_v40 = vadd.f32 1.0, %v4961_v37  ;;  %v4963_v49 = vpop.eup %4962 }
 0x960   : > { %4966 = vtanh.f32 %v3368_v63  ;;  %v3386_v4 = vadd.f32 1.0, %v4963_v49 }
 0x961   : > { %4968 = vrcp.f32 %v3379_v40 }
 0x968   : > { %v3447_v62 = vpop.f32.mrf.mxu0  ;;  %v3488_v56 = vpop.f32.mrf.mxu1 }
 0x969   : > { %v3495_v59 = vadd.f32 %v4372_v41, %v3447_v62  ;;  %v4375_v62 = vld [vmem:[%s5674_s24 + $0xf8] sm:$0xff] }
 0x96a   : > { %v3449_v38 = vpop.f32.mrf.mxu0  ;;  %v3490_v29 = vpop.f32.mrf.mxu1 }
 0x96b   : > { %v4376_v14 = vmul.f32 -1.442695, %v3495_v59  ;;  %v3496_v23 = vadd.f32 %v4373_v48, %v3449_v38  ;;  %v3498_v59 = vadd.f32 %v4375_v62, %v3490_v29 }
 0x96c   : > { %v4965_v52 = vpop.eup %4964  ;;  %v3451_v18 = vpop.f32.mrf.mxu0 }
 0x96d   : > { %v3492_v19 = vpop.f32.mrf.mxu1  ;;  %v4967_v13 = vpop.eup %4966  ;;  %4970 = vpow2.f32 %v4376_v14  ;;  %v4377_v6 = vmul.f32 -1.442695, %v3496_v23  ;;  %v4374_v14 = vld [vmem:[%s5674_s24 + $0xf0] sm:$0xff]  ;;  %v4378_v49 = vmul.f32 -1.442695, %v3498_v59 }
 0x96e   : > { %v4969_v8 = vpop.eup %4968  ;;  %v3452_v63 = vpop.f32.mrf.mxu0  ;;  %v3390_v37 = vmul.f32 %v4967_v13, %v4965_v52  ;;  %v3497_v19 = vadd.f32 %v4374_v14, %v3488_v56 }
 0x96f   : > { %v3493_v32 = vpop.f32.mrf.mxu1  ;;  %v3389_v40 = vmul.f32 %v4969_v8, %v7266_v57  ;;  %4972 = vpow2.f32 %v4377_v6 }
 0x970   : > { %4974 = vrcp.f32 %v3386_v4 }
 0x971   : > { %v3391_v41 = vadd.f32 %v3390_v37, %v3389_v40 }
 0x973   : > { %4976 = vtanh.f32 %v3391_v41  ;;  %v3394_v48 = vsub.f32 %v3391_v41, %v7266_v57 }
 0x974   : > { %4978 = vpow2.f32 %v4378_v49 }
 0x975   : > { %v3395_v38 = vmul.f32 %v3394_v48, %v7296_v30 }
 0x977   : > { %v7413_v23 = vadd.f32 %v3395_v38, %v7266_v57 }
 0x97a   : > { %v4971_v18 = vpop.eup %4970 }
 0x97b   : > { %v3502_v52 = vadd.f32 1.0, %v4971_v18 }
 0x97c   : > { %v4973_v13 = vpop.eup %4972 }
 0x97d   : > { %4980 = vrcp.f32 %v3502_v52  ;;  %v3508_v6 = vadd.f32 1.0, %v4973_v13  ;;  %v4975_v8 = vpop.eup %4974 }
 0x97e   : > { %4982 = vtanh.f32 %v3497_v19 }
 0x97f   : > { %4984 = vrcp.f32 %v3508_v6 }
 0x980   : > { %v4977_v4 = vpop.eup %4976 }
 0x981   : > { %v7415_v63 = vmul.f32 %v4977_v4, %v4975_v8  ;;  %v4979_v56 = vpop.eup %4978 }
 0x982   : > { %v3515_v48 = vadd.f32 1.0, %v4979_v56 }
 0x983   : > { %v3397_v29 = vsub.f32 %v7415_v63, %v7280_v2 }
 0x984   : > { %4986 = vrcp.f32 %v3515_v48 }
 0x985   : > { %v3398_v57 = vmul.f32 %v3397_v29, %v7296_v30 }
 0x987   : > { %v7421_v32 = vadd.f32 %v3398_v57, %v7280_v2 }
 0x989   : > { %v3535_v37 = vpack.c.bf16 %v7421_v32, %v7421_v32 }
 0x98a   : > { %v4981_v40 = vpop.eup %4980 }
 0x98b   : > { %v4983_v41 = vpop.eup %4982  ;;  %3569 = vmatmul.mubr.bf16.vlgmr.msra.gmra.mxu0 %v3535_v37  ;;  %3610 = vmatmul.mubr.bf16.vlgmr.msra.gmra.mxu1 %v3535_v37 }
 0x98c   : > { %v4985_v62 = vpop.eup %4984  ;;  %3619 = vmatpush1.bf16.msra.mxu0 %v7013_v0  ;;  %3660 = vmatpush1.bf16.msra.mxu1 %v7016_v16  ;;  %v3519_v59 = vmul.f32 %v4983_v41, %v4981_v40  ;;  %v7437_v16 = vpop.permute.xlu1 %3526 }
 0x98d   : > { %v3518_v38 = vmul.f32 %v4985_v62, %v7304_v53  ;;  %3620 = vmatprep.subr.bf16.mxu0 %v7020_v21  ;;  %3661 = vmatprep.subr.bf16.mxu1 %v7023_v43 }
 0x98e   : > { %3650 = vmatprep.mubr.bf16.mxu0 %v7898_v39  ;;  %3691 = vmatprep.mubr.bf16.mxu1 %v7898_v39 }
 0x98f   : > { %v3520_v2 = vadd.f32 %v3519_v59, %v3518_v38 }
 0x990   : > { %3621 = vmatpush1.bf16.msra.mxu0 %v7028_v25  ;;  %3662 = vmatpush1.bf16.msra.mxu1 %v7031_v27 }
 0x991   : > { %4988 = vtanh.f32 %v3520_v2  ;;  %v3523_v0 = vsub.f32 %v3520_v2, %v7304_v53  ;;  %3622 = vmatprep.subr.bf16.mxu0 %v7035_v58  ;;  %3663 = vmatprep.subr.bf16.mxu1 %v7038_v45  ;;  %v4987_v43 = vpop.eup %4986 }
 0x993   : > { %v3529_v21 = vmul.f32 %v7437_v16, %v3523_v0 }
 0x994   : > { %3623 = vmatpush1.bf16.msra.mxu0 %v7044_v11  ;;  %3664 = vmatpush1.bf16.msra.mxu1 %v7047_v24  ;;  %v4734_v24 = vld [vmem:[#allocation15 + $0x38] sm:$0xff]  }
 0x995   : > { %v3530_v39 = vadd.f32 %v3529_v21, %v7304_v53  ;;  %3624 = vmatprep.subr.bf16.mxu0 %v8226_v47  ;;  %3665 = vmatprep.subr.bf16.mxu1 %v8227_v1  ;;  %v4735_v47 = vld [vmem:[#allocation15 + $0x30] sm:$0xff]   ;;  %v8291_v1 = vld [vmem:[#allocation56_spill] sm:$0xff] }
 0x997   : > { %3738 = vst [vmem:[#allocation3] sm:$0xff] %v3530_v39 }
 0x998   : > { %3625 = vmatpush1.bf16.msra.mxu0 %v8228_v35  ;;  %3666 = vmatpush1.bf16.msra.mxu1 %v8229_v50  ;;  %v4738_v35 = vld [vmem:[#allocation15 + $0x18] sm:$0xff]   ;;  %v4741_v50 = vld [vmem:[#allocation15] sm:$0xff]  }
 0x999   : > { %3626 = vmatprep.subr.bf16.mxu0 %v8230_v31  ;;  %3667 = vmatprep.subr.bf16.mxu1 %v8231_v33  ;;  %v8294_v31 = vld [vmem:[#allocation25_spill] sm:$0xff]  ;;  %v8295_v33 = vld [vmem:[#allocation27_spill] sm:$0xff] }
 0x99c   : > { %3627 = vmatpush1.bf16.msra.mxu0 %v8232_v46  ;;  %3668 = vmatpush1.bf16.msra.mxu1 %v8233_v12  ;;  %v8296_v46 = vpack.c.bf16 %v8294_v31, %v8295_v33  ;;  %v4742_v12 = vld [vmem:[#allocation16 + $0x38] sm:$0xff]  }
 0x99d   : > { %3628 = vmatprep.subr.bf16.mxu0 %v7077_v42  ;;  %3669 = vmatprep.subr.bf16.mxu1 %v8234_v51  ;;  %v4743_v51 = vld [vmem:[#allocation16 + $0x30] sm:$0xff]  }
 0x99e   : > { %v4989_v25 = vpop.eup %4988 }
 0x99f   : > { %v3522_v27 = vmul.f32 %v4989_v25, %v4987_v43 }
 0x9a0   : > { %3629 = vmatpush1.bf16.msra.mxu0 %v8235_v55  ;;  %3670 = vmatpush1.bf16.msra.mxu1 %v8236_v60  ;;  %v4744_v55 = vld [vmem:[#allocation16 + $0x28] sm:$0xff]   ;;  %v4745_v60 = vld [vmem:[#allocation16 + $0x20] sm:$0xff]  }
 0x9a1   : > { %3630 = vmatprep.subr.bf16.mxu0 %v8237_v36  ;;  %3671 = vmatprep.subr.bf16.mxu1 %v8238_v20  ;;  %v3531_v58 = vsub.f32 %v3522_v27, %v7325_v10  ;;  %v4746_v36 = vld [vmem:[#allocation16 + $0x18] sm:$0xff]   ;;  %v4747_v20 = vld [vmem:[#allocation16 + $0x10] sm:$0xff]  }
 0x9a3   : > { %v3532_v45 = vmul.f32 %v3531_v58, %v7437_v16 }
 0x9a4   : > { %3631 = vmatpush1.bf16.msra.mxu0 %v8239_v34  ;;  %3672 = vmatpush1.bf16.msra.mxu1 %v7100_v26  ;;  %v8292_v26 = vld [vmem:[#allocation54_spill] sm:$0xff] }
 0x9a5   : > { %3632 = vmatprep.subr.bf16.mxu0 %v7103_v22  ;;  %3673 = vmatprep.subr.bf16.mxu1 %v7106_v17  ;;  %v3533_v11 = vadd.f32 %v3532_v45, %v7325_v10  ;;  %v8293_v53 = vpack.c.bf16 %v8291_v1, %v8292_v26  ;;  %v4736_v22 = vld [vmem:[#allocation15 + $0x28] sm:$0xff]   ;;  %v4737_v17 = vld [vmem:[#allocation15 + $0x20] sm:$0xff]  }
 0x9a7   : > { %v3534_v42 = vpack.c.bf16 %v3533_v11, %v3533_v11  ;;  %3737 = vst [vmem:[#allocation2] sm:$0xff] %v3533_v11 }
 0x9a8   : > { %3633 = vmatpush1.bf16.msra.mxu0 %v7114_v9  ;;  %3674 = vmatpush1.bf16.msra.mxu1 %v7117_v7  ;;  %v4739_v9 = vld [vmem:[#allocation15 + $0x10] sm:$0xff]   ;;  %v4740_v7 = vld [vmem:[#allocation15 + $0x8] sm:$0xff]  }
 0x9a9   : > { %4432 = vmatprep.subr.bf16.mxu0 %v4734_v24  ;;  %4456 = vmatprep.subr.bf16.mxu1 %v4742_v12 }
 0x9ab   : > { %3651 = vmatmul.mubr.bf16.vlgmr.msra.gmra.mxu0 %v3534_v42  ;;  %3692 = vmatmul.mubr.bf16.vlgmr.msra.gmra.mxu1 %v3534_v42 }
 0x9ac   : > { %4433 = vmatpush3.bf16.msra.mxu0 %v4734_v24  ;;  %4448 = vmatprep.mubr.bf16.mxu0 %v8293_v53  ;;  %v4382_v24 = vld [vmem:[%s7560_s7] ss:$0 sm:$0xff] }
 0x9ad   : > { %4434 = vmatprep.subr.bf16.mxu0 %v4735_v47  ;;  %4457 = vmatpush3.bf16.msra.mxu1 %v4742_v12 }
 0x9ae   : > { %4458 = vmatprep.subr.bf16.mxu1 %v4743_v51 }
 0x9b0   : > { %4435 = vmatpush3.bf16.msra.mxu0 %v4735_v47 }
 0x9b1   : > { %4436 = vmatprep.subr.bf16.mxu0 %v4736_v22  ;;  %4459 = vmatpush3.bf16.msra.mxu1 %v4743_v51 }
 0x9b2   : > { %4460 = vmatprep.subr.bf16.mxu1 %v4744_v55 }
 0x9b4   : > { %4437 = vmatpush3.bf16.msra.mxu0 %v4736_v22 }
 0x9b5   : > { %4438 = vmatprep.subr.bf16.mxu0 %v4737_v17  ;;  %4461 = vmatpush3.bf16.msra.mxu1 %v4744_v55 }
 0x9b6   : > { %4462 = vmatprep.subr.bf16.mxu1 %v4745_v60 }
 0x9b8   : > { %4439 = vmatpush3.bf16.msra.mxu0 %v4737_v17 }
 0x9b9   : > { %4440 = vmatprep.subr.bf16.mxu0 %v4738_v35  ;;  %4463 = vmatpush3.bf16.msra.mxu1 %v4745_v60 }
 0x9ba   : > { %4464 = vmatprep.subr.bf16.mxu1 %v4746_v36 }
 0x9bc   : > { %4441 = vmatpush3.bf16.msra.mxu0 %v4738_v35 }
 0x9bd   : > { %4442 = vmatprep.subr.bf16.mxu0 %v4739_v9  ;;  %4465 = vmatpush3.bf16.msra.mxu1 %v4746_v36 }
 0x9be   : > { %4466 = vmatprep.subr.bf16.mxu1 %v4747_v20 }
 0x9c0   : > { %4443 = vmatpush3.bf16.msra.mxu0 %v4739_v9 }
 0x9c1   : > { %4444 = vmatprep.subr.bf16.mxu0 %v4740_v7  ;;  %4467 = vmatpush3.bf16.msra.mxu1 %v4747_v20 }
 0x9c2   : > { %4468 = vmatprep.subr.bf16.mxu1 %v4748_v5 }
 0x9c4   : > { %4445 = vmatpush3.bf16.msra.mxu0 %v4740_v7 }
 0x9c5   : > { %4446 = vmatprep.subr.bf16.mxu0 %v4741_v50  ;;  %4469 = vmatpush3.bf16.msra.mxu1 %v4748_v5 }
 0x9c6   : > { %4470 = vmatprep.subr.bf16.mxu1 %v4749_v54 }
 0x9c8   : > { %4447 = vmatpush3.bf16.msra.mxu0 %v4741_v50 }
 0x9c9   : > { %4471 = vmatpush3.bf16.msra.mxu1 %v4749_v54 }
 0x9cb   : > { %4449 = vmatmul.mubr.bf16.vlgmr.msra.gmra.mxu0 %v8296_v46 }
 0x9cc   : > { %4452 = vmatprep.mubr.bf16.mxu0 %v3751_v15 }
 0xa4b   : > { %v3570_v15 = vpop.f32.mrf.mxu0  ;;  %v3611_v34 = vpop.f32.mrf.mxu1 }
 0xa4d   : > { %v3572_v10 = vpop.f32.mrf.mxu0  ;;  %v3613_v14 = vpop.f32.mrf.mxu1 }
 0xa4f   : > { %v3574_v49 = vpop.f32.mrf.mxu0  ;;  %v3615_v18 = vpop.f32.mrf.mxu1 }
 0xa51   : > { %v3575_v19 = vpop.f32.mrf.mxu0  ;;  %v3616_v52 = vpop.f32.mrf.mxu1 }
 0xa52   : > { %v4391_v19 = vld [vmem:[%s7562_s9] ss:$0 sm:$0xff] }
 0xa6b   : > { %v3652_v13 = vpop.f32.mrf.mxu0  ;;  %v3693_v6 = vpop.f32.mrf.mxu1 }
 0xa6c   : > { %v3653_v8 = vadd.f32 %v3652_v13, %v3570_v15  ;;  %v3694_v21 = vadd.f32 %v3693_v6, %v3611_v34  ;;  %v3400_v34 = vmul.f32 %v7415_v63, %v7296_v30 }
 0xa6d   : > { %v3654_v4 = vpop.f32.mrf.mxu0  ;;  %v3695_v29 = vpop.f32.mrf.mxu1 }
 0xa6e   : > { %v3700_v57 = vadd.f32 %v3653_v8, %v6117_v28  ;;  %v3655_v56 = vadd.f32 %v3654_v4, %v3572_v10  ;;  %v3696_v2 = vadd.f32 %v3695_v29, %v3613_v14  ;;  %v3702_v25 = vadd.f32 %v3694_v21, %v6138_v61 }
 0xa6f   : > { %v3656_v37 = vpop.f32.mrf.mxu0  ;;  %v3697_v40 = vpop.f32.mrf.mxu1 }
 0xa70   : > { %v4379_v41 = vmul.f32 -1.442695, %v3700_v57  ;;  %v3701_v62 = vadd.f32 %v3655_v56, %v6119_v44  ;;  %v3703_v0 = vadd.f32 %v3696_v2, %v6131_v3 }
 0xa71   : > { %v3657_v48 = vpop.f32.mrf.mxu0  ;;  %v3698_v59 = vpop.f32.mrf.mxu1 }
 0xa72   : > { %4990 = vpow2.f32 %v4379_v41  ;;  %v4380_v38 = vmul.f32 -1.442695, %v3701_v62  ;;  %v4381_v39 = vmul.f32 -1.442695, %v3703_v0 }
 0xa74   : > { %4992 = vpow2.f32 %v4380_v38 }
 0xa75   : > { %4994 = vpow2.f32 %v4381_v39 }
 0xa7f   : > { %v4991_v43 = vpop.eup %4990 }
 0xa80   : > { %v3707_v28 = vadd.f32 1.0, %v4991_v43 }
 0xa81   : > { %v4993_v27 = vpop.eup %4992 }
 0xa82   : > { %4996 = vrcp.f32 %v3707_v28  ;;  %v3713_v58 = vadd.f32 1.0, %v4993_v27  ;;  %v4995_v11 = vpop.eup %4994 }
 0xa83   : > { %4998 = vtanh.f32 %v3702_v25  ;;  %v3720_v53 = vadd.f32 1.0, %v4995_v11 }
 0xa84   : > { %5000 = vrcp.f32 %v3713_v58 }
 0xa85   : > { %5002 = vrcp.f32 %v3720_v53 }
 0xa8b   : > { %v4450_v44 = vpop.f32.mrf.mxu0 }
 0xa8c   : > { %v3867_v22 = vadd.f32 %v4450_v44, %v4382_v24 }
 0xa8d   : > { %v3858_v45 = vpop.f32.mrf.mxu0 }
 0xa8e   : > { %v3859_v1 = vadd.f32 %v4382_v24, %v3858_v45  ;;  %v3891_v12 = vmax.f32 %v3867_v22, 0.0 }
 0xa8f   : > { %v4997_v3 = vpop.eup %4996  ;;  %v4451_v42 = vpop.f32.mrf.mxu0 }
 0xa90   : > { %v4999_v47 = vpop.eup %4998  ;;  %v3870_v26 = vadd.f32 %v4451_v42, %v4382_v24  ;;  %v3889_v33 = vmax.f32 %v3859_v1, 0.0 }
 0xa91   : > { %v5001_v61 = vpop.eup %5000  ;;  %v3861_v17 = vpop.f32.mrf.mxu0  ;;  %v3724_v35 = vmul.f32 %v4999_v47, %v4997_v3 }
 0xa92   : > { %v3723_v9 = vmul.f32 %v5001_v61, %v7413_v23  ;;  %v3862_v7 = vadd.f32 %v4382_v24, %v3861_v17  ;;  %v3892_v50 = vmax.f32 %v3870_v26, 0.0  ;;  %v5003_v5 = vpop.eup %5002 }
 0xa94   : > { %v3725_v31 = vadd.f32 %v3724_v35, %v3723_v9  ;;  %v3890_v46 = vmax.f32 %v3862_v7, 0.0  ;;  %v3898_v60 = vpack.c.bf16 %v3892_v50, %v3891_v12 }
 0xa96   : > { %v3728_v51 = vsub.f32 %v3725_v31, %v7413_v23  ;;  %v3897_v55 = vpack.c.bf16 %v3890_v46, %v3889_v33  ;;  %5004 = vtanh.f32 %v3725_v31 }
 0xa98   : > { %v3729_v36 = vmul.f32 %v3728_v51, %v7437_v16  ;;  %4472 = vmatprep.mubr.bf16.mxu1 %v3897_v55 }
 0xa99   : > { %4473 = vmatmul.mubr.bf16.vlgmr.msra.gmra.mxu1 %v3898_v60 }
 0xa9a   : > { %v3730_v20 = vadd.f32 %v3729_v36, %v7413_v23 }
 0xa9c   : > { %3740 = vst [vmem:[#allocation5] sm:$0xff] %v3730_v20 }
 0xaa3   : > { %v5005_v54 = vpop.eup %5004 }
 0xaa4   : > { %v3727_v15 = vmul.f32 %v5005_v54, %v5003_v5 }
 0xaa6   : > { %v3731_v10 = vsub.f32 %v3727_v15, %v7421_v32  ;;  %v3734_v14 = vmul.f32 %v3727_v15, %v7437_v16 }
 0xaa8   : > { %v3732_v49 = vmul.f32 %v3731_v10, %v7437_v16  ;;  %v3752_v18 = vpack.c.bf16 %v3734_v14, %v3400_v34 }
 0xaaa   : > { %v3733_v23 = vadd.f32 %v3732_v49, %v7421_v32  ;;  %4453 = vmatmul.mubr.bf16.gmra.mxu0 %v3752_v18 }
 0xaac   : > { %3739 = vst [vmem:[#allocation4] sm:$0xff] %v3733_v23 }
 0xb59   : > { %v4474_v52 = vpop.f32.mrf.mxu1 }
 0xb5a   : > { %v4015_v13 = vadd.f32 %v4474_v52, %v4391_v19 }
 0xb5b   : > { %v4006_v30 = vpop.f32.mrf.mxu1 }
 0xb5c   : > { %4039 = vst [vmem:[%s5693_s20 + $0x10] sm:$0xff] %v4015_v13  ;;  %v4007_v63 = vadd.f32 %v4391_v19, %v4006_v30 }
 0xb5d   : > { %v4475_v6 = vpop.f32.mrf.mxu1 }
 0xb5e   : > { %4037 = vst [vmem:[%s5693_s20] sm:$0xff] %v4007_v63  ;;  %v4018_v8 = vadd.f32 %v4475_v6, %v4391_v19 }
 0xb5f   : > { %v4009_v4 = vpop.f32.mrf.mxu1 }
 0xb60   : > { %4040 = vst [vmem:[%s5693_s20 + $0x18] sm:$0xff] %v4018_v8  ;;  %v4010_v16 = vadd.f32 %v4391_v19, %v4009_v4 }
 0xb62   : > { %4038 = vst [vmem:[%s5693_s20 + $0x8] sm:$0xff] %v4010_v16 }
 0xb6a   : > { %v4454_v29 = vpop.f32.mrf.mxu0 }
 0xb6b   : > { %v3883_v40 = vadd.f32 %v4454_v29, %v4382_v24 }
 0xb6c   : > { %v3874_v32 = vpop.f32.mrf.mxu0 }
 0xb6d   : > { %v3875_v56 = vadd.f32 %v4382_v24, %v3874_v32  ;;  %v3895_v2 = vmax.f32 %v3883_v40, 0.0 }
 0xb6e   : > { %v4455_v57 = vpop.f32.mrf.mxu0 }
 0xb6f   : > { %v3886_v37 = vadd.f32 %v4455_v57, %v4382_v24  ;;  %v3893_v59 = vmax.f32 %v3875_v56, 0.0 }
 0xb70   : > { %v3877_v41 = vpop.f32.mrf.mxu0 }
 0xb71   : > { %v3878_v62 = vadd.f32 %v4382_v24, %v3877_v41  ;;  %v3896_v48 = vmax.f32 %v3886_v37, 0.0 }
 0xb73   : > { %v3894_v38 = vmax.f32 %v3878_v62, 0.0  ;;  %v3900_v21 = vpack.c.bf16 %v3896_v48, %v3895_v2 }
 0xb75   : > { %v3899_v0 = vpack.c.bf16 %v3894_v38, %v3893_v59 }
 0xb77   : > { %4476 = vmatprep.mubr.bf16.mxu1 %v3899_v0 }
 0xb78   : > { %4477 = vmatmul.mubr.bf16.gmra.mxu1 %v3900_v21 }
 0xc38   : > { %v4478_v39 = vpop.f32.mrf.mxu1 }
 0xc39   : > { %v4031_v43 = vadd.f32 %v4478_v39, %v4391_v19 }
 0xc3a   : > { %v4022_v25 = vpop.f32.mrf.mxu1 }
 0xc3b   : > { %4043 = vst [vmem:[%s5693_s20 + $0x30] sm:$0xff] %v4031_v43  ;;  %v4023_v28 = vadd.f32 %v4391_v19, %v4022_v25 }
 0xc3c   : > { %v4479_v27 = vpop.f32.mrf.mxu1 }
 0xc3d   : > { %4041 = vst [vmem:[%s5693_s20 + $0x20] sm:$0xff] %v4023_v28  ;;  %v4034_v58 = vadd.f32 %v4479_v27, %v4391_v19 }
 0xc3e   : > { %v4025_v44 = vpop.f32.mrf.mxu1 }
 0xc3f   : > { %4044 = vst [vmem:[%s5693_s20 + $0x38] sm:$0xff] %v4034_v58  ;;  %v4026_v45 = vadd.f32 %v4391_v19, %v4025_v44 }
 0xc41   : > { %4042 = vst [vmem:[%s5693_s20 + $0x28] sm:$0xff] %v4026_v45 }
 0xc42   : > { %5369 = shalt.err (!%p5366_p4)
}
 0xc43   : > { %s5370_s20 = scalar_lea.hbm %s7506_s3, 1024  ;;  %s5374_s27 = scalar_lea.hbm %s7563_s10, 2048 }
 0xc44   : > { %p5371_p5 = scmp.ne.s32.totalorder %s7506_s3, %s5370_s20  ;;  %p5375_p8 = scmp.lt.s32.totalorder %s7506_s3, %s7563_s10 }
 0xc45   : > { %p5376_p10 = scmp.lt.s32.totalorder %s5374_s27, %s5370_s20 }
 0xc46   : > { %p5372_p7 = pnand %p5371_p5, %p8297_p2 }
 0xc47   : > { %p5377_p13 = por %p5376_p10, %p5375_p8 }
 0xc48   : > { %p5373_p11 = pneg %p5372_p7 }
 0xc4a   : > { %p5378_p0 = pnand %p5377_p13, %p5373_p11 }
 0xc4c   : > { %5381 = shalt.err (!%p5378_p0)
}
 0xc4d   : > { %s5450_s17 = smov 128   ;;  %s5451_s29 = smov 8  }
 0xc4e   : > { %4502 = dma.vmem_to_hbm [thread:$0]  (%p8297_p2), %s7508_s22, 1024, %s7506_s3, %s4046_s18, %s5450_s17, %s5450_s17, %s5451_s29  }
 0xc4f PF: > { %s4074_s19 = sand.u32 1, %s5420_s13   ;;  %p8298_p6 = scmp.ne.s32.totalorder %s7860_s25, 0 }
 0xc50   : > { %p8299_p9 = scmp.ge.s32.totalorder %s5432_s16, 2  ;;  %s4075_s6 = scalar_lea.sflag [#allocation9], %s4074_s19 }
 0xc52   : > { %p4525_p12 = pnand %p8299_p9, %p8298_p6 }
 0xc54   : > { %p4526_p1 = pneg %p4525_p12 }
 0xc56   : > { %5415 = dma.done.wait (%p4526_p1), %s4075_s6, 1024  }
 0xc57   : > { %5417 = vsyncadd (%p4526_p1), %s4075_s6, 4294966272  ;;  %p26_p3 = scmp.ge.s32.totalorder %s5604_s23, 4   ;;  %s8300_s13 = smov %s5424_s14 }
 0xc58   : > { %s8301_s14 = smov %s5428_s15  ;;  %s8302_s15 = smov %s5616_s11 }
 0xc59   : > { %s8303_s16 = smov %s5604_s23  ;;  %28 = sbr.rel (!%p26_p3) target bundleno = 13 (0xd), region = 143 }
 0xc5e   :  { %4080 = vsyncpa [#allocation8], 1 }
 0xc5f   :  { %4082 = vsyncpa [#allocation8 + $0x1], 1 }
 0xc60   :  { %4083 = vsyncpa [#allocation11], 1 }
 0xc61   :  { %4084 = vsyncpa [#allocation14], 1 }
 0xc62   :  { %4085 = vsyncpa [#allocation17], 1 }
 0xc63   :  { %4086 = vsyncpa [#allocation9], 1 }
 0xc64   :  { %4088 = vsyncpa [#allocation9 + $0x1], 1 }

</bundles_post_ra>
